<compile_context>
chip_gen: v5e
topology: v5e:2x2
jax: 0.10.0
libtpu: 0.0.40
codegen_flags: <defaults>
</compile_context>

<pallas_src>
import math
import functools

import jax
import jax.numpy as jnp
from jax.experimental import pallas as pl
from jax.experimental.pallas import tpu as pltpu


_VMEM_LIMIT = 48 * 1024 * 1024   # explicit scoped-VMEM cap (v5e default is 16 MiB)


# ----------------------------------------------------------------------------
# helpers
# ----------------------------------------------------------------------------
def _fit_tile(dim, target, unit):
    """Largest tile <= target that divides `dim` and is a multiple of `unit`,
    falling back to the full dim (always a legal BlockSpec block)."""
    if dim <= target:
        return dim
    t = (target // unit) * unit
    while t >= unit and dim % t != 0:
        t -= unit
    return t if (t >= unit and dim % t == 0) else dim


def _gelu(y):
    # Custom tanh-approximation GELU from the module.
    c = math.sqrt(2.0 / math.pi)
    return 0.5 * y * (1.0 + jnp.tanh(c * (y + 0.044715 * y * y * y)))


# ----------------------------------------------------------------------------
# tiled matmul + bias (+ optional GELU)  -- bf16 MXU inputs, f32 accumulation
# ----------------------------------------------------------------------------
def _matmul_kernel(x_ref, w_ref, b_ref, o_ref, acc_ref, *, act):
    @pl.when(pl.program_id(2) == 0)
    def _():
        acc_ref[...] = jnp.zeros_like(acc_ref)

    acc_ref[...] += jnp.dot(x_ref[...], w_ref[...],
                            preferred_element_type=jnp.float32)

    @pl.when(pl.program_id(2) == pl.num_programs(2) - 1)
    def _():
        y = acc_ref[...] + b_ref[...]
        if act == "gelu":
            y = _gelu(y)
        o_ref[...] = y.astype(o_ref.dtype)


def linear(x, w, b, act="none", out_dtype=jnp.float32,
           tm=512, tn=512, tk=1024):
    """x: (M, K) @ w: (K, N) + b: (N,), optional fused activation."""
    M, K = x.shape
    Kw, N = w.shape
    assert K == Kw
    tm = _fit_tile(M, tm, 16)     # bf16 packs 2 rows per sublane
    tn = _fit_tile(N, tn, 128)
    tk = _fit_tile(K, tk, 128)

    x = x.astype(jnp.bfloat16)
    w = w.astype(jnp.bfloat16)
    b2 = b.reshape(1, N).astype(jnp.float32)

    grid = (M // tm, N // tn, K // tk)
    return pl.pallas_call(
        functools.partial(_matmul_kernel, act=act),
        out_shape=jax.ShapeDtypeStruct((M, N), out_dtype),
        grid=grid,
        in_specs=[
            pl.BlockSpec((tm, tk), lambda i, j, k: (i, k)),
            pl.BlockSpec((tk, tn), lambda i, j, k: (k, j)),
            pl.BlockSpec((1, tn), lambda i, j, k: (0, j)),
        ],
        out_specs=pl.BlockSpec((tm, tn), lambda i, j, k: (i, j)),
        scratch_shapes=[pltpu.VMEM((tm, tn), jnp.float32)],
        compiler_params=pltpu.CompilerParams(
            dimension_semantics=("parallel", "parallel", "arbitrary"),
            vmem_limit_bytes=_VMEM_LIMIT),
    )(x, w, b2)


# ----------------------------------------------------------------------------
# tiled matmul + bias + residual add + custom LayerNorm fused in the epilogue
#   layer_norm(residual + (x @ w + b))  -- unbiased std, eps added to std
# ----------------------------------------------------------------------------
def _matmul_add_ln_kernel(x_ref, w_ref, b_ref, res_ref, g_ref, beta_ref,
                          o_ref, acc_ref, *, eps, n):
    @pl.when(pl.program_id(2) == 0)
    def _():
        acc_ref[...] = jnp.zeros_like(acc_ref)

    acc_ref[...] += jnp.dot(x_ref[...], w_ref[...],
                            preferred_element_type=jnp.float32)

    @pl.when(pl.program_id(2) == pl.num_programs(2) - 1)
    def _():
        z = res_ref[...] + acc_ref[...] + b_ref[...]
        mean = jnp.mean(z, axis=-1, keepdims=True)
        d = z - mean
        # torch.std default is the unbiased (n-1) estimator; the custom
        # LayerNorm adds eps to std (not var) -- matches the module exactly.
        var = jnp.sum(d * d, axis=-1, keepdims=True) / (n - 1)
        inv = pl.reciprocal(jnp.sqrt(var) + eps)          # (tm, 1) column
        o_ref[...] = (g_ref[...] * d * inv + beta_ref[...]).astype(o_ref.dtype)


def linear_add_ln(x, w, b, residual, ln_w, ln_b, eps=1e-6, tm=512, tk=1024):
    """layer_norm(residual + (x @ w + b)) with the add+LN fused into the
    final-K epilogue of the matmul (requires full rows, i.e. tn == N)."""
    M, K = x.shape
    Kw, N = w.shape
    assert K == Kw and residual.shape == (M, N)
    tm = _fit_tile(M, tm, 16)
    tk = _fit_tile(K, tk, 128)
    tn = N   # whole row per tile so the LN reduction over N is complete

    x = x.astype(jnp.bfloat16)
    w = w.astype(jnp.bfloat16)
    b2 = b.reshape(1, N).astype(jnp.float32)
    g2 = ln_w.reshape(1, N).astype(jnp.float32)
    beta2 = ln_b.reshape(1, N).astype(jnp.float32)
    res = residual.astype(jnp.float32)

    grid = (M // tm, 1, K // tk)
    return pl.pallas_call(
        functools.partial(_matmul_add_ln_kernel, eps=eps, n=N),
        out_shape=jax.ShapeDtypeStruct((M, N), jnp.float32),
        grid=grid,
        in_specs=[
            pl.BlockSpec((tm, tk), lambda i, j, k: (i, k)),
            pl.BlockSpec((tk, tn), lambda i, j, k: (k, j)),
            pl.BlockSpec((1, tn), lambda i, j, k: (0, j)),
            pl.BlockSpec((tm, tn), lambda i, j, k: (i, j)),
            pl.BlockSpec((1, tn), lambda i, j, k: (0, j)),
            pl.BlockSpec((1, tn), lambda i, j, k: (0, j)),
        ],
        out_specs=pl.BlockSpec((tm, tn), lambda i, j, k: (i, j)),
        scratch_shapes=[pltpu.VMEM((tm, tn), jnp.float32)],
        compiler_params=pltpu.CompilerParams(
            dimension_semantics=("parallel", "parallel", "arbitrary"),
            vmem_limit_bytes=_VMEM_LIMIT),
    )(x, w, b2, res, g2, beta2)


# ----------------------------------------------------------------------------
# flash-style multi-head attention (heads batched, online softmax over KV)
# q is expected pre-scaled by 1/sqrt(d_k) (folded into the QKV projection).
# ----------------------------------------------------------------------------
def _flash_attn_kernel(q_ref, k_ref, v_ref, o_ref, m_sc, l_sc, acc_sc,
                       *, heads, dk):
    ki = pl.program_id(2)

    @pl.when(ki == 0)
    def _():
        m_sc[...] = jnp.full_like(m_sc, -jnp.inf)
        l_sc[...] = jnp.zeros_like(l_sc)
        acc_sc[...] = jnp.zeros_like(acc_sc)

    q = q_ref[0]                       # (heads, tq,  dk)  bf16
    k = k_ref[0]                       # (heads, tkv, dk)
    v = v_ref[0]                       # (heads, tkv, dk)

    # all heads in one batched MXU call
    s = jnp.einsum('hqd,hkd->hqk', q, k,
                   preferred_element_type=jnp.float32)       # (heads, tq, tkv)

    m_prev = m_sc[...]
    m_new = jnp.maximum(m_prev, jnp.max(s, axis=-1, keepdims=True))
    alpha = jnp.exp(m_prev - m_new)
    p = jnp.exp(s - m_new)
    l_sc[...] = alpha * l_sc[...] + jnp.sum(p, axis=-1, keepdims=True)
    acc_sc[...] = alpha * acc_sc[...] + jnp.einsum(
        'hqk,hkd->hqd', p.astype(v.dtype), v,
        preferred_element_type=jnp.float32)
    m_sc[...] = m_new

    @pl.when(ki == pl.num_programs(2) - 1)
    def _():
        out = acc_sc[...] * pl.reciprocal(l_sc[...], approx=True)  # (h, tq, dk)
        # merge heads into the lane-dense (tq, heads*dk) output block
        # (== transpose(1,2).contiguous().view(B, T, h*d_k) of the module)
        for h in range(heads):
            o_ref[0, :, h * dk:(h + 1) * dk] = out[h].astype(o_ref.dtype)


def flash_attention(q, k, v, *, tq=256, tkv=256):
    """q,k,v: (B, heads, T, dk) bf16 (q pre-scaled) -> (B, T, heads*dk) bf16."""
    B, heads, T, dk = q.shape
    tq = _fit_tile(T, tq, 8)
    tkv = _fit_tile(T, tkv, 8)
    H = heads * dk
    grid = (B, T // tq, T // tkv)
    return pl.pallas_call(
        functools.partial(_flash_attn_kernel, heads=heads, dk=dk),
        out_shape=jax.ShapeDtypeStruct((B, T, H), jnp.bfloat16),
        grid=grid,
        in_specs=[
            pl.BlockSpec((1, heads, tq, dk), lambda b, qi, ki: (b, 0, qi, 0)),
            pl.BlockSpec((1, heads, tkv, dk), lambda b, qi, ki: (b, 0, ki, 0)),
            pl.BlockSpec((1, heads, tkv, dk), lambda b, qi, ki: (b, 0, ki, 0)),
        ],
        out_specs=pl.BlockSpec((1, tq, H), lambda b, qi, ki: (b, qi, 0)),
        scratch_shapes=[
            pltpu.VMEM((heads, tq, 1), jnp.float32),    # running max m
            pltpu.VMEM((heads, tq, 1), jnp.float32),    # running denom l
            pltpu.VMEM((heads, tq, dk), jnp.float32),   # running output acc
        ],
        compiler_params=pltpu.CompilerParams(
            dimension_semantics=("parallel", "parallel", "arbitrary"),
            vmem_limit_bytes=_VMEM_LIMIT),
    )(q.astype(jnp.bfloat16), k.astype(jnp.bfloat16), v.astype(jnp.bfloat16))


# ----------------------------------------------------------------------------
# TransformerBlock parameters + forward
# ----------------------------------------------------------------------------
def init_params(key, *, hidden, heads, d_ff):
    dk = hidden // heads
    q_scale = 1.0 / math.sqrt(dk)       # folded into the Q projection
    ks = jax.random.split(key, 12)

    def init_w(k, shape, scale=0.02):
        return scale * jax.random.normal(k, shape, jnp.float32)

    w_q = init_w(ks[0], (hidden, hidden)) * q_scale
    b_q = init_w(ks[1], (hidden,)) * q_scale
    w_k = init_w(ks[2], (hidden, hidden))
    b_k = init_w(ks[3], (hidden,))
    w_v = init_w(ks[4], (hidden, hidden))
    b_v = init_w(ks[5], (hidden,))

    return {
        # fused Q|K|V projection: (H, 3H), softmax scale pre-folded into Q
        "w_qkv": jnp.concatenate([w_q, w_k, w_v], axis=1).astype(jnp.bfloat16),
        "b_qkv": jnp.concatenate([b_q, b_k, b_v], axis=0),
        "w_o":   init_w(ks[6], (hidden, hidden)).astype(jnp.bfloat16),
        "b_o":   init_w(ks[7], (hidden,)),
        "w_ff1": init_w(ks[8], (hidden, d_ff)).astype(jnp.bfloat16),
        "b_ff1": init_w(ks[9], (d_ff,)),
        "w_ff2": init_w(ks[10], (d_ff, hidden)).astype(jnp.bfloat16),
        "b_ff2": init_w(ks[11], (hidden,)),
        "ln1_w": jnp.ones((hidden,), jnp.float32),
        "ln1_b": jnp.zeros((hidden,), jnp.float32),
        "ln2_w": jnp.ones((hidden,), jnp.float32),
        "ln2_b": jnp.zeros((hidden,), jnp.float32),
    }


def transformer_block(params, x, mask=None, *, heads):
    """x: (B, T, H) float32 -> (B, T, H) float32. Dropout = identity."""
    # TODO(synk): attention mask (scores.masked_fill) path not implemented.
    assert mask is None, "mask path not implemented"
    B, T, H = x.shape
    assert H % heads == 0
    dk = H // heads
    M = B * T
    x2 = x.reshape(M, H).astype(jnp.float32)

    # --- MultiHeadedAttention: fused QKV projection -> flash attention ---
    qkv = linear(x2, params["w_qkv"], params["b_qkv"],
                 out_dtype=jnp.bfloat16)                             # (M, 3H)
    qkv = qkv.reshape(B, T, 3, heads, dk).transpose(2, 0, 3, 1, 4)   # (3,B,h,T,dk)
    attn = flash_attention(qkv[0], qkv[1], qkv[2])                   # (B, T, H)

    # out-projection + residual + LayerNorm fused  (SublayerConnection 1,
    # dropout = identity)
    x1 = linear_add_ln(attn.reshape(M, H), params["w_o"], params["b_o"],
                       x2, params["ln1_w"], params["ln1_b"])

    # --- PositionwiseFeedForward with custom tanh-GELU ---
    ff = linear(x1, params["w_ff1"], params["b_ff1"], act="gelu",
                out_dtype=jnp.bfloat16)
    # ff2 + residual + LayerNorm fused  (SublayerConnection 2)
    out = linear_add_ln(ff, params["w_ff2"], params["b_ff2"],
                        x1, params["ln2_w"], params["ln2_b"])

    # trailing nn.Dropout: identity at inference
    return out.reshape(B, T, H)


# ----------------------------------------------------------------------------
if __name__ == "__main__":
    B = 2
    SEQ = 16
    HIDDEN = 128
    HEADS = 4
    D_FF = 4 * HIDDEN          # feed_forward_hidden

    root = jax.random.PRNGKey(0)
    k_param, k_data = jax.random.split(root)

    params = init_params(k_param, hidden=HIDDEN, heads=HEADS, d_ff=D_FF)
    x = jax.random.normal(k_data, (B, SEQ, HIDDEN), jnp.float32)

    fwd = jax.jit(functools.partial(transformer_block, heads=HEADS))
    out = fwd(params, x)
    out = jax.block_until_ready(out)

    assert out.shape == (B, SEQ, HIDDEN), out.shape
    assert out.dtype == jnp.float32
    assert bool(jnp.all(jnp.isfinite(out)))
    print("KERNEL_OK")
</pallas_src>

<mosaic_0001>
module attributes {stable_mosaic.version = 11 : i64} {
  func.func @_matmul_kernel(%arg0: i32, %arg1: i32, %arg2: i32, %arg3: memref<32x128xbf16, #tpu.memory_space<vmem>>, %arg4: memref<128x384xbf16, #tpu.memory_space<vmem>>, %arg5: memref<1x384xf32, #tpu.memory_space<vmem>>, %arg6: memref<32x384xbf16, #tpu.memory_space<vmem>>, %arg7: memref<32x384xf32, #tpu.memory_space<vmem>>) attributes {dimension_semantics = [#tpu.dimension_semantics<parallel>, #tpu.dimension_semantics<parallel>, #tpu.dimension_semantics<arbitrary>], iteration_bounds = array<i64: 1, 1, 1>, scalar_prefetch = 0 : i64, scratch_operands = 1 : i64, tpu.core_type = #tpu.core_type<tc>, window_params = [{transform_indices = @transform_0, window_bounds = array<i64: 32, 128>}, {transform_indices = @transform_1, window_bounds = array<i64: 128, 384>}, {transform_indices = @transform_2, window_bounds = array<i64: 1, 384>}, {transform_indices = @transform_3, window_bounds = array<i64: 32, 384>}]} {
    %c0_i32 = arith.constant 0 : i32
    %0 = arith.cmpi eq, %arg2, %c0_i32 : i32
    %1 = arith.extui %0 : i1 to i32
    %c0_i32_0 = arith.constant 0 : i32
    %2 = arith.cmpi ne, %1, %c0_i32_0 : i32
    scf.if %2 {
      %cst_10 = arith.constant 0.000000e+00 : f32
      %12 = vector.broadcast %cst_10 : f32 to vector<32x384xf32>
      %c0_11 = arith.constant 0 : index
      %c0_12 = arith.constant 0 : index
      %13 = vector.load %arg7[%c0_11, %c0_12] : memref<32x384xf32, #tpu.memory_space<vmem>>, vector<32x384xf32>
      tpu.vector_store %arg7[%c0_11, %c0_12], %12 {strides = array<i32>} : memref<32x384xf32, #tpu.memory_space<vmem>>, vector<32x384xf32>,
    } else {
    }
    %c0 = arith.constant 0 : index
    %c0_1 = arith.constant 0 : index
    %3 = vector.load %arg7[%c0, %c0_1] : memref<32x384xf32, #tpu.memory_space<vmem>>, vector<32x384xf32>
    %c0_2 = arith.constant 0 : index
    %c0_3 = arith.constant 0 : index
    %4 = vector.load %arg3[%c0_2, %c0_3] : memref<32x128xbf16, #tpu.memory_space<vmem>>, vector<32x128xbf16>
    %c0_4 = arith.constant 0 : index
    %c0_5 = arith.constant 0 : index
    %5 = vector.load %arg4[%c0_4, %c0_5] : memref<128x384xbf16, #tpu.memory_space<vmem>>, vector<128x384xbf16>
    %cst = arith.constant dense<0.000000e+00> : vector<32x384xf32>
    %6 = tpu.matmul %4, %5, %cst {dimension_numbers = #tpu.dot_dimension_numbers<[1], [0], [0], [1], [0, 0, 1, 1], [], []>} : vector<32x128xbf16>, vector<128x384xbf16>, vector<32x384xf32> -> vector<32x384xf32>
    %7 = arith.addf %3, %6 : vector<32x384xf32>
    %c0_6 = arith.constant 0 : index
    %c0_7 = arith.constant 0 : index
    %8 = vector.load %arg7[%c0_6, %c0_7] : memref<32x384xf32, #tpu.memory_space<vmem>>, vector<32x384xf32>
    tpu.vector_store %arg7[%c0_6, %c0_7], %7 {strides = array<i32>} : memref<32x384xf32, #tpu.memory_space<vmem>>, vector<32x384xf32>,
    %c0_i32_8 = arith.constant 0 : i32
    %9 = arith.cmpi eq, %arg2, %c0_i32_8 : i32
    %10 = arith.extui %9 : i1 to i32
    %c0_i32_9 = arith.constant 0 : i32
    %11 = arith.cmpi ne, %10, %c0_i32_9 : i32
    scf.if %11 {
      %c0_10 = arith.constant 0 : index
      %c0_11 = arith.constant 0 : index
      %12 = vector.load %arg7[%c0_10, %c0_11] : memref<32x384xf32, #tpu.memory_space<vmem>>, vector<32x384xf32>
      %c0_12 = arith.constant 0 : index
      %c0_13 = arith.constant 0 : index
      %13 = vector.load %arg5[%c0_12, %c0_13] : memref<1x384xf32, #tpu.memory_space<vmem>>, vector<1x384xf32>
      %14 = vector.broadcast %13 : vector<1x384xf32> to vector<32x384xf32>
      %15 = arith.addf %12, %14 : vector<32x384xf32>
      %16 = arith.truncf %15 : vector<32x384xf32> to vector<32x384xbf16>
      %c0_14 = arith.constant 0 : index
      %c0_15 = arith.constant 0 : index
      %17 = vector.load %arg6[%c0_14, %c0_15] : memref<32x384xbf16, #tpu.memory_space<vmem>>, vector<32x384xbf16>
      tpu.vector_store %arg6[%c0_14, %c0_15], %16 {strides = array<i32>} : memref<32x384xbf16, #tpu.memory_space<vmem>>, vector<32x384xbf16>,
    } else {
    }
    return
  }
  func.func @transform_0(%arg0: i32, %arg1: i32, %arg2: i32) -> (i32, i32) {
    %c0_i32 = arith.constant 0 : i32
    return %arg0, %arg2 : i32, i32
  }
  func.func @transform_1(%arg0: i32, %arg1: i32, %arg2: i32) -> (i32, i32) {
    %c0_i32 = arith.constant 0 : i32
    return %arg2, %arg1 : i32, i32
  }
  func.func @transform_2(%arg0: i32, %arg1: i32, %arg2: i32) -> (i32, i32) {
    %c0_i32 = arith.constant 0 : i32
    %c0_i32_0 = arith.constant 0 : i32
    return %c0_i32, %arg1 : i32, i32
  }
  func.func @transform_3(%arg0: i32, %arg1: i32, %arg2: i32) -> (i32, i32) {
    %c0_i32 = arith.constant 0 : i32
    return %arg0, %arg1 : i32, i32
  }
}

module attributes {stable_mosaic.version = 11 : i64} {
  func.func @_flash_attn_kernel(%arg0: i32, %arg1: i32, %arg2: i32, %arg3: memref<1x4x16x32xbf16, #tpu.memory_space<vmem>>, %arg4: memref<1x4x16x32xbf16, #tpu.memory_space<vmem>>, %arg5: memref<1x4x16x32xbf16, #tpu.memory_space<vmem>>, %arg6: memref<1x16x128xbf16, #tpu.memory_space<vmem>>, %arg7: memref<4x16x1xf32, #tpu.memory_space<vmem>>, %arg8: memref<4x16x1xf32, #tpu.memory_space<vmem>>, %arg9: memref<4x16x32xf32, #tpu.memory_space<vmem>>) attributes {dimension_semantics = [#tpu.dimension_semantics<parallel>, #tpu.dimension_semantics<parallel>, #tpu.dimension_semantics<arbitrary>], iteration_bounds = array<i64: 2, 1, 1>, scalar_prefetch = 0 : i64, scratch_operands = 3 : i64, tpu.core_type = #tpu.core_type<tc>, window_params = [{transform_indices = @transform_0, window_bounds = array<i64: 1, 4, 16, 32>}, {transform_indices = @transform_1, window_bounds = array<i64: 1, 4, 16, 32>}, {transform_indices = @transform_2, window_bounds = array<i64: 1, 4, 16, 32>}, {transform_indices = @transform_3, window_bounds = array<i64: 1, 16, 128>}]} {
    %c0_i32 = arith.constant 0 : i32
    %0 = arith.cmpi eq, %arg2, %c0_i32 : i32
    %1 = arith.extui %0 : i1 to i32
    %c0_i32_0 = arith.constant 0 : i32
    %2 = arith.cmpi ne, %1, %c0_i32_0 : i32
    scf.if %2 {
      %cst_35 = arith.constant 0xFF800000 : f32
      %36 = vector.broadcast %cst_35 : f32 to vector<4x16x1xf32>
      %c0_36 = arith.constant 0 : index
      %c0_37 = arith.constant 0 : index
      %c0_38 = arith.constant 0 : index
      %37 = vector.load %arg7[%c0_36, %c0_37, %c0_38] : memref<4x16x1xf32, #tpu.memory_space<vmem>>, vector<4x16x1xf32>
      tpu.vector_store %arg7[%c0_36, %c0_37, %c0_38], %36 {strides = array<i32>} : memref<4x16x1xf32, #tpu.memory_space<vmem>>, vector<4x16x1xf32>,
      %cst_39 = arith.constant 0.000000e+00 : f32
      %38 = vector.broadcast %cst_39 : f32 to vector<4x16x1xf32>
      %c0_40 = arith.constant 0 : index
      %c0_41 = arith.constant 0 : index
      %c0_42 = arith.constant 0 : index
      %39 = vector.load %arg8[%c0_40, %c0_41, %c0_42] : memref<4x16x1xf32, #tpu.memory_space<vmem>>, vector<4x16x1xf32>
      tpu.vector_store %arg8[%c0_40, %c0_41, %c0_42], %38 {strides = array<i32>} : memref<4x16x1xf32, #tpu.memory_space<vmem>>, vector<4x16x1xf32>,
      %cst_43 = arith.constant 0.000000e+00 : f32
      %40 = vector.broadcast %cst_43 : f32 to vector<4x16x32xf32>
      %c0_44 = arith.constant 0 : index
      %c0_45 = arith.constant 0 : index
      %c0_46 = arith.constant 0 : index
      %41 = vector.load %arg9[%c0_44, %c0_45, %c0_46] : memref<4x16x32xf32, #tpu.memory_space<vmem>>, vector<4x16x32xf32>
      tpu.vector_store %arg9[%c0_44, %c0_45, %c0_46], %40 {strides = array<i32>} : memref<4x16x32xf32, #tpu.memory_space<vmem>>, vector<4x16x32xf32>,
    } else {
    }
    %c0 = arith.constant 0 : index
    %c0_1 = arith.constant 0 : index
    %c0_2 = arith.constant 0 : index
    %c0_3 = arith.constant 0 : index
    %3 = vector.load %arg3[%c0, %c0_1, %c0_2, %c0_3] : memref<1x4x16x32xbf16, #tpu.memory_space<vmem>>, vector<1x4x16x32xbf16>
    %4 = vector.shape_cast %3 : vector<1x4x16x32xbf16> to vector<4x16x32xbf16>
    %c0_4 = arith.constant 0 : index
    %c0_5 = arith.constant 0 : index
    %c0_6 = arith.constant 0 : index
    %c0_7 = arith.constant 0 : index
    %5 = vector.load %arg4[%c0_4, %c0_5, %c0_6, %c0_7] : memref<1x4x16x32xbf16, #tpu.memory_space<vmem>>, vector<1x4x16x32xbf16>
    %6 = vector.shape_cast %5 : vector<1x4x16x32xbf16> to vector<4x16x32xbf16>
    %c0_8 = arith.constant 0 : index
    %c0_9 = arith.constant 0 : index
    %c0_10 = arith.constant 0 : index
    %c0_11 = arith.constant 0 : index
    %7 = vector.load %arg5[%c0_8, %c0_9, %c0_10, %c0_11] : memref<1x4x16x32xbf16, #tpu.memory_space<vmem>>, vector<1x4x16x32xbf16>
    %8 = vector.shape_cast %7 : vector<1x4x16x32xbf16> to vector<4x16x32xbf16>
    "tpu.trace_start"() <{level = 10 : i32, message = "hqd,hkd->hqk"}> : () -> ()
    %cst = arith.constant dense<0.000000e+00> : vector<4x16x16xf32>
    %9 = tpu.matmul %4, %6, %cst {dimension_numbers = #tpu.dot_dimension_numbers<[2], [2], [1], [1], [0, 0, 0, 1, 1, 1], [0], [0]>} : vector<4x16x32xbf16>, vector<4x16x32xbf16>, vector<4x16x16xf32> -> vector<4x16x16xf32>
    "tpu.trace_stop"() : () -> ()
    %c0_12 = arith.constant 0 : index
    %c0_13 = arith.constant 0 : index
    %c0_14 = arith.constant 0 : index
    %10 = vector.load %arg7[%c0_12, %c0_13, %c0_14] : memref<4x16x1xf32, #tpu.memory_space<vmem>>, vector<4x16x1xf32>
    %cst_15 = arith.constant dense<0xFF800000> : vector<4x16xf32>
    %11 = vector.multi_reduction <maximumf>, %9, %cst_15 [2] : vector<4x16x16xf32> to vector<4x16xf32>
    %12 = vector.shape_cast %11 : vector<4x16xf32> to vector<4x16x1xf32>
    %13 = arith.maximumf %10, %12 : vector<4x16x1xf32>
    %14 = arith.subf %10, %13 : vector<4x16x1xf32>
    %15 = math.exp %14 : vector<4x16x1xf32>
    %16 = vector.broadcast %13 : vector<4x16x1xf32> to vector<4x16x16xf32>
    %17 = arith.subf %9, %16 : vector<4x16x16xf32>
    %18 = math.exp %17 : vector<4x16x16xf32>
    %c0_16 = arith.constant 0 : index
    %c0_17 = arith.constant 0 : index
    %c0_18 = arith.constant 0 : index
    %19 = vector.load %arg8[%c0_16, %c0_17, %c0_18] : memref<4x16x1xf32, #tpu.memory_space<vmem>>, vector<4x16x1xf32>
    %20 = arith.mulf %15, %19 : vector<4x16x1xf32>
    %cst_19 = arith.constant dense<0.000000e+00> : vector<4x16xf32>
    %21 = vector.multi_reduction <add>, %18, %cst_19 [2] : vector<4x16x16xf32> to vector<4x16xf32>
    %22 = vector.shape_cast %21 : vector<4x16xf32> to vector<4x16x1xf32>
    %23 = arith.addf %20, %22 : vector<4x16x1xf32>
    %c0_20 = arith.constant 0 : index
    %c0_21 = arith.constant 0 : index
    %c0_22 = arith.constant 0 : index
    %24 = vector.load %arg8[%c0_20, %c0_21, %c0_22] : memref<4x16x1xf32, #tpu.memory_space<vmem>>, vector<4x16x1xf32>
    tpu.vector_store %arg8[%c0_20, %c0_21, %c0_22], %23 {strides = array<i32>} : memref<4x16x1xf32, #tpu.memory_space<vmem>>, vector<4x16x1xf32>,
    %c0_23 = arith.constant 0 : index
    %c0_24 = arith.constant 0 : index
    %c0_25 = arith.constant 0 : index
    %25 = vector.load %arg9[%c0_23, %c0_24, %c0_25] : memref<4x16x32xf32, #tpu.memory_space<vmem>>, vector<4x16x32xf32>
    %26 = vector.broadcast %15 : vector<4x16x1xf32> to vector<4x16x32xf32>
    %27 = arith.mulf %26, %25 : vector<4x16x32xf32>
    %28 = arith.truncf %18 : vector<4x16x16xf32> to vector<4x16x16xbf16>
    "tpu.trace_start"() <{level = 10 : i32, message = "hqk,hkd->hqd"}> : () -> ()
    %cst_26 = arith.constant dense<0.000000e+00> : vector<4x16x32xf32>
    %29 = tpu.matmul %28, %8, %cst_26 {dimension_numbers = #tpu.dot_dimension_numbers<[2], [1], [1], [2], [0, 0, 0, 1, 1, 2], [0], [0]>} : vector<4x16x16xbf16>, vector<4x16x32xbf16>, vector<4x16x32xf32> -> vector<4x16x32xf32>
    "tpu.trace_stop"() : () -> ()
    %30 = arith.addf %27, %29 : vector<4x16x32xf32>
    %c0_27 = arith.constant 0 : index
    %c0_28 = arith.constant 0 : index
    %c0_29 = arith.constant 0 : index
    %31 = vector.load %arg9[%c0_27, %c0_28, %c0_29] : memref<4x16x32xf32, #tpu.memory_space<vmem>>, vector<4x16x32xf32>
    tpu.vector_store %arg9[%c0_27, %c0_28, %c0_29], %30 {strides = array<i32>} : memref<4x16x32xf32, #tpu.memory_space<vmem>>, vector<4x16x32xf32>,
    %c0_30 = arith.constant 0 : index
    %c0_31 = arith.constant 0 : index
    %c0_32 = arith.constant 0 : index
    %32 = vector.load %arg7[%c0_30, %c0_31, %c0_32] : memref<4x16x1xf32, #tpu.memory_space<vmem>>, vector<4x16x1xf32>
    tpu.vector_store %arg7[%c0_30, %c0_31, %c0_32], %13 {strides = array<i32>} : memref<4x16x1xf32, #tpu.memory_space<vmem>>, vector<4x16x1xf32>,
    %c0_i32_33 = arith.constant 0 : i32
    %33 = arith.cmpi eq, %arg2, %c0_i32_33 : i32
    %34 = arith.extui %33 : i1 to i32
    %c0_i32_34 = arith.constant 0 : i32
    %35 = arith.cmpi ne, %34, %c0_i32_34 : i32
    scf.if %35 {
      %c0_35 = arith.constant 0 : index
      %c0_36 = arith.constant 0 : index
      %c0_37 = arith.constant 0 : index
      %36 = vector.load %arg9[%c0_35, %c0_36, %c0_37] : memref<4x16x32xf32, #tpu.memory_space<vmem>>, vector<4x16x32xf32>
      %c0_38 = arith.constant 0 : index
      %c0_39 = arith.constant 0 : index
      %c0_40 = arith.constant 0 : index
      %37 = vector.load %arg8[%c0_38, %c0_39, %c0_40] : memref<4x16x1xf32, #tpu.memory_space<vmem>>, vector<4x16x1xf32>
      %38 = tpu.reciprocal %37 {approx = true} : vector<4x16x1xf32> -> vector<4x16x1xf32>
      %39 = vector.broadcast %38 : vector<4x16x1xf32> to vector<4x16x32xf32>
      %40 = arith.mulf %36, %39 : vector<4x16x32xf32>
      %41 = vector.extract_strided_slice %40 {offsets = [0, 0, 0], sizes = [1, 16, 32], strides = [1, 1, 1]} : vector<4x16x32xf32> to vector<1x16x32xf32>
      %42 = vector.shape_cast %41 : vector<1x16x32xf32> to vector<16x32xf32>
      %43 = arith.truncf %42 : vector<16x32xf32> to vector<16x32xbf16>
      %c0_41 = arith.constant 0 : index
      %c0_42 = arith.constant 0 : index
      %c0_43 = arith.constant 0 : index
      %44 = vector.load %arg6[%c0_41, %c0_42, %c0_43] : memref<1x16x128xbf16, #tpu.memory_space<vmem>>, vector<1x16x32xbf16>
      %45 = vector.shape_cast %44 : vector<1x16x32xbf16> to vector<16x32xbf16>
      %46 = vector.shape_cast %43 : vector<16x32xbf16> to vector<1x16x32xbf16>
      tpu.vector_store %arg6[%c0_41, %c0_42, %c0_43], %46 {strides = array<i32>} : memref<1x16x128xbf16, #tpu.memory_space<vmem>>, vector<1x16x32xbf16>,
      %47 = vector.extract_strided_slice %40 {offsets = [1, 0, 0], sizes = [1, 16, 32], strides = [1, 1, 1]} : vector<4x16x32xf32> to vector<1x16x32xf32>
      %48 = vector.shape_cast %47 : vector<1x16x32xf32> to vector<16x32xf32>
      %49 = arith.truncf %48 : vector<16x32xf32> to vector<16x32xbf16>
      %c0_44 = arith.constant 0 : index
      %c0_45 = arith.constant 0 : index
      %c32 = arith.constant 32 : index
      %50 = vector.load %arg6[%c0_44, %c0_45, %c32] : memref<1x16x128xbf16, #tpu.memory_space<vmem>>, vector<1x16x32xbf16>
      %51 = vector.shape_cast %50 : vector<1x16x32xbf16> to vector<16x32xbf16>
      %52 = vector.shape_cast %49 : vector<16x32xbf16> to vector<1x16x32xbf16>
      tpu.vector_store %arg6[%c0_44, %c0_45, %c32], %52 {strides = array<i32>} : memref<1x16x128xbf16, #tpu.memory_space<vmem>>, vector<1x16x32xbf16>,
      %53 = vector.extract_strided_slice %40 {offsets = [2, 0, 0], sizes = [1, 16, 32], strides = [1, 1, 1]} : vector<4x16x32xf32> to vector<1x16x32xf32>
      %54 = vector.shape_cast %53 : vector<1x16x32xf32> to vector<16x32xf32>
      %55 = arith.truncf %54 : vector<16x32xf32> to vector<16x32xbf16>
      %c0_46 = arith.constant 0 : index
      %c0_47 = arith.constant 0 : index
      %c64 = arith.constant 64 : index
      %56 = vector.load %arg6[%c0_46, %c0_47, %c64] : memref<1x16x128xbf16, #tpu.memory_space<vmem>>, vector<1x16x32xbf16>
      %57 = vector.shape_cast %56 : vector<1x16x32xbf16> to vector<16x32xbf16>
      %58 = vector.shape_cast %55 : vector<16x32xbf16> to vector<1x16x32xbf16>
      tpu.vector_store %arg6[%c0_46, %c0_47, %c64], %58 {strides = array<i32>} : memref<1x16x128xbf16, #tpu.memory_space<vmem>>, vector<1x16x32xbf16>,
      %59 = vector.extract_strided_slice %40 {offsets = [3, 0, 0], sizes = [1, 16, 32], strides = [1, 1, 1]} : vector<4x16x32xf32> to vector<1x16x32xf32>
      %60 = vector.shape_cast %59 : vector<1x16x32xf32> to vector<16x32xf32>
      %61 = arith.truncf %60 : vector<16x32xf32> to vector<16x32xbf16>
      %c0_48 = arith.constant 0 : index
      %c0_49 = arith.constant 0 : index
      %c96 = arith.constant 96 : index
      %62 = vector.load %arg6[%c0_48, %c0_49, %c96] : memref<1x16x128xbf16, #tpu.memory_space<vmem>>, vector<1x16x32xbf16>
      %63 = vector.shape_cast %62 : vector<1x16x32xbf16> to vector<16x32xbf16>
      %64 = vector.shape_cast %61 : vector<16x32xbf16> to vector<1x16x32xbf16>
      tpu.vector_store %arg6[%c0_48, %c0_49, %c96], %64 {strides = array<i32>} : memref<1x16x128xbf16, #tpu.memory_space<vmem>>, vector<1x16x32xbf16>,
    } else {
    }
    return
  }
  func.func @transform_0(%arg0: i32, %arg1: i32, %arg2: i32) -> (i32, i32, i32, i32) {
    %c0_i32 = arith.constant 0 : i32
    %c0_i32_0 = arith.constant 0 : i32
    %c0_i32_1 = arith.constant 0 : i32
    return %arg0, %c0_i32, %arg1, %c0_i32_0 : i32, i32, i32, i32
  }
  func.func @transform_1(%arg0: i32, %arg1: i32, %arg2: i32) -> (i32, i32, i32, i32) {
    %c0_i32 = arith.constant 0 : i32
    %c0_i32_0 = arith.constant 0 : i32
    %c0_i32_1 = arith.constant 0 : i32
    return %arg0, %c0_i32, %arg2, %c0_i32_0 : i32, i32, i32, i32
  }
  func.func @transform_2(%arg0: i32, %arg1: i32, %arg2: i32) -> (i32, i32, i32, i32) {
    %c0_i32 = arith.constant 0 : i32
    %c0_i32_0 = arith.constant 0 : i32
    %c0_i32_1 = arith.constant 0 : i32
    return %arg0, %c0_i32, %arg2, %c0_i32_0 : i32, i32, i32, i32
  }
  func.func @transform_3(%arg0: i32, %arg1: i32, %arg2: i32) -> (i32, i32, i32) {
    %c0_i32 = arith.constant 0 : i32
    %c0_i32_0 = arith.constant 0 : i32
    return %arg0, %arg1, %c0_i32 : i32, i32, i32
  }
}

module attributes {stable_mosaic.version = 11 : i64} {
  func.func @_matmul_add_ln_kernel(%arg0: i32, %arg1: i32, %arg2: i32, %arg3: memref<32x128xbf16, #tpu.memory_space<vmem>>, %arg4: memref<128x128xbf16, #tpu.memory_space<vmem>>, %arg5: memref<1x128xf32, #tpu.memory_space<vmem>>, %arg6: memref<32x128xf32, #tpu.memory_space<vmem>>, %arg7: memref<1x128xf32, #tpu.memory_space<vmem>>, %arg8: memref<1x128xf32, #tpu.memory_space<vmem>>, %arg9: memref<32x128xf32, #tpu.memory_space<vmem>>, %arg10: memref<32x128xf32, #tpu.memory_space<vmem>>) attributes {dimension_semantics = [#tpu.dimension_semantics<parallel>, #tpu.dimension_semantics<parallel>, #tpu.dimension_semantics<arbitrary>], iteration_bounds = array<i64: 1, 1, 1>, scalar_prefetch = 0 : i64, scratch_operands = 1 : i64, tpu.core_type = #tpu.core_type<tc>, window_params = [{transform_indices = @transform_0, window_bounds = array<i64: 32, 128>}, {transform_indices = @transform_1, window_bounds = array<i64: 128, 128>}, {transform_indices = @transform_2, window_bounds = array<i64: 1, 128>}, {transform_indices = @transform_3, window_bounds = array<i64: 32, 128>}, {transform_indices = @transform_4, window_bounds = array<i64: 1, 128>}, {transform_indices = @transform_5, window_bounds = array<i64: 1, 128>}, {transform_indices = @transform_6, window_bounds = array<i64: 32, 128>}]} {
    %c0_i32 = arith.constant 0 : i32
    %0 = arith.cmpi eq, %arg2, %c0_i32 : i32
    %1 = arith.extui %0 : i1 to i32
    %c0_i32_0 = arith.constant 0 : i32
    %2 = arith.cmpi ne, %1, %c0_i32_0 : i32
    scf.if %2 {
      %cst_10 = arith.constant 0.000000e+00 : f32
      %12 = vector.broadcast %cst_10 : f32 to vector<32x128xf32>
      %c0_11 = arith.constant 0 : index
      %c0_12 = arith.constant 0 : index
      %13 = vector.load %arg10[%c0_11, %c0_12] : memref<32x128xf32, #tpu.memory_space<vmem>>, vector<32x128xf32>
      tpu.vector_store %arg10[%c0_11, %c0_12], %12 {strides = array<i32>} : memref<32x128xf32, #tpu.memory_space<vmem>>, vector<32x128xf32>,
    } else {
    }
    %c0 = arith.constant 0 : index
    %c0_1 = arith.constant 0 : index
    %3 = vector.load %arg10[%c0, %c0_1] : memref<32x128xf32, #tpu.memory_space<vmem>>, vector<32x128xf32>
    %c0_2 = arith.constant 0 : index
    %c0_3 = arith.constant 0 : index
    %4 = vector.load %arg3[%c0_2, %c0_3] : memref<32x128xbf16, #tpu.memory_space<vmem>>, vector<32x128xbf16>
    %c0_4 = arith.constant 0 : index
    %c0_5 = arith.constant 0 : index
    %5 = vector.load %arg4[%c0_4, %c0_5] : memref<128x128xbf16, #tpu.memory_space<vmem>>, vector<128x128xbf16>
    %cst = arith.constant dense<0.000000e+00> : vector<32x128xf32>
    %6 = tpu.matmul %4, %5, %cst {dimension_numbers = #tpu.dot_dimension_numbers<[1], [0], [0], [1], [0, 0, 1, 1], [], []>} : vector<32x128xbf16>, vector<128x128xbf16>, vector<32x128xf32> -> vector<32x128xf32>
    %7 = arith.addf %3, %6 : vector<32x128xf32>
    %c0_6 = arith.constant 0 : index
    %c0_7 = arith.constant 0 : index
    %8 = vector.load %arg10[%c0_6, %c0_7] : memref<32x128xf32, #tpu.memory_space<vmem>>, vector<32x128xf32>
    tpu.vector_store %arg10[%c0_6, %c0_7], %7 {strides = array<i32>} : memref<32x128xf32, #tpu.memory_space<vmem>>, vector<32x128xf32>,
    %c0_i32_8 = arith.constant 0 : i32
    %9 = arith.cmpi eq, %arg2, %c0_i32_8 : i32
    %10 = arith.extui %9 : i1 to i32
    %c0_i32_9 = arith.constant 0 : i32
    %11 = arith.cmpi ne, %10, %c0_i32_9 : i32
    scf.if %11 {
      %c0_10 = arith.constant 0 : index
      %c0_11 = arith.constant 0 : index
      %12 = vector.load %arg6[%c0_10, %c0_11] : memref<32x128xf32, #tpu.memory_space<vmem>>, vector<32x128xf32>
      %c0_12 = arith.constant 0 : index
      %c0_13 = arith.constant 0 : index
      %13 = vector.load %arg10[%c0_12, %c0_13] : memref<32x128xf32, #tpu.memory_space<vmem>>, vector<32x128xf32>
      %14 = arith.addf %12, %13 : vector<32x128xf32>
      %c0_14 = arith.constant 0 : index
      %c0_15 = arith.constant 0 : index
      %15 = vector.load %arg5[%c0_14, %c0_15] : memref<1x128xf32, #tpu.memory_space<vmem>>, vector<1x128xf32>
      %16 = vector.broadcast %15 : vector<1x128xf32> to vector<32x128xf32>
      %17 = arith.addf %14, %16 : vector<32x128xf32>
      %cst_16 = arith.constant dense<0.000000e+00> : vector<32xf32>
      %18 = vector.multi_reduction <add>, %17, %cst_16 [1] : vector<32x128xf32> to vector<32xf32>
      %19 = vector.shape_cast %18 : vector<32xf32> to vector<32x1xf32>
      %cst_17 = arith.constant 1.280000e+02 : f32
      %20 = vector.broadcast %cst_17 : f32 to vector<32x1xf32>
      %21 = arith.divf %19, %20 : vector<32x1xf32>
      %22 = vector.broadcast %21 : vector<32x1xf32> to vector<32x128xf32>
      %23 = arith.subf %17, %22 : vector<32x128xf32>
      %24 = arith.mulf %23, %23 : vector<32x128xf32>
      %cst_18 = arith.constant dense<0.000000e+00> : vector<32xf32>
      %25 = vector.multi_reduction <add>, %24, %cst_18 [1] : vector<32x128xf32> to vector<32xf32>
      %26 = vector.shape_cast %25 : vector<32xf32> to vector<32x1xf32>
      %cst_19 = arith.constant 1.270000e+02 : f32
      %27 = vector.broadcast %cst_19 : f32 to vector<32x1xf32>
      %28 = arith.divf %26, %27 : vector<32x1xf32>
      %29 = math.sqrt %28 : vector<32x1xf32>
      %cst_20 = arith.constant 9.99999997E-7 : f32
      %30 = vector.broadcast %cst_20 : f32 to vector<32x1xf32>
      %31 = arith.addf %29, %30 : vector<32x1xf32>
      %32 = tpu.reciprocal %31 : vector<32x1xf32> -> vector<32x1xf32>
      %c0_21 = arith.constant 0 : index
      %c0_22 = arith.constant 0 : index
      %33 = vector.load %arg7[%c0_21, %c0_22] : memref<1x128xf32, #tpu.memory_space<vmem>>, vector<1x128xf32>
      %34 = vector.broadcast %33 : vector<1x128xf32> to vector<32x128xf32>
      %35 = arith.mulf %34, %23 : vector<32x128xf32>
      %36 = vector.broadcast %32 : vector<32x1xf32> to vector<32x128xf32>
      %37 = arith.mulf %35, %36 : vector<32x128xf32>
      %c0_23 = arith.constant 0 : index
      %c0_24 = arith.constant 0 : index
      %38 = vector.load %arg8[%c0_23, %c0_24] : memref<1x128xf32, #tpu.memory_space<vmem>>, vector<1x128xf32>
      %39 = vector.broadcast %38 : vector<1x128xf32> to vector<32x128xf32>
      %40 = arith.addf %37, %39 : vector<32x128xf32>
      %c0_25 = arith.constant 0 : index
      %c0_26 = arith.constant 0 : index
      %41 = vector.load %arg9[%c0_25, %c0_26] : memref<32x128xf32, #tpu.memory_space<vmem>>, vector<32x128xf32>
      tpu.vector_store %arg9[%c0_25, %c0_26], %40 {strides = array<i32>} : memref<32x128xf32, #tpu.memory_space<vmem>>, vector<32x128xf32>,
    } else {
    }
    return
  }
  func.func @transform_0(%arg0: i32, %arg1: i32, %arg2: i32) -> (i32, i32) {
    %c0_i32 = arith.constant 0 : i32
    return %arg0, %arg2 : i32, i32
  }
  func.func @transform_1(%arg0: i32, %arg1: i32, %arg2: i32) -> (i32, i32) {
    %c0_i32 = arith.constant 0 : i32
    return %arg2, %arg1 : i32, i32
  }
  func.func @transform_2(%arg0: i32, %arg1: i32, %arg2: i32) -> (i32, i32) {
    %c0_i32 = arith.constant 0 : i32
    %c0_i32_0 = arith.constant 0 : i32
    return %c0_i32, %arg1 : i32, i32
  }
  func.func @transform_3(%arg0: i32, %arg1: i32, %arg2: i32) -> (i32, i32) {
    %c0_i32 = arith.constant 0 : i32
    return %arg0, %arg1 : i32, i32
  }
  func.func @transform_4(%arg0: i32, %arg1: i32, %arg2: i32) -> (i32, i32) {
    %c0_i32 = arith.constant 0 : i32
    %c0_i32_0 = arith.constant 0 : i32
    return %c0_i32, %arg1 : i32, i32
  }
  func.func @transform_5(%arg0: i32, %arg1: i32, %arg2: i32) -> (i32, i32) {
    %c0_i32 = arith.constant 0 : i32
    %c0_i32_0 = arith.constant 0 : i32
    return %c0_i32, %arg1 : i32, i32
  }
  func.func @transform_6(%arg0: i32, %arg1: i32, %arg2: i32) -> (i32, i32) {
    %c0_i32 = arith.constant 0 : i32
    return %arg0, %arg1 : i32, i32
  }
}

module attributes {stable_mosaic.version = 11 : i64} {
  func.func @_matmul_kernel(%arg0: i32, %arg1: i32, %arg2: i32, %arg3: memref<32x128xbf16, #tpu.memory_space<vmem>>, %arg4: memref<128x512xbf16, #tpu.memory_space<vmem>>, %arg5: memref<1x512xf32, #tpu.memory_space<vmem>>, %arg6: memref<32x512xbf16, #tpu.memory_space<vmem>>, %arg7: memref<32x512xf32, #tpu.memory_space<vmem>>) attributes {dimension_semantics = [#tpu.dimension_semantics<parallel>, #tpu.dimension_semantics<parallel>, #tpu.dimension_semantics<arbitrary>], iteration_bounds = array<i64: 1, 1, 1>, scalar_prefetch = 0 : i64, scratch_operands = 1 : i64, tpu.core_type = #tpu.core_type<tc>, window_params = [{transform_indices = @transform_0, window_bounds = array<i64: 32, 128>}, {transform_indices = @transform_1, window_bounds = array<i64: 128, 512>}, {transform_indices = @transform_2, window_bounds = array<i64: 1, 512>}, {transform_indices = @transform_3, window_bounds = array<i64: 32, 512>}]} {
    %c0_i32 = arith.constant 0 : i32
    %0 = arith.cmpi eq, %arg2, %c0_i32 : i32
    %1 = arith.extui %0 : i1 to i32
    %c0_i32_0 = arith.constant 0 : i32
    %2 = arith.cmpi ne, %1, %c0_i32_0 : i32
    scf.if %2 {
      %cst_10 = arith.constant 0.000000e+00 : f32
      %12 = vector.broadcast %cst_10 : f32 to vector<32x512xf32>
      %c0_11 = arith.constant 0 : index
      %c0_12 = arith.constant 0 : index
      %13 = vector.load %arg7[%c0_11, %c0_12] : memref<32x512xf32, #tpu.memory_space<vmem>>, vector<32x512xf32>
      tpu.vector_store %arg7[%c0_11, %c0_12], %12 {strides = array<i32>} : memref<32x512xf32, #tpu.memory_space<vmem>>, vector<32x512xf32>,
    } else {
    }
    %c0 = arith.constant 0 : index
    %c0_1 = arith.constant 0 : index
    %3 = vector.load %arg7[%c0, %c0_1] : memref<32x512xf32, #tpu.memory_space<vmem>>, vector<32x512xf32>
    %c0_2 = arith.constant 0 : index
    %c0_3 = arith.constant 0 : index
    %4 = vector.load %arg3[%c0_2, %c0_3] : memref<32x128xbf16, #tpu.memory_space<vmem>>, vector<32x128xbf16>
    %c0_4 = arith.constant 0 : index
    %c0_5 = arith.constant 0 : index
    %5 = vector.load %arg4[%c0_4, %c0_5] : memref<128x512xbf16, #tpu.memory_space<vmem>>, vector<128x512xbf16>
    %cst = arith.constant dense<0.000000e+00> : vector<32x512xf32>
    %6 = tpu.matmul %4, %5, %cst {dimension_numbers = #tpu.dot_dimension_numbers<[1], [0], [0], [1], [0, 0, 1, 1], [], []>} : vector<32x128xbf16>, vector<128x512xbf16>, vector<32x512xf32> -> vector<32x512xf32>
    %7 = arith.addf %3, %6 : vector<32x512xf32>
    %c0_6 = arith.constant 0 : index
    %c0_7 = arith.constant 0 : index
    %8 = vector.load %arg7[%c0_6, %c0_7] : memref<32x512xf32, #tpu.memory_space<vmem>>, vector<32x512xf32>
    tpu.vector_store %arg7[%c0_6, %c0_7], %7 {strides = array<i32>} : memref<32x512xf32, #tpu.memory_space<vmem>>, vector<32x512xf32>,
    %c0_i32_8 = arith.constant 0 : i32
    %9 = arith.cmpi eq, %arg2, %c0_i32_8 : i32
    %10 = arith.extui %9 : i1 to i32
    %c0_i32_9 = arith.constant 0 : i32
    %11 = arith.cmpi ne, %10, %c0_i32_9 : i32
    scf.if %11 {
      %c0_10 = arith.constant 0 : index
      %c0_11 = arith.constant 0 : index
      %12 = vector.load %arg7[%c0_10, %c0_11] : memref<32x512xf32, #tpu.memory_space<vmem>>, vector<32x512xf32>
      %c0_12 = arith.constant 0 : index
      %c0_13 = arith.constant 0 : index
      %13 = vector.load %arg5[%c0_12, %c0_13] : memref<1x512xf32, #tpu.memory_space<vmem>>, vector<1x512xf32>
      %14 = vector.broadcast %13 : vector<1x512xf32> to vector<32x512xf32>
      %15 = arith.addf %12, %14 : vector<32x512xf32>
      %cst_14 = arith.constant 5.000000e-01 : f32
      %16 = vector.broadcast %cst_14 : f32 to vector<32x512xf32>
      %17 = arith.mulf %16, %15 : vector<32x512xf32>
      %cst_15 = arith.constant 4.471500e-02 : f32
      %18 = vector.broadcast %cst_15 : f32 to vector<32x512xf32>
      %19 = arith.mulf %18, %15 : vector<32x512xf32>
      %20 = arith.mulf %19, %15 : vector<32x512xf32>
      %21 = arith.mulf %20, %15 : vector<32x512xf32>
      %22 = arith.addf %15, %21 : vector<32x512xf32>
      %cst_16 = arith.constant 0.797884583 : f32
      %23 = vector.broadcast %cst_16 : f32 to vector<32x512xf32>
      %24 = arith.mulf %23, %22 : vector<32x512xf32>
      %25 = math.tanh %24 : vector<32x512xf32>
      %cst_17 = arith.constant 1.000000e+00 : f32
      %26 = vector.broadcast %cst_17 : f32 to vector<32x512xf32>
      %27 = arith.addf %26, %25 : vector<32x512xf32>
      %28 = arith.mulf %17, %27 : vector<32x512xf32>
      %29 = arith.truncf %28 : vector<32x512xf32> to vector<32x512xbf16>
      %c0_18 = arith.constant 0 : index
      %c0_19 = arith.constant 0 : index
      %30 = vector.load %arg6[%c0_18, %c0_19] : memref<32x512xbf16, #tpu.memory_space<vmem>>, vector<32x512xbf16>
      tpu.vector_store %arg6[%c0_18, %c0_19], %29 {strides = array<i32>} : memref<32x512xbf16, #tpu.memory_space<vmem>>, vector<32x512xbf16>,
    } else {
    }
    return
  }
  func.func @transform_0(%arg0: i32, %arg1: i32, %arg2: i32) -> (i32, i32) {
    %c0_i32 = arith.constant 0 : i32
    return %arg0, %arg2 : i32, i32
  }
  func.func @transform_1(%arg0: i32, %arg1: i32, %arg2: i32) -> (i32, i32) {
    %c0_i32 = arith.constant 0 : i32
    return %arg2, %arg1 : i32, i32
  }
  func.func @transform_2(%arg0: i32, %arg1: i32, %arg2: i32) -> (i32, i32) {
    %c0_i32 = arith.constant 0 : i32
    %c0_i32_0 = arith.constant 0 : i32
    return %c0_i32, %arg1 : i32, i32
  }
  func.func @transform_3(%arg0: i32, %arg1: i32, %arg2: i32) -> (i32, i32) {
    %c0_i32 = arith.constant 0 : i32
    return %arg0, %arg1 : i32, i32
  }
}

module attributes {stable_mosaic.version = 11 : i64} {
  func.func @_matmul_add_ln_kernel(%arg0: i32, %arg1: i32, %arg2: i32, %arg3: memref<32x512xbf16, #tpu.memory_space<vmem>>, %arg4: memref<512x128xbf16, #tpu.memory_space<vmem>>, %arg5: memref<1x128xf32, #tpu.memory_space<vmem>>, %arg6: memref<32x128xf32, #tpu.memory_space<vmem>>, %arg7: memref<1x128xf32, #tpu.memory_space<vmem>>, %arg8: memref<1x128xf32, #tpu.memory_space<vmem>>, %arg9: memref<32x128xf32, #tpu.memory_space<vmem>>, %arg10: memref<32x128xf32, #tpu.memory_space<vmem>>) attributes {dimension_semantics = [#tpu.dimension_semantics<parallel>, #tpu.dimension_semantics<parallel>, #tpu.dimension_semantics<arbitrary>], iteration_bounds = array<i64: 1, 1, 1>, scalar_prefetch = 0 : i64, scratch_operands = 1 : i64, tpu.core_type = #tpu.core_type<tc>, window_params = [{transform_indices = @transform_0, window_bounds = array<i64: 32, 512>}, {transform_indices = @transform_1, window_bounds = array<i64: 512, 128>}, {transform_indices = @transform_2, window_bounds = array<i64: 1, 128>}, {transform_indices = @transform_3, window_bounds = array<i64: 32, 128>}, {transform_indices = @transform_4, window_bounds = array<i64: 1, 128>}, {transform_indices = @transform_5, window_bounds = array<i64: 1, 128>}, {transform_indices = @transform_6, window_bounds = array<i64: 32, 128>}]} {
    %c0_i32 = arith.constant 0 : i32
    %0 = arith.cmpi eq, %arg2, %c0_i32 : i32
    %1 = arith.extui %0 : i1 to i32
    %c0_i32_0 = arith.constant 0 : i32
    %2 = arith.cmpi ne, %1, %c0_i32_0 : i32
    scf.if %2 {
      %cst_10 = arith.constant 0.000000e+00 : f32
      %12 = vector.broadcast %cst_10 : f32 to vector<32x128xf32>
      %c0_11 = arith.constant 0 : index
      %c0_12 = arith.constant 0 : index
      %13 = vector.load %arg10[%c0_11, %c0_12] : memref<32x128xf32, #tpu.memory_space<vmem>>, vector<32x128xf32>
      tpu.vector_store %arg10[%c0_11, %c0_12], %12 {strides = array<i32>} : memref<32x128xf32, #tpu.memory_space<vmem>>, vector<32x128xf32>,
    } else {
    }
    %c0 = arith.constant 0 : index
    %c0_1 = arith.constant 0 : index
    %3 = vector.load %arg10[%c0, %c0_1] : memref<32x128xf32, #tpu.memory_space<vmem>>, vector<32x128xf32>
    %c0_2 = arith.constant 0 : index
    %c0_3 = arith.constant 0 : index
    %4 = vector.load %arg3[%c0_2, %c0_3] : memref<32x512xbf16, #tpu.memory_space<vmem>>, vector<32x512xbf16>
    %c0_4 = arith.constant 0 : index
    %c0_5 = arith.constant 0 : index
    %5 = vector.load %arg4[%c0_4, %c0_5] : memref<512x128xbf16, #tpu.memory_space<vmem>>, vector<512x128xbf16>
    %cst = arith.constant dense<0.000000e+00> : vector<32x128xf32>
    %6 = tpu.matmul %4, %5, %cst {dimension_numbers = #tpu.dot_dimension_numbers<[1], [0], [0], [1], [0, 0, 1, 1], [], []>} : vector<32x512xbf16>, vector<512x128xbf16>, vector<32x128xf32> -> vector<32x128xf32>
    %7 = arith.addf %3, %6 : vector<32x128xf32>
    %c0_6 = arith.constant 0 : index
    %c0_7 = arith.constant 0 : index
    %8 = vector.load %arg10[%c0_6, %c0_7] : memref<32x128xf32, #tpu.memory_space<vmem>>, vector<32x128xf32>
    tpu.vector_store %arg10[%c0_6, %c0_7], %7 {strides = array<i32>} : memref<32x128xf32, #tpu.memory_space<vmem>>, vector<32x128xf32>,
    %c0_i32_8 = arith.constant 0 : i32
    %9 = arith.cmpi eq, %arg2, %c0_i32_8 : i32
    %10 = arith.extui %9 : i1 to i32
    %c0_i32_9 = arith.constant 0 : i32
    %11 = arith.cmpi ne, %10, %c0_i32_9 : i32
    scf.if %11 {
      %c0_10 = arith.constant 0 : index
      %c0_11 = arith.constant 0 : index
      %12 = vector.load %arg6[%c0_10, %c0_11] : memref<32x128xf32, #tpu.memory_space<vmem>>, vector<32x128xf32>
      %c0_12 = arith.constant 0 : index
      %c0_13 = arith.constant 0 : index
      %13 = vector.load %arg10[%c0_12, %c0_13] : memref<32x128xf32, #tpu.memory_space<vmem>>, vector<32x128xf32>
      %14 = arith.addf %12, %13 : vector<32x128xf32>
      %c0_14 = arith.constant 0 : index
      %c0_15 = arith.constant 0 : index
      %15 = vector.load %arg5[%c0_14, %c0_15] : memref<1x128xf32, #tpu.memory_space<vmem>>, vector<1x128xf32>
      %16 = vector.broadcast %15 : vector<1x128xf32> to vector<32x128xf32>
      %17 = arith.addf %14, %16 : vector<32x128xf32>
      %cst_16 = arith.constant dense<0.000000e+00> : vector<32xf32>
      %18 = vector.multi_reduction <add>, %17, %cst_16 [1] : vector<32x128xf32> to vector<32xf32>
      %19 = vector.shape_cast %18 : vector<32xf32> to vector<32x1xf32>
      %cst_17 = arith.constant 1.280000e+02 : f32
      %20 = vector.broadcast %cst_17 : f32 to vector<32x1xf32>
      %21 = arith.divf %19, %20 : vector<32x1xf32>
      %22 = vector.broadcast %21 : vector<32x1xf32> to vector<32x128xf32>
      %23 = arith.subf %17, %22 : vector<32x128xf32>
      %24 = arith.mulf %23, %23 : vector<32x128xf32>
      %cst_18 = arith.constant dense<0.000000e+00> : vector<32xf32>
      %25 = vector.multi_reduction <add>, %24, %cst_18 [1] : vector<32x128xf32> to vector<32xf32>
      %26 = vector.shape_cast %25 : vector<32xf32> to vector<32x1xf32>
      %cst_19 = arith.constant 1.270000e+02 : f32
      %27 = vector.broadcast %cst_19 : f32 to vector<32x1xf32>
      %28 = arith.divf %26, %27 : vector<32x1xf32>
      %29 = math.sqrt %28 : vector<32x1xf32>
      %cst_20 = arith.constant 9.99999997E-7 : f32
      %30 = vector.broadcast %cst_20 : f32 to vector<32x1xf32>
      %31 = arith.addf %29, %30 : vector<32x1xf32>
      %32 = tpu.reciprocal %31 : vector<32x1xf32> -> vector<32x1xf32>
      %c0_21 = arith.constant 0 : index
      %c0_22 = arith.constant 0 : index
      %33 = vector.load %arg7[%c0_21, %c0_22] : memref<1x128xf32, #tpu.memory_space<vmem>>, vector<1x128xf32>
      %34 = vector.broadcast %33 : vector<1x128xf32> to vector<32x128xf32>
      %35 = arith.mulf %34, %23 : vector<32x128xf32>
      %36 = vector.broadcast %32 : vector<32x1xf32> to vector<32x128xf32>
      %37 = arith.mulf %35, %36 : vector<32x128xf32>
      %c0_23 = arith.constant 0 : index
      %c0_24 = arith.constant 0 : index
      %38 = vector.load %arg8[%c0_23, %c0_24] : memref<1x128xf32, #tpu.memory_space<vmem>>, vector<1x128xf32>
      %39 = vector.broadcast %38 : vector<1x128xf32> to vector<32x128xf32>
      %40 = arith.addf %37, %39 : vector<32x128xf32>
      %c0_25 = arith.constant 0 : index
      %c0_26 = arith.constant 0 : index
      %41 = vector.load %arg9[%c0_25, %c0_26] : memref<32x128xf32, #tpu.memory_space<vmem>>, vector<32x128xf32>
      tpu.vector_store %arg9[%c0_25, %c0_26], %40 {strides = array<i32>} : memref<32x128xf32, #tpu.memory_space<vmem>>, vector<32x128xf32>,
    } else {
    }
    return
  }
  func.func @transform_0(%arg0: i32, %arg1: i32, %arg2: i32) -> (i32, i32) {
    %c0_i32 = arith.constant 0 : i32
    return %arg0, %arg2 : i32, i32
  }
  func.func @transform_1(%arg0: i32, %arg1: i32, %arg2: i32) -> (i32, i32) {
    %c0_i32 = arith.constant 0 : i32
    return %arg2, %arg1 : i32, i32
  }
  func.func @transform_2(%arg0: i32, %arg1: i32, %arg2: i32) -> (i32, i32) {
    %c0_i32 = arith.constant 0 : i32
    %c0_i32_0 = arith.constant 0 : i32
    return %c0_i32, %arg1 : i32, i32
  }
  func.func @transform_3(%arg0: i32, %arg1: i32, %arg2: i32) -> (i32, i32) {
    %c0_i32 = arith.constant 0 : i32
    return %arg0, %arg1 : i32, i32
  }
  func.func @transform_4(%arg0: i32, %arg1: i32, %arg2: i32) -> (i32, i32) {
    %c0_i32 = arith.constant 0 : i32
    %c0_i32_0 = arith.constant 0 : i32
    return %c0_i32, %arg1 : i32, i32
  }
  func.func @transform_5(%arg0: i32, %arg1: i32, %arg2: i32) -> (i32, i32) {
    %c0_i32 = arith.constant 0 : i32
    %c0_i32_0 = arith.constant 0 : i32
    return %c0_i32, %arg1 : i32, i32
  }
  func.func @transform_6(%arg0: i32, %arg1: i32, %arg2: i32) -> (i32, i32) {
    %c0_i32 = arith.constant 0 : i32
    return %arg0, %arg1 : i32, i32
  }
}

</mosaic_0001>

<bundles_post_ra>
// kernel: transformer_block.5
= control target key start
LH: loop header
LB: loop body
LE: loop exit
PB: predicated region body
PF: predicated region fallthrough
CT: control target
= control target key end

     0   :  { %8 = vsyncpa [#allocation4], 0  ;;  %s538_s15 = smov [#allocation3]   ;;  %s539_s17 = smov 192   ;;  %s597_s0 = inlined_call_operand.vmem [shape: bf16[32,128], index: 0, kind: input, shape index: {}]   ;;  %s598_s1 = inlined_call_operand.hbm [shape: bf16[128,384], index: 1, kind: input, shape index: {}]   ;;  %s599_s2 = inlined_call_operand.vmem [shape: f32[1,384], index: 2, kind: input, shape index: {}]   ;;  %s600_s3 = inlined_call_operand.vmem [shape: bf16[32,384], index: 3, kind: output, shape index: {}]  }
   0x1   :  { %s15_s14 = sshll.u32 %s598_s1, 4  ;;  %s17_s16 = sshll.u32 %s538_s15, 4  ;;  %s16_s14 = int_to_ptr.hbm [resolvable:$true] %s15_s14  ;;  %s18_s16 = int_to_ptr.vmem [resolvable:$true] %s17_s16 }
   0x2   :  { %s540_s18 = smov 12  }
   0x3   :  { %23 = dma.hbm_to_vmem [thread:$0]  %s16_s14, 3072, %s18_s16, [#allocation4], %s539_s17, %s539_s17, %s540_s18  }
   0x4   :  { %536 = dma.done.wait [#allocation4], 3072  }
   0x5   :  { %537 = vsyncadd [#allocation4], 4294964224  ;;  %v465_v0 = vld [vmem:[#allocation3 + $0xa8] sm:$0xf]  ;;  %v499_v1 = vld [vmem:[#allocation3 + $0xb0] sm:$0xf0] }
   0x6   :  { %v498_v2 = vld [vmem:[#allocation3 + $0xac] sm:$0xf]  ;;  %v466_v3 = vor.u32 %v499_v1, %v465_v0  ;;  %v467_v4 = vld [vmem:[#allocation3 + $0xb4] sm:$0xf0]  ;;  %v473_v5 = vld [vmem:[#allocation3 + $0xb0] sm:$0xf] }
   0x7   :  { %v500_v6 = vld [vmem:[#allocation3 + $0xb8] sm:$0xf0]  ;;  %v470_v7 = vor.u32 %v498_v2, %v467_v4  ;;  %v453_v9 = vld [vmem:[#allocation3 + $0x90] sm:$0xf]  ;;  %v495_v11 = vld [vmem:[#allocation3 + $0x94] sm:$0xf] }
   0x8   :  { %v474_v8 = vor.u32 %v500_v6, %v473_v5  ;;  %v496_v10 = vld [vmem:[#allocation3 + $0x98] sm:$0xf0]  ;;  %234 = vmatpush.bf16.msra.mxu0 %v466_v3  ;;  %v455_v13 = vld [vmem:[#allocation3 + $0x9c] sm:$0xf0]  ;;  %v461_v14 = vld [vmem:[#allocation3 + $0x98] sm:$0xf]  ;;  %501 = vmatpush.bf16.msra.mxu3 %v466_v3 }
   0x9   :  { %v454_v12 = vor.u32 %v496_v10, %v453_v9  ;;  %v497_v15 = vld [vmem:[#allocation3 + $0xa0] sm:$0xf0]  ;;  %253 = vmatpush.bf16.msra.mxu1 %v470_v7  ;;  %v458_v16 = vor.u32 %v495_v11, %v455_v13  ;;  %v441_v18 = vld [vmem:[#allocation3 + $0x78] sm:$0xf]  ;;  %v492_v20 = vld [vmem:[#allocation3 + $0x7c] sm:$0xf] }
   0xa   :  { %272 = vmatpush.bf16.msra.mxu2 %v474_v8  ;;  %v462_v17 = vor.u32 %v497_v15, %v461_v14  ;;  %v493_v19 = vld [vmem:[#allocation3 + $0x80] sm:$0xf0]  ;;  %v443_v21 = vld [vmem:[#allocation3 + $0x84] sm:$0xf0]  ;;  %v449_v22 = vld [vmem:[#allocation3 + $0x80] sm:$0xf] }
   0xb   :  { %v494_v23 = vld [vmem:[#allocation3 + $0x88] sm:$0xf0]  ;;  %v442_v24 = vor.u32 %v493_v19, %v441_v18  ;;  %v446_v25 = vor.u32 %v492_v20, %v443_v21  ;;  %v429_v27 = vld [vmem:[#allocation3 + $0x60] sm:$0xf]  ;;  %v489_v29 = vld [vmem:[#allocation3 + $0x64] sm:$0xf] }
   0xc   :  { %235 = vmatpush.bf16.msra.mxu0 %v454_v12  ;;  %502 = vmatpush.bf16.msra.mxu3 %v454_v12  ;;  %v450_v26 = vor.u32 %v494_v23, %v449_v22  ;;  %v490_v28 = vld [vmem:[#allocation3 + $0x68] sm:$0xf0]  ;;  %v431_v30 = vld [vmem:[#allocation3 + $0x6c] sm:$0xf0]  ;;  %v437_v31 = vld [vmem:[#allocation3 + $0x68] sm:$0xf] }
   0xd   :  { %254 = vmatpush.bf16.msra.mxu1 %v458_v16  ;;  %v491_v32 = vld [vmem:[#allocation3 + $0x70] sm:$0xf0]  ;;  %v430_v33 = vor.u32 %v490_v28, %v429_v27  ;;  %v434_v34 = vor.u32 %v489_v29, %v431_v30  ;;  %v417_v36 = vld [vmem:[#allocation3 + $0x48] sm:$0xf]  ;;  %v486_v38 = vld [vmem:[#allocation3 + $0x4c] sm:$0xf] }
   0xe   :  { %273 = vmatpush.bf16.msra.mxu2 %v462_v17  ;;  %v438_v35 = vor.u32 %v491_v32, %v437_v31  ;;  %v487_v37 = vld [vmem:[#allocation3 + $0x50] sm:$0xf0]  ;;  %v419_v39 = vld [vmem:[#allocation3 + $0x54] sm:$0xf0]  ;;  %v425_v40 = vld [vmem:[#allocation3 + $0x50] sm:$0xf] }
   0xf   :  { %v488_v41 = vld [vmem:[#allocation3 + $0x58] sm:$0xf0]  ;;  %v418_v42 = vor.u32 %v487_v37, %v417_v36  ;;  %v422_v43 = vor.u32 %v486_v38, %v419_v39  ;;  %v405_v45 = vld [vmem:[#allocation3 + $0x30] sm:$0xf]  ;;  %v483_v47 = vld [vmem:[#allocation3 + $0x34] sm:$0xf] }
  0x10   :  { %236 = vmatpush.bf16.msra.mxu0 %v442_v24  ;;  %503 = vmatpush.bf16.msra.mxu3 %v442_v24  ;;  %v426_v44 = vor.u32 %v488_v41, %v425_v40  ;;  %v484_v46 = vld [vmem:[#allocation3 + $0x38] sm:$0xf0]  ;;  %v407_v48 = vld [vmem:[#allocation3 + $0x3c] sm:$0xf0]  ;;  %v413_v49 = vld [vmem:[#allocation3 + $0x38] sm:$0xf] }
  0x11   :  { %255 = vmatpush.bf16.msra.mxu1 %v446_v25  ;;  %v485_v50 = vld [vmem:[#allocation3 + $0x40] sm:$0xf0]  ;;  %v406_v51 = vor.u32 %v484_v46, %v405_v45  ;;  %v410_v52 = vor.u32 %v483_v47, %v407_v48  ;;  %v393_v54 = vld [vmem:[#allocation3 + $0x18] sm:$0xf]  ;;  %v480_v56 = vld [vmem:[#allocation3 + $0x1c] sm:$0xf] }
  0x12   :  { %274 = vmatpush.bf16.msra.mxu2 %v450_v26  ;;  %v414_v53 = vor.u32 %v485_v50, %v413_v49  ;;  %v481_v55 = vld [vmem:[#allocation3 + $0x20] sm:$0xf0]  ;;  %v395_v57 = vld [vmem:[#allocation3 + $0x24] sm:$0xf0]  ;;  %v401_v58 = vld [vmem:[#allocation3 + $0x20] sm:$0xf] }
  0x13   :  { %v482_v59 = vld [vmem:[#allocation3 + $0x28] sm:$0xf0]  ;;  %v394_v60 = vor.u32 %v481_v55, %v393_v54  ;;  %v398_v61 = vor.u32 %v480_v56, %v395_v57  ;;  %v381_v63 = vld [vmem:[#allocation3] sm:$0xf]  ;;  %v477_v1 = vld [vmem:[#allocation3 + $0x4] sm:$0xf] }
  0x14   :  { %237 = vmatpush.bf16.msra.mxu0 %v430_v33  ;;  %504 = vmatpush.bf16.msra.mxu3 %v430_v33  ;;  %v402_v62 = vor.u32 %v482_v59, %v401_v58  ;;  %v478_v0 = vld [vmem:[#allocation3 + $0x8] sm:$0xf0]  ;;  %v383_v2 = vld [vmem:[#allocation3 + $0xc] sm:$0xf0]  ;;  %v389_v3 = vld [vmem:[#allocation3 + $0x8] sm:$0xf] }
  0x15   :  { %256 = vmatpush.bf16.msra.mxu1 %v434_v34  ;;  %v479_v4 = vld [vmem:[#allocation3 + $0x10] sm:$0xf0]  ;;  %v382_v5 = vor.u32 %v478_v0, %v381_v63  ;;  %v386_v6 = vor.u32 %v477_v1, %v383_v2  ;;  %v475_v8 = vld [vmem:[%s597_s0] sm:$0xff]  ;;  %v476_v9 = vld [vmem:[%s597_s0 + $0x8] sm:$0xff] }
  0x16   :  { %275 = vmatpush.bf16.msra.mxu2 %v438_v35  ;;  %v390_v7 = vor.u32 %v479_v4, %v389_v3  ;;  %v330_v10 = vld [vmem:[%s599_s2] sm:$0x7] }
  0x17   :  { %v332_v11 = vperm.slane %v330_v10, 0  ;;  %v333_v12 = vperm.slane %v330_v10, 1  ;;  %v334_v18 = vperm.slane %v330_v10, 2 }
  0x18   :  { %238 = vmatpush.bf16.msra.mxu0 %v418_v42  ;;  %505 = vmatpush.bf16.msra.mxu3 %v418_v42 }
  0x19   :  { %257 = vmatpush.bf16.msra.mxu1 %v422_v43 }
  0x1a   :  { %276 = vmatpush.bf16.msra.mxu2 %v426_v44 }
  0x1c   :  { %239 = vmatpush.bf16.msra.mxu0 %v406_v51  ;;  %506 = vmatpush.bf16.msra.mxu3 %v406_v51 }
  0x1d   :  { %258 = vmatpush.bf16.msra.mxu1 %v410_v52 }
  0x1e   :  { %277 = vmatpush.bf16.msra.mxu2 %v414_v53 }
  0x20   :  { %240 = vmatpush.bf16.msra.mxu0 %v394_v60  ;;  %507 = vmatpush.bf16.msra.mxu3 %v394_v60 }
  0x21   :  { %259 = vmatpush.bf16.msra.mxu1 %v398_v61 }
  0x22   :  { %278 = vmatpush.bf16.msra.mxu2 %v402_v62 }
  0x24   :  { %241 = vmatpush.bf16.msra.mxu0 %v382_v5  ;;  %508 = vmatpush.bf16.msra.mxu3 %v382_v5 }
  0x25   :  { %260 = vmatpush.bf16.msra.mxu1 %v386_v6 }
  0x26   :  { %279 = vmatpush.bf16.msra.mxu2 %v390_v7 }
  0x27   :  { %242 = vmatmul.bf16.vlgmr.msra.gmra.mxu0 %v475_v8  ;;  %247 = vmatmul.bf16.vlgmr.msra.gmra.mxu3 %v476_v9 }
  0x28   :  { %261 = vmatmul.bf16.vlgmr.msra.gmra.mxu1 %v475_v8 }
  0x29   :  { %280 = vmatmul.bf16.vlgmr.msra.gmra.mxu2 %v475_v8 }
  0x38   :  { %266 = vmatmul.bf16.gmra.mxu1 %v476_v9 }
  0x39   :  { %285 = vmatmul.bf16.gmra.mxu2 %v476_v9 }
  0xa4   :  { %v243_v13 = vpop.f32.mrf.mxu0 }
  0xa5   :  { %v338_v14 = vadd.f32 %v332_v11, %v243_v13  ;;  %v262_v15 = vpop.f32.mrf.mxu1 }
  0xa6   :  { %v339_v16 = vadd.f32 %v333_v12, %v262_v15 }
  0xa8   :  { %v350_v17 = vpack.c.bf16 %v339_v16, %v338_v14 }
  0xaa   :  { %358 = vst [vmem:[%s600_s3] sm:$0xff] %v350_v17  ;;  %v248_v27 = vpop.f32.mrf.mxu3 }
  0xab   :  { %v344_v29 = vadd.f32 %v332_v11, %v248_v27 }
  0xac   :  { %v281_v19 = vpop.f32.mrf.mxu2  ;;  %v245_v21 = vpop.f32.mrf.mxu0 }
  0xad   :  { %v340_v20 = vadd.f32 %v334_v18, %v281_v19  ;;  %v341_v22 = vadd.f32 %v332_v11, %v245_v21  ;;  %v264_v23 = vpop.f32.mrf.mxu1 }
  0xae   :  { %v342_v25 = vadd.f32 %v333_v12, %v264_v23 }
  0xaf   :  { %v351_v24 = vpack.c.bf16 %v340_v20, %v340_v20 }
  0xb0   :  { %v352_v26 = vpack.c.bf16 %v342_v25, %v341_v22 }
  0xb1   :  { %359 = vst [vmem:[%s600_s3 + $0x8] sm:$0xf] %v351_v24 }
  0xb2   :  { %360 = vst [vmem:[%s600_s3 + $0xc] sm:$0xff] %v352_v26  ;;  %v250_v35 = vpop.f32.mrf.mxu3 }
  0xb3   :  { %v347_v39 = vadd.f32 %v332_v11, %v250_v35 }
  0xb4   :  { %v283_v28 = vpop.f32.mrf.mxu2 }
  0xb5   :  { %v343_v30 = vadd.f32 %v334_v18, %v283_v28  ;;  %v267_v31 = vpop.f32.mrf.mxu1 }
  0xb6   :  { %v345_v33 = vadd.f32 %v333_v12, %v267_v31 }
  0xb7   :  { %v353_v32 = vpack.c.bf16 %v343_v30, %v343_v30 }
  0xb8   :  { %v354_v34 = vpack.c.bf16 %v345_v33, %v344_v29 }
  0xb9   :  { %361 = vst [vmem:[%s600_s3 + $0x14] sm:$0xf] %v353_v32 }
  0xba   :  { %362 = vst [vmem:[%s600_s3 + $0x18] sm:$0xff] %v354_v34 }
  0xbc   :  { %v286_v36 = vpop.f32.mrf.mxu2 }
  0xbd   :  { %v346_v37 = vadd.f32 %v334_v18, %v286_v36  ;;  %v269_v38 = vpop.f32.mrf.mxu1 }
  0xbe   :  { %v348_v41 = vadd.f32 %v333_v12, %v269_v38 }
  0xbf   :  { %v355_v40 = vpack.c.bf16 %v346_v37, %v346_v37 }
  0xc0   :  { %v356_v42 = vpack.c.bf16 %v348_v41, %v347_v39 }
  0xc1   :  { %363 = vst [vmem:[%s600_s3 + $0x20] sm:$0xf] %v355_v40 }
  0xc2   :  { %364 = vst [vmem:[%s600_s3 + $0x24] sm:$0xff] %v356_v42 }
  0xc4   :  { %v288_v43 = vpop.f32.mrf.mxu2 }
  0xc5   :  { %v349_v44 = vadd.f32 %v334_v18, %v288_v43 }
  0xc7   :  { %v357_v45 = vpack.c.bf16 %v349_v44, %v349_v44 }
  0xc9   :  { %365 = vst [vmem:[%s600_s3 + $0x2c] sm:$0xf] %v357_v45 }
  0xca   :  { %370 = vsyncpa [#allocation4], 1 }

// kernel: transformer_block.7
= control target key start
LH: loop header
LB: loop body
LE: loop exit
PB: predicated region body
PF: predicated region fallthrough
CT: control target
= control target key end

     0   :  { %v430_v27 = vmov 128.0   ;;  %v431_v50 = vmov 127.0   ;;  %s557_s1 = inlined_call_operand.vmem [shape: bf16[128,128], index: 1, kind: input, shape index: {}]   ;;  %s558_s0 = inlined_call_operand.vmem [shape: bf16[32,128], index: 0, kind: input, shape index: {}]   ;;  %s559_s2 = inlined_call_operand.vmem [shape: f32[1,128], index: 2, kind: input, shape index: {}]   ;;  %s560_s4 = inlined_call_operand.vmem [shape: f32[1,128], index: 4, kind: input, shape index: {}]   ;;  %s561_s3 = inlined_call_operand.vmem [shape: f32[32,128], index: 3, kind: input, shape index: {}]   ;;  %s562_s5 = inlined_call_operand.vmem [shape: f32[1,128], index: 5, kind: input, shape index: {}]   ;;  %s563_s6 = inlined_call_operand.vmem [shape: f32[32,128], index: 6, kind: output, shape index: {}]  }
   0x1   :  { %v396_v0 = vld [vmem:[%s557_s1 + $0x38] sm:$0xff]  ;;  %v395_v1 = vld [vmem:[%s557_s1 + $0x30] sm:$0xff]  ;;  %v394_v2 = vld [vmem:[%s557_s1 + $0x28] sm:$0xff]  ;;  %410 = vrcp.f32 %v430_v27 }
   0x2   :  { %115 = vmatpush.bf16.msra.mxu0 %v396_v0  ;;  %397 = vmatpush.bf16.msra.mxu1 %v396_v0  ;;  %v393_v3 = vld [vmem:[%s557_s1 + $0x20] sm:$0xff]  ;;  %v392_v4 = vld [vmem:[%s557_s1 + $0x18] sm:$0xff]  ;;  %v391_v5 = vld [vmem:[%s557_s1 + $0x10] sm:$0xff]  ;;  %412 = vrcp.f32 %v431_v50 }
   0x3   :  { %v390_v6 = vld [vmem:[%s557_s1 + $0x8] sm:$0xff]  ;;  %v389_v7 = vld [vmem:[%s557_s1] sm:$0xff]  ;;  %v147_v11 = vld [vmem:[%s561_s3 + $0x10] sm:$0xff] }
   0x4   :  { %v387_v8 = vld [vmem:[%s558_s0] sm:$0xff]  ;;  %v388_v9 = vld [vmem:[%s558_s0 + $0x8] sm:$0xff]  ;;  %v148_v20 = vld [vmem:[%s561_s3 + $0x18] sm:$0xff] }
   0x5   :  { %v145_v10 = vld [vmem:[%s561_s3] sm:$0xff]  ;;  %v146_v19 = vld [vmem:[%s561_s3 + $0x8] sm:$0xff] }
   0x6   :  { %116 = vmatpush.bf16.msra.mxu0 %v395_v1  ;;  %398 = vmatpush.bf16.msra.mxu1 %v395_v1  ;;  %v407_v12 = vld [vmem:[%s559_s2] ss:$0 sm:$0xff] }
   0x7   :  { %v411_v28 = vpop.eup %410 }
   0x8   :  { %v174_v29 = vmul.f32 128.0, %v411_v28  ;;  %vm178_vm0 = vweird.f32 %v411_v28  ;;  %v413_v51 = vpop.eup %412 }
   0x9   :  { %v201_v52 = vmul.f32 127.0, %v413_v51  ;;  %vm205_vm1 = vweird.f32 %v413_v51 }
   0xa   :  { %117 = vmatpush.bf16.msra.mxu0 %v394_v2  ;;  %399 = vmatpush.bf16.msra.mxu1 %v394_v2  ;;  %v175_v30 = vsub.f32 1.0, %v174_v29 }
   0xb   :  { %v202_v53 = vsub.f32 1.0, %v201_v52 }
   0xc   :  { %v176_v31 = vmul.f32 %v411_v28, %v175_v30 }
   0xd   :  { %v203_v54 = vmul.f32 %v413_v51, %v202_v53 }
   0xe   :  { %118 = vmatpush.bf16.msra.mxu0 %v393_v3  ;;  %400 = vmatpush.bf16.msra.mxu1 %v393_v3  ;;  %v177_v32 = vadd.f32 %v411_v28, %v176_v31 }
   0xf   :  { %v204_v55 = vadd.f32 %v413_v51, %v203_v54 }
  0x10   :  { %v179_v33 = vsel %vm178_vm0, %v411_v28, %v177_v32 }
  0x11   :  { %v206_v56 = vsel %vm205_vm1, %v413_v51, %v204_v55 }
  0x12   :  { %119 = vmatpush.bf16.msra.mxu0 %v392_v4  ;;  %401 = vmatpush.bf16.msra.mxu1 %v392_v4 }
  0x16   :  { %120 = vmatpush.bf16.msra.mxu0 %v391_v5  ;;  %402 = vmatpush.bf16.msra.mxu1 %v391_v5 }
  0x1a   :  { %121 = vmatpush.bf16.msra.mxu0 %v390_v6  ;;  %403 = vmatpush.bf16.msra.mxu1 %v390_v6 }
  0x1e   :  { %122 = vmatpush.bf16.msra.mxu0 %v389_v7  ;;  %404 = vmatpush.bf16.msra.mxu1 %v389_v7 }
  0x21   :  { %123 = vmatmul.bf16.vlgmr.msra.gmra.mxu0 %v387_v8  ;;  %128 = vmatmul.bf16.vlgmr.msra.gmra.mxu1 %v388_v9 }
  0x9e   :  { %v124_v13 = vpop.f32.mrf.mxu0  ;;  %v129_v14 = vpop.f32.mrf.mxu1 }
  0x9f   :  { %v153_v15 = vadd.f32 %v145_v10, %v124_v13  ;;  %v155_v16 = vadd.f32 %v147_v11, %v129_v14 }
  0xa1   :  { %v163_v17 = vadd.f32 %v407_v12, %v155_v16  ;;  %v161_v18 = vadd.f32 %v407_v12, %v153_v15 }
  0xa3   :  { %169 = vadd.xlane.f32.xlu1 %v163_v17  ;;  %165 = vadd.xlane.f32.xlu0 %v161_v18 }
  0xa6   :  { %v126_v21 = vpop.f32.mrf.mxu0  ;;  %v131_v22 = vpop.f32.mrf.mxu1 }
  0xa7   :  { %v154_v23 = vadd.f32 %v146_v19, %v126_v21  ;;  %v156_v24 = vadd.f32 %v148_v20, %v131_v22 }
  0xa9   :  { %v164_v25 = vadd.f32 %v407_v12, %v156_v24  ;;  %v162_v26 = vadd.f32 %v407_v12, %v154_v23 }
  0xab   :  { %171 = vadd.xlane.f32.xlu1 %v164_v25  ;;  %167 = vadd.xlane.f32.xlu0 %v162_v26 }
 0x116   :  { %v170_v34 = vpop.xlane.xlu1 %169  ;;  %v166_v35 = vpop.xlane.xlu0 %165 }
 0x117   :  { %v182_v36 = vmul.f32 %v179_v33, %v170_v34  ;;  %v180_v37 = vmul.f32 %v179_v33, %v166_v35 }
 0x119   :  { %v512_v38 = vsub.f32 %v163_v17, %v182_v36  ;;  %v514_v39 = vsub.f32 %v161_v18, %v180_v37 }
 0x11b   :  { %v188_v40 = vmul.f32 %v514_v39, %v514_v39  ;;  %v190_v41 = vmul.f32 %v512_v38, %v512_v38 }
 0x11d   :  { %192 = vadd.xlane.f32.xlu2 %v188_v40  ;;  %196 = vadd.xlane.f32.xlu0 %v190_v41 }
 0x11e   :  { %v172_v42 = vpop.xlane.xlu1 %171  ;;  %v168_v43 = vpop.xlane.xlu0 %167 }
 0x11f   :  { %v183_v44 = vmul.f32 %v179_v33, %v172_v42  ;;  %v181_v45 = vmul.f32 %v179_v33, %v168_v43 }
 0x121   :  { %v520_v46 = vsub.f32 %v164_v25, %v183_v44  ;;  %v522_v47 = vsub.f32 %v162_v26, %v181_v45 }
 0x123   :  { %v191_v48 = vmul.f32 %v520_v46, %v520_v46  ;;  %v189_v49 = vmul.f32 %v522_v47, %v522_v47 }
 0x125   :  { %198 = vadd.xlane.f32.xlu1 %v191_v48  ;;  %194 = vadd.xlane.f32.xlu2 %v189_v49 }
 0x190   :  { %v193_v57 = vpop.xlane.xlu2 %192  ;;  %v197_v58 = vpop.xlane.xlu0 %196 }
 0x191   :  { %v207_v59 = vmul.f32 %v206_v56, %v193_v57  ;;  %v209_v60 = vmul.f32 %v206_v56, %v197_v58  ;;  %v408_v57 = vld [vmem:[%s560_s4] ss:$0 sm:$0xff] }
 0x193   :  { %414 = vrsqrt.f32 %v207_v59  ;;  %vm218_vm2 = vcmp.eq.f32.partialorder %v207_v59, inf  ;;  %vm220_vm3 = vcmp.eq.f32.partialorder %v207_v59, 0.0  ;;  %v221_v19 = vand.u32 2147483648, %v207_v59 }
 0x194   :  { %416 = vrsqrt.f32 %v209_v60  ;;  %vm242_vm4 = vcmp.eq.f32.partialorder %v209_v60, inf  ;;  %v245_v23 = vand.u32 2147483648, %v209_v60  ;;  %vm244_vm5 = vcmp.eq.f32.partialorder %v209_v60, 0.0 }
 0x198   :  { %v199_v61 = vpop.xlane.xlu1 %198  ;;  %v195_v62 = vpop.xlane.xlu2 %194 }
 0x199   :  { %v415_v63 = vpop.eup %414  ;;  %v210_v0 = vmul.f32 %v206_v56, %v199_v61  ;;  %v208_v1 = vmul.f32 %v206_v56, %v195_v62 }
 0x19a   :  { %v417_v2 = vpop.eup %416  ;;  %v212_v3 = vmul.f32 %v415_v63, %v207_v59 }
 0x19b   :  { %v236_v4 = vmul.f32 %v417_v2, %v209_v60  ;;  %418 = vrsqrt.f32 %v210_v0  ;;  %vm254_vm6 = vcmp.eq.f32.partialorder %v210_v0, inf  ;;  %v257_v37 = vand.u32 2147483648, %v210_v0 }
 0x19c   :  { %v213_v5 = vmul.f32 %v415_v63, %v212_v3  ;;  %420 = vrsqrt.f32 %v208_v1  ;;  %vm230_vm7 = vcmp.eq.f32.partialorder %v208_v1, inf  ;;  %v233_v40 = vand.u32 2147483648, %v208_v1 }
 0x19d   :  { %v237_v6 = vmul.f32 %v417_v2, %v236_v4  ;;  %vm256_vm8 = vcmp.eq.f32.partialorder %v210_v0, 0.0  ;;  %vm232_vm9 = vcmp.eq.f32.partialorder %v208_v1, 0.0 }
 0x19e   :  { %v214_v7 = vmul.f32 0.5, %v213_v5 }
 0x19f   :  { %v238_v8 = vmul.f32 0.5, %v237_v6  ;;  %v325_v6 = vmul.f32 %v408_v57, %v512_v38 }
 0x1a0   :  { %v215_v9 = vsub.f32 1.5, %v214_v7 }
 0x1a1   :  { %v419_v10 = vpop.eup %418  ;;  %v239_v11 = vsub.f32 1.5, %v238_v8 }
 0x1a2   :  { %v421_v12 = vpop.eup %420  ;;  %v216_v13 = vmul.f32 %v415_v63, %v215_v9  ;;  %v248_v14 = vmul.f32 %v419_v10, %v210_v0 }
 0x1a3   :  { %v240_v15 = vmul.f32 %v417_v2, %v239_v11  ;;  %v224_v16 = vmul.f32 %v421_v12, %v208_v1  ;;  %v409_v2 = vld [vmem:[%s562_s5] ss:$0 sm:$0xff] }
 0x1a4   :  { %v217_v17 = vmul.f32 %v216_v13, %v207_v59  ;;  %v249_v18 = vmul.f32 %v419_v10, %v248_v14 }
 0x1a5   :  { %v241_v20 = vmul.f32 %v240_v15, %v209_v60  ;;  %v225_v21 = vmul.f32 %v421_v12, %v224_v16 }
 0x1a6   :  { %v219_v22 = vsel %vm218_vm2, %v207_v59, %v217_v17  ;;  %v250_v24 = vmul.f32 0.5, %v249_v18 }
 0x1a7   :  { %v222_v25 = vsel %vm220_vm3, %v221_v19, %v219_v22  ;;  %v243_v26 = vsel %vm242_vm4, %v209_v60, %v241_v20  ;;  %v226_v27 = vmul.f32 0.5, %v225_v21 }
 0x1a8   :  { %v259_v28 = vadd.f32 1e-06, %v222_v25  ;;  %v246_v29 = vsel %vm244_vm5, %v245_v23, %v243_v26  ;;  %v251_v30 = vsub.f32 1.5, %v250_v24  ;;  %v326_v26 = vmul.f32 %v408_v57, %v520_v46 }
 0x1a9   :  { %v261_v31 = vadd.f32 1e-06, %v246_v29  ;;  %v227_v32 = vsub.f32 1.5, %v226_v27  ;;  %v324_v29 = vmul.f32 %v408_v57, %v522_v47 }
 0x1aa   :  { %422 = vrcp.f32 %v259_v28  ;;  %v252_v33 = vmul.f32 %v419_v10, %v251_v30  ;;  %v272_v54 = vand.u32 2147483647, %v259_v28  ;;  %v274_v55 = vand.u32 2147483648, %v259_v28 }
 0x1ab   :  { %424 = vrcp.f32 %v261_v31  ;;  %v228_v34 = vmul.f32 %v421_v12, %v227_v32  ;;  %v302_v59 = vand.u32 2147483648, %v261_v31  ;;  %v300_v61 = vand.u32 2147483647, %v261_v31 }
 0x1ac   :  { %v253_v35 = vmul.f32 %v252_v33, %v210_v0  ;;  %vm268_vm12 = vweird.f32 %v259_v28  ;;  %v275_v63 = vor.u32 1.1754944e-38, %v274_v55  ;;  %vm296_vm14 = vweird.f32 %v261_v31 }
 0x1ad   :  { %v229_v36 = vmul.f32 %v228_v34, %v208_v1  ;;  %vm273_vm15 = vcmp.eq.f32.partialorder %v272_v54, 8.507059e+37  ;;  %v303_v4 = vor.u32 1.1754944e-38, %v302_v59  ;;  %vm301_vm1 = vcmp.eq.f32.partialorder %v300_v61, 8.507059e+37 }
 0x1ae   :  { %v255_v42 = vsel %vm254_vm6, %v210_v0, %v253_v35 }
 0x1af   :  { %v231_v43 = vsel %vm230_vm7, %v208_v1, %v229_v36  ;;  %v258_v48 = vsel %vm256_vm8, %v257_v37, %v255_v42  ;;  %v323_v1 = vmul.f32 %v408_v57, %v514_v39 }
 0x1b0   :  { %v423_v41 = vpop.eup %422  ;;  %v234_v49 = vsel %vm232_vm9, %v233_v40, %v231_v43  ;;  %v262_v51 = vadd.f32 1e-06, %v258_v48 }
 0x1b1   :  { %v425_v44 = vpop.eup %424  ;;  %v264_v45 = vmul.f32 %v423_v41, %v259_v28  ;;  %v528_v52 = vadd.f32 1e-06, %v234_v49  ;;  %vm269_vm10 = vweird.f32 %v423_v41 }
 0x1b2   :  { %v292_v50 = vmul.f32 %v425_v44, %v261_v31  ;;  %426 = vrcp.f32 %v262_v51  ;;  %vm297_vm11 = vweird.f32 %v425_v44  ;;  %vm270_vm13 = vmor %vm268_vm12, %vm269_vm10  ;;  %v316_v17 = vand.u32 2147483648, %v262_v51 }
 0x1b3   :  { %v265_v53 = vsub.f32 1.0, %v264_v45  ;;  %428 = vrcp.f32 %v528_v52  ;;  %vm298_vm0 = vmor %vm296_vm14, %vm297_vm11  ;;  %v314_v19 = vand.u32 2147483647, %v262_v51  ;;  %v288_v20 = vand.u32 2147483648, %v528_v52 }
 0x1b4   :  { %v293_v56 = vsub.f32 1.0, %v292_v50  ;;  %v286_v22 = vand.u32 2147483647, %v528_v52  ;;  %vm310_vm4 = vweird.f32 %v262_v51  ;;  %v317_v24 = vor.u32 1.1754944e-38, %v316_v17 }
 0x1b5   :  { %v266_v58 = vmul.f32 %v423_v41, %v265_v53  ;;  %vm282_vm6 = vweird.f32 %v528_v52  ;;  %vm315_vm7 = vcmp.eq.f32.partialorder %v314_v19, 8.507059e+37  ;;  %v289_v28 = vor.u32 1.1754944e-38, %v288_v20 }
 0x1b6   :  { %v294_v60 = vmul.f32 %v425_v44, %v293_v56  ;;  %vm287_vm9 = vcmp.eq.f32.partialorder %v286_v22, 8.507059e+37 }
 0x1b7   :  { %v267_v62 = vadd.f32 %v423_v41, %v266_v58 }
 0x1b8   :  { %v295_v0 = vadd.f32 %v425_v44, %v294_v60  ;;  %v427_v5 = vpop.eup %426 }
 0x1b9   :  { %v271_v3 = vsel %vm270_vm13, %v423_v41, %v267_v62  ;;  %v429_v9 = vpop.eup %428  ;;  %v306_v12 = vmul.f32 %v427_v5, %v262_v51  ;;  %vm311_vm2 = vweird.f32 %v427_v5 }
 0x1ba   :  { %v276_v7 = vsel %vm273_vm15, %v275_v63, %v271_v3  ;;  %v299_v8 = vsel %vm298_vm0, %v425_v44, %v295_v0  ;;  %v278_v39 = vmul.f32 %v429_v9, %v528_v52  ;;  %vm283_vm3 = vweird.f32 %v429_v9  ;;  %vm312_vm5 = vmor %vm310_vm4, %vm311_vm2 }
 0x1bb   :  { %v327_v10 = vmul.f32 %v323_v1, %v276_v7  ;;  %v304_v11 = vsel %vm301_vm1, %v303_v4, %v299_v8  ;;  %v307_v15 = vsub.f32 1.0, %v306_v12  ;;  %vm284_vm8 = vmor %vm282_vm6, %vm283_vm3 }
 0x1bc   :  { %v329_v13 = vmul.f32 %v325_v6, %v304_v11  ;;  %v279_v18 = vsub.f32 1.0, %v278_v39 }
 0x1bd   :  { %v335_v14 = vadd.f32 %v409_v2, %v327_v10  ;;  %v308_v38 = vmul.f32 %v427_v5, %v307_v15 }
 0x1be   :  { %v337_v16 = vadd.f32 %v409_v2, %v329_v13  ;;  %v280_v21 = vmul.f32 %v429_v9, %v279_v18 }
 0x1bf   :  { %339 = vst [vmem:[%s563_s6] sm:$0xff] %v335_v14  ;;  %v309_v23 = vadd.f32 %v427_v5, %v308_v38 }
 0x1c0   :  { %341 = vst [vmem:[%s563_s6 + $0x10] sm:$0xff] %v337_v16  ;;  %v281_v25 = vadd.f32 %v429_v9, %v280_v21 }
 0x1c1   :  { %v313_v27 = vsel %vm312_vm5, %v427_v5, %v309_v23 }
 0x1c2   :  { %v318_v30 = vsel %vm315_vm7, %v317_v24, %v313_v27  ;;  %v285_v31 = vsel %vm284_vm8, %v429_v9, %v281_v25 }
 0x1c3   :  { %v330_v32 = vmul.f32 %v326_v26, %v318_v30  ;;  %v290_v33 = vsel %vm287_vm9, %v289_v28, %v285_v31 }
 0x1c4   :  { %v328_v34 = vmul.f32 %v324_v29, %v290_v33 }
 0x1c5   :  { %v338_v35 = vadd.f32 %v409_v2, %v330_v32 }
 0x1c6   :  { %v336_v36 = vadd.f32 %v409_v2, %v328_v34 }
 0x1c7   :  { %342 = vst [vmem:[%s563_s6 + $0x18] sm:$0xff] %v338_v35 }
 0x1c8   :  { %340 = vst [vmem:[%s563_s6 + $0x8] sm:$0xff] %v336_v36 }

// kernel: transformer_block.8
= control target key start
LH: loop header
LB: loop body
LE: loop exit
PB: predicated region body
PF: predicated region fallthrough
CT: control target
= control target key end

     0   :  { %s1130_s1 = inlined_call_operand.vmem [shape: bf16[128,512], index: 1, kind: input, shape index: {}]   ;;  %s1131_s0 = inlined_call_operand.vmem [shape: bf16[32,128], index: 0, kind: input, shape index: {}]   ;;  %s1132_s2 = inlined_call_operand.vmem [shape: f32[1,512], index: 2, kind: input, shape index: {}]   ;;  %s1133_s3 = inlined_call_operand.vmem [shape: bf16[32,512], index: 3, kind: output, shape index: {}]  }
   0x1   :  { %v697_v0 = vld [vmem:[%s1130_s1 + $0xe0] sm:$0xf]  ;;  %v743_v1 = vld [vmem:[%s1130_s1 + $0xec] sm:$0xf0]  ;;  %v741_v2 = vld [vmem:[%s1130_s1 + $0xe4] sm:$0xf] }
   0x2   :  { %v698_v3 = vor.u32 %v743_v1, %v697_v0  ;;  %v699_v4 = vld [vmem:[%s1130_s1 + $0xf0] sm:$0xf0]  ;;  %v705_v5 = vld [vmem:[%s1130_s1 + $0xe8] sm:$0xf]  ;;  %v744_v6 = vld [vmem:[%s1130_s1 + $0xf4] sm:$0xf0] }
   0x3   :  { %v702_v7 = vor.u32 %v741_v2, %v699_v4  ;;  %v706_v8 = vor.u32 %v744_v6, %v705_v5  ;;  %v742_v9 = vld [vmem:[%s1130_s1 + $0xec] sm:$0xf]  ;;  %v707_v10 = vld [vmem:[%s1130_s1 + $0xf8] sm:$0xf0]  ;;  %v681_v11 = vld [vmem:[%s1130_s1 + $0xc0] sm:$0xf] }
   0x4   :  { %258 = vmatpush.bf16.msra.mxu0 %v698_v3  ;;  %v710_v12 = vor.u32 %v742_v9, %v707_v10  ;;  %v739_v13 = vld [vmem:[%s1130_s1 + $0xcc] sm:$0xf0]  ;;  %v737_v14 = vld [vmem:[%s1130_s1 + $0xc4] sm:$0xf]  ;;  %v683_v15 = vld [vmem:[%s1130_s1 + $0xd0] sm:$0xf0] }
   0x5   :  { %277 = vmatpush.bf16.msra.mxu1 %v702_v7  ;;  %296 = vmatpush.bf16.msra.mxu2 %v706_v8  ;;  %v682_v16 = vor.u32 %v739_v13, %v681_v11  ;;  %v686_v17 = vor.u32 %v737_v14, %v683_v15  ;;  %v689_v18 = vld [vmem:[%s1130_s1 + $0xc8] sm:$0xf]  ;;  %v740_v19 = vld [vmem:[%s1130_s1 + $0xd4] sm:$0xf0]  ;;  %v738_v20 = vld [vmem:[%s1130_s1 + $0xcc] sm:$0xf] }
   0x6   :  { %315 = vmatpush.bf16.msra.mxu3 %v710_v12  ;;  %v690_v21 = vor.u32 %v740_v19, %v689_v18  ;;  %v691_v22 = vld [vmem:[%s1130_s1 + $0xd8] sm:$0xf0]  ;;  %v665_v23 = vld [vmem:[%s1130_s1 + $0xa0] sm:$0xf]  ;;  %v735_v24 = vld [vmem:[%s1130_s1 + $0xac] sm:$0xf0] }
   0x7   :  { %v694_v25 = vor.u32 %v738_v20, %v691_v22  ;;  %v733_v26 = vld [vmem:[%s1130_s1 + $0xa4] sm:$0xf]  ;;  %v667_v27 = vld [vmem:[%s1130_s1 + $0xb0] sm:$0xf0]  ;;  %v673_v28 = vld [vmem:[%s1130_s1 + $0xa8] sm:$0xf]  ;;  %v666_v29 = vor.u32 %v735_v24, %v665_v23 }
   0x8   :  { %259 = vmatpush.bf16.msra.mxu0 %v682_v16  ;;  %v736_v30 = vld [vmem:[%s1130_s1 + $0xb4] sm:$0xf0]  ;;  %v734_v31 = vld [vmem:[%s1130_s1 + $0xac] sm:$0xf]  ;;  %v675_v32 = vld [vmem:[%s1130_s1 + $0xb8] sm:$0xf0]  ;;  %v670_v33 = vor.u32 %v733_v26, %v667_v27 }
   0x9   :  { %278 = vmatpush.bf16.msra.mxu1 %v686_v17  ;;  %297 = vmatpush.bf16.msra.mxu2 %v690_v21  ;;  %v674_v34 = vor.u32 %v736_v30, %v673_v28  ;;  %v649_v35 = vld [vmem:[%s1130_s1 + $0x80] sm:$0xf]  ;;  %v731_v36 = vld [vmem:[%s1130_s1 + $0x8c] sm:$0xf0]  ;;  %v729_v37 = vld [vmem:[%s1130_s1 + $0x84] sm:$0xf]  ;;  %v678_v38 = vor.u32 %v734_v31, %v675_v32 }
   0xa   :  { %316 = vmatpush.bf16.msra.mxu3 %v694_v25  ;;  %v651_v39 = vld [vmem:[%s1130_s1 + $0x90] sm:$0xf0]  ;;  %v657_v40 = vld [vmem:[%s1130_s1 + $0x88] sm:$0xf]  ;;  %v732_v41 = vld [vmem:[%s1130_s1 + $0x94] sm:$0xf0]  ;;  %v650_v44 = vor.u32 %v731_v36, %v649_v35 }
   0xb   :  { %v730_v42 = vld [vmem:[%s1130_s1 + $0x8c] sm:$0xf]  ;;  %v659_v43 = vld [vmem:[%s1130_s1 + $0x98] sm:$0xf0]  ;;  %v654_v45 = vor.u32 %v729_v37, %v651_v39  ;;  %v658_v46 = vor.u32 %v732_v41, %v657_v40  ;;  %v633_v47 = vld [vmem:[%s1130_s1 + $0x60] sm:$0xf] }
   0xc   :  { %260 = vmatpush.bf16.msra.mxu0 %v666_v29  ;;  %v727_v48 = vld [vmem:[%s1130_s1 + $0x6c] sm:$0xf0]  ;;  %v725_v49 = vld [vmem:[%s1130_s1 + $0x64] sm:$0xf]  ;;  %v662_v50 = vor.u32 %v730_v42, %v659_v43  ;;  %v635_v51 = vld [vmem:[%s1130_s1 + $0x70] sm:$0xf0] }
   0xd   :  { %279 = vmatpush.bf16.msra.mxu1 %v670_v33  ;;  %298 = vmatpush.bf16.msra.mxu2 %v674_v34  ;;  %v641_v52 = vld [vmem:[%s1130_s1 + $0x68] sm:$0xf]  ;;  %v728_v53 = vld [vmem:[%s1130_s1 + $0x74] sm:$0xf0]  ;;  %v726_v54 = vld [vmem:[%s1130_s1 + $0x6c] sm:$0xf]  ;;  %v634_v56 = vor.u32 %v727_v48, %v633_v47  ;;  %v638_v57 = vor.u32 %v725_v49, %v635_v51 }
   0xe   :  { %317 = vmatpush.bf16.msra.mxu3 %v678_v38  ;;  %v643_v55 = vld [vmem:[%s1130_s1 + $0x78] sm:$0xf0]  ;;  %v642_v58 = vor.u32 %v728_v53, %v641_v52  ;;  %v617_v59 = vld [vmem:[%s1130_s1 + $0x40] sm:$0xf]  ;;  %v723_v60 = vld [vmem:[%s1130_s1 + $0x4c] sm:$0xf0] }
   0xf   :  { %v721_v61 = vld [vmem:[%s1130_s1 + $0x44] sm:$0xf]  ;;  %v646_v62 = vor.u32 %v726_v54, %v643_v55  ;;  %v619_v63 = vld [vmem:[%s1130_s1 + $0x50] sm:$0xf0]  ;;  %v625_v0 = vld [vmem:[%s1130_s1 + $0x48] sm:$0xf]  ;;  %v618_v4 = vor.u32 %v723_v60, %v617_v59 }
  0x10   :  { %261 = vmatpush.bf16.msra.mxu0 %v650_v44  ;;  %v724_v1 = vld [vmem:[%s1130_s1 + $0x54] sm:$0xf0]  ;;  %v722_v2 = vld [vmem:[%s1130_s1 + $0x4c] sm:$0xf]  ;;  %v627_v3 = vld [vmem:[%s1130_s1 + $0x58] sm:$0xf0]  ;;  %v622_v5 = vor.u32 %v721_v61, %v619_v63 }
  0x11   :  { %280 = vmatpush.bf16.msra.mxu1 %v654_v45  ;;  %299 = vmatpush.bf16.msra.mxu2 %v658_v46  ;;  %v626_v6 = vor.u32 %v724_v1, %v625_v0  ;;  %v601_v7 = vld [vmem:[%s1130_s1 + $0x20] sm:$0xf]  ;;  %v719_v8 = vld [vmem:[%s1130_s1 + $0x2c] sm:$0xf0]  ;;  %v717_v9 = vld [vmem:[%s1130_s1 + $0x24] sm:$0xf]  ;;  %v630_v10 = vor.u32 %v722_v2, %v627_v3 }
  0x12   :  { %318 = vmatpush.bf16.msra.mxu3 %v662_v50  ;;  %v603_v11 = vld [vmem:[%s1130_s1 + $0x30] sm:$0xf0]  ;;  %v609_v12 = vld [vmem:[%s1130_s1 + $0x28] sm:$0xf]  ;;  %v720_v13 = vld [vmem:[%s1130_s1 + $0x34] sm:$0xf0]  ;;  %v602_v16 = vor.u32 %v719_v8, %v601_v7 }
  0x13   :  { %v718_v14 = vld [vmem:[%s1130_s1 + $0x2c] sm:$0xf]  ;;  %v611_v15 = vld [vmem:[%s1130_s1 + $0x38] sm:$0xf0]  ;;  %v606_v17 = vor.u32 %v717_v9, %v603_v11  ;;  %v610_v18 = vor.u32 %v720_v13, %v609_v12  ;;  %v585_v19 = vld [vmem:[%s1130_s1] sm:$0xf] }
  0x14   :  { %262 = vmatpush.bf16.msra.mxu0 %v634_v56  ;;  %v715_v20 = vld [vmem:[%s1130_s1 + $0xc] sm:$0xf0]  ;;  %v713_v21 = vld [vmem:[%s1130_s1 + $0x4] sm:$0xf]  ;;  %v614_v22 = vor.u32 %v718_v14, %v611_v15  ;;  %v587_v23 = vld [vmem:[%s1130_s1 + $0x10] sm:$0xf0] }
  0x15   :  { %281 = vmatpush.bf16.msra.mxu1 %v638_v57  ;;  %300 = vmatpush.bf16.msra.mxu2 %v642_v58  ;;  %v593_v24 = vld [vmem:[%s1130_s1 + $0x8] sm:$0xf]  ;;  %v716_v25 = vld [vmem:[%s1130_s1 + $0x14] sm:$0xf0]  ;;  %v714_v26 = vld [vmem:[%s1130_s1 + $0xc] sm:$0xf]  ;;  %v586_v28 = vor.u32 %v715_v20, %v585_v19  ;;  %v590_v29 = vor.u32 %v713_v21, %v587_v23 }
  0x16   :  { %319 = vmatpush.bf16.msra.mxu3 %v646_v62  ;;  %v595_v27 = vld [vmem:[%s1130_s1 + $0x18] sm:$0xf0]  ;;  %v594_v30 = vor.u32 %v716_v25, %v593_v24  ;;  %v711_v32 = vld [vmem:[%s1131_s0] sm:$0xff]  ;;  %v712_v33 = vld [vmem:[%s1131_s0 + $0x8] sm:$0xff] }
  0x17   :  { %v598_v31 = vor.u32 %v714_v26, %v595_v27  ;;  %v385_v34 = vld [vmem:[%s1132_s2] sm:$0xf] }
  0x18   :  { %263 = vmatpush.bf16.msra.mxu0 %v618_v4  ;;  %v998_v35 = vperm.slane %v385_v34, 0  ;;  %v1000_v36 = vperm.slane %v385_v34, 1  ;;  %v1004_v43 = vperm.slane %v385_v34, 2  ;;  %v1006_v45 = vperm.slane %v385_v34, 3 }
  0x19   :  { %282 = vmatpush.bf16.msra.mxu1 %v622_v5  ;;  %301 = vmatpush.bf16.msra.mxu2 %v626_v6 }
  0x1a   :  { %320 = vmatpush.bf16.msra.mxu3 %v630_v10 }
  0x1c   :  { %264 = vmatpush.bf16.msra.mxu0 %v602_v16 }
  0x1d   :  { %283 = vmatpush.bf16.msra.mxu1 %v606_v17  ;;  %302 = vmatpush.bf16.msra.mxu2 %v610_v18 }
  0x1e   :  { %321 = vmatpush.bf16.msra.mxu3 %v614_v22 }
  0x20   :  { %265 = vmatpush.bf16.msra.mxu0 %v586_v28 }
  0x21   :  { %284 = vmatpush.bf16.msra.mxu1 %v590_v29  ;;  %303 = vmatpush.bf16.msra.mxu2 %v594_v30 }
  0x22   :  { %322 = vmatpush.bf16.msra.mxu3 %v598_v31 }
  0x23   :  { %266 = vmatmul.bf16.vlgmr.msra.gmra.mxu0 %v711_v32 }
  0x24   :  { %285 = vmatmul.bf16.vlgmr.msra.gmra.mxu1 %v711_v32  ;;  %304 = vmatmul.bf16.vlgmr.msra.gmra.mxu2 %v711_v32 }
  0x25   :  { %323 = vmatmul.bf16.vlgmr.msra.gmra.mxu3 %v711_v32 }
  0x33   :  { %271 = vmatmul.bf16.gmra.mxu0 %v712_v33 }
  0x34   :  { %290 = vmatmul.bf16.gmra.mxu1 %v712_v33  ;;  %309 = vmatmul.bf16.gmra.mxu2 %v712_v33 }
  0x35   :  { %328 = vmatmul.bf16.gmra.mxu3 %v712_v33 }
  0xa0   :  { %v267_v37 = vpop.f32.mrf.mxu0 }
  0xa1   :  { %v395_v38 = vadd.f32 %v998_v35, %v267_v37  ;;  %v286_v39 = vpop.f32.mrf.mxu1 }
  0xa2   :  { %v396_v40 = vadd.f32 %v1000_v36, %v286_v39 }
  0xa3   :  { %v427_v41 = vmul.f32 0.044715, %v395_v38  ;;  %v411_v13 = vmul.f32 0.5, %v395_v38 }
  0xa4   :  { %v428_v42 = vmul.f32 0.044715, %v396_v40  ;;  %v412_v17 = vmul.f32 0.5, %v396_v40 }
  0xa5   :  { %v443_v44 = vmul.f32 %v427_v41, %v395_v38 }
  0xa6   :  { %v444_v46 = vmul.f32 %v428_v42, %v396_v40 }
  0xa7   :  { %v459_v47 = vmul.f32 %v443_v44, %v395_v38  ;;  %v305_v48 = vpop.f32.mrf.mxu2 }
  0xa8   :  { %v460_v49 = vmul.f32 %v444_v46, %v396_v40  ;;  %v397_v50 = vadd.f32 %v1004_v43, %v305_v48  ;;  %v324_v51 = vpop.f32.mrf.mxu3  ;;  %v269_v52 = vpop.f32.mrf.mxu0 }
  0xa9   :  { %v475_v53 = vadd.f32 %v459_v47, %v395_v38  ;;  %v1010_v54 = vadd.f32 %v1006_v45, %v324_v51  ;;  %v1013_v55 = vadd.f32 %v998_v35, %v269_v52  ;;  %v288_v56 = vpop.f32.mrf.mxu1 }
  0xaa   :  { %v476_v57 = vadd.f32 %v460_v49, %v396_v40  ;;  %v429_v58 = vmul.f32 0.044715, %v397_v50  ;;  %v1016_v59 = vadd.f32 %v1000_v36, %v288_v56  ;;  %v413_v42 = vmul.f32 0.5, %v397_v50 }
  0xab   :  { %v491_v60 = vmul.f32 0.7978846, %v475_v53  ;;  %v430_v61 = vmul.f32 0.044715, %v1010_v54  ;;  %v431_v0 = vmul.f32 0.044715, %v1013_v55 }
  0xac   :  { %v492_v62 = vmul.f32 0.7978846, %v476_v57  ;;  %v445_v63 = vmul.f32 %v429_v58, %v397_v50  ;;  %v432_v2 = vmul.f32 0.044715, %v1016_v59  ;;  %v414_v51 = vmul.f32 0.5, %v1010_v54 }
  0xad   :  { %745 = vtanh.f32 %v491_v60  ;;  %v446_v1 = vmul.f32 %v430_v61, %v1010_v54  ;;  %v447_v4 = vmul.f32 %v431_v0, %v1013_v55  ;;  %v415_v57 = vmul.f32 0.5, %v1013_v55 }
  0xae   :  { %747 = vtanh.f32 %v492_v62  ;;  %v461_v3 = vmul.f32 %v445_v63, %v397_v50  ;;  %v448_v6 = vmul.f32 %v432_v2, %v1016_v59 }
  0xaf   :  { %v462_v5 = vmul.f32 %v446_v1, %v1010_v54  ;;  %v307_v7 = vpop.f32.mrf.mxu2  ;;  %v463_v9 = vmul.f32 %v447_v4, %v1013_v55 }
  0xb0   :  { %v477_v8 = vadd.f32 %v461_v3, %v397_v50  ;;  %v1027_v10 = vadd.f32 %v1004_v43, %v307_v7  ;;  %v326_v11 = vpop.f32.mrf.mxu3  ;;  %v272_v12 = vpop.f32.mrf.mxu0  ;;  %v464_v15 = vmul.f32 %v448_v6, %v1016_v59 }
  0xb1   :  { %v478_v14 = vadd.f32 %v462_v5, %v1010_v54  ;;  %v1032_v16 = vadd.f32 %v1006_v45, %v326_v11  ;;  %v479_v19 = vadd.f32 %v463_v9, %v1013_v55  ;;  %v1039_v25 = vadd.f32 %v998_v35, %v272_v12  ;;  %v291_v33 = vpop.f32.mrf.mxu1 }
  0xb2   :  { %v493_v18 = vmul.f32 0.7978846, %v477_v8  ;;  %v433_v20 = vmul.f32 0.044715, %v1027_v10  ;;  %v480_v23 = vadd.f32 %v464_v15, %v1016_v59  ;;  %v1048_v46 = vadd.f32 %v1000_v36, %v291_v33 }
  0xb3   :  { %v746_v21 = vpop.eup %745  ;;  %v494_v22 = vmul.f32 0.7978846, %v478_v14  ;;  %v434_v24 = vmul.f32 0.044715, %v1032_v16  ;;  %v495_v28 = vmul.f32 0.7978846, %v479_v19 }
  0xb4   :  { %v748_v26 = vpop.eup %747  ;;  %v523_v27 = vadd.f32 1.0, %v746_v21  ;;  %749 = vtanh.f32 %v493_v18  ;;  %v449_v29 = vmul.f32 %v433_v20, %v1027_v10  ;;  %v496_v31 = vmul.f32 0.7978846, %v480_v23 }
  0xb5   :  { %v524_v30 = vadd.f32 1.0, %v748_v26  ;;  %751 = vtanh.f32 %v494_v22  ;;  %v450_v32 = vmul.f32 %v434_v24, %v1032_v16  ;;  %v435_v40 = vmul.f32 0.044715, %v1039_v25 }
  0xb6   :  { %v539_v34 = vmul.f32 %v523_v27, %v411_v13  ;;  %753 = vtanh.f32 %v495_v28  ;;  %v465_v37 = vmul.f32 %v449_v29, %v1027_v10  ;;  %v436_v58 = vmul.f32 0.044715, %v1048_v46 }
  0xb7   :  { %v540_v38 = vmul.f32 %v524_v30, %v412_v17  ;;  %755 = vtanh.f32 %v496_v31  ;;  %v466_v39 = vmul.f32 %v450_v32, %v1032_v16  ;;  %v310_v41 = vpop.f32.mrf.mxu2  ;;  %v451_v53 = vmul.f32 %v435_v40, %v1039_v25 }
  0xb8   :  { %v481_v44 = vadd.f32 %v465_v37, %v1027_v10  ;;  %v1051_v47 = vadd.f32 %v1004_v43, %v310_v41  ;;  %v329_v48 = vpop.f32.mrf.mxu3  ;;  %v416_v55 = vmul.f32 0.5, %v1016_v59  ;;  %v452_v3 = vmul.f32 %v436_v58, %v1048_v46  ;;  %v274_v4 = vpop.f32.mrf.mxu0 }
  0xb9   :  { %v555_v49 = vpack.c.bf16 %v540_v38, %v539_v34  ;;  %v482_v52 = vadd.f32 %v466_v39, %v1032_v16  ;;  %v1059_v60 = vadd.f32 %v1006_v45, %v329_v48  ;;  %v467_v63 = vmul.f32 %v451_v53, %v1039_v25  ;;  %v293_v18 = vpop.f32.mrf.mxu1 }
  0xba   :  { %v750_v56 = vpop.eup %749  ;;  %v497_v50 = vmul.f32 0.7978846, %v481_v44  ;;  %v437_v0 = vmul.f32 0.044715, %v1051_v47  ;;  %v468_v12 = vmul.f32 %v452_v3, %v1048_v46  ;;  %v1073_v17 = vadd.f32 %v998_v35, %v274_v4 }
  0xbb   :  { %v752_v61 = vpop.eup %751  ;;  %563 = vst [vmem:[%s1133_s3] sm:$0xff] %v555_v49  ;;  %v525_v62 = vadd.f32 1.0, %v750_v56  ;;  %v498_v54 = vmul.f32 0.7978846, %v482_v52  ;;  %v483_v8 = vadd.f32 %v467_v63, %v1039_v25  ;;  %v438_v59 = vmul.f32 0.044715, %v1059_v60 }
  0xbc   :  { %v754_v1 = vpop.eup %753  ;;  %v526_v2 = vadd.f32 1.0, %v752_v61  ;;  %757 = vtanh.f32 %v497_v50  ;;  %v453_v13 = vmul.f32 %v437_v0, %v1051_v47  ;;  %v484_v21 = vadd.f32 %v468_v12, %v1048_v46 }
  0xbd   :  { %v756_v5 = vpop.eup %755  ;;  %v541_v6 = vmul.f32 %v525_v62, %v413_v42  ;;  %v527_v7 = vadd.f32 1.0, %v754_v1  ;;  %759 = vtanh.f32 %v498_v54  ;;  %v499_v15 = vmul.f32 0.7978846, %v483_v8 }
  0xbe   :  { %v542_v9 = vmul.f32 %v526_v2, %v414_v51  ;;  %v528_v11 = vadd.f32 1.0, %v756_v5  ;;  %v469_v22 = vmul.f32 %v453_v13, %v1051_v47  ;;  %v417_v24 = vmul.f32 0.5, %v1027_v10 }
  0xbf   :  { %v543_v14 = vmul.f32 %v527_v7, %v415_v57  ;;  %v312_v23 = vpop.f32.mrf.mxu2  ;;  %761 = vtanh.f32 %v499_v15  ;;  %v454_v26 = vmul.f32 %v438_v59, %v1059_v60  ;;  %v439_v27 = vmul.f32 0.044715, %v1073_v17 }
  0xc0   :  { %v556_v19 = vpack.c.bf16 %v542_v9, %v541_v6  ;;  %v544_v20 = vmul.f32 %v528_v11, %v416_v55  ;;  %v500_v29 = vmul.f32 0.7978846, %v484_v21  ;;  %v485_v30 = vadd.f32 %v469_v22, %v1051_v47 }
  0xc1   :  { %v1085_v31 = vadd.f32 %v1000_v36, %v293_v18  ;;  %v470_v10 = vmul.f32 %v454_v26, %v1059_v60  ;;  %v455_v34 = vmul.f32 %v439_v27, %v1073_v17  ;;  %v1090_v37 = vadd.f32 %v1004_v43, %v312_v23  ;;  %v331_v36 = vpop.f32.mrf.mxu3 }
  0xc2   :  { %v758_v28 = vpop.eup %757  ;;  %564 = vst [vmem:[%s1133_s3 + $0x8] sm:$0xff] %v556_v19  ;;  %v557_v35 = vpack.c.bf16 %v544_v20, %v543_v14  ;;  %v418_v38 = vmul.f32 0.5, %v1032_v16  ;;  %763 = vtanh.f32 %v500_v29  ;;  %v501_v40 = vmul.f32 0.7978846, %v485_v30 }
  0xc3   :  { %v760_v32 = vpop.eup %759  ;;  %v529_v33 = vadd.f32 1.0, %v758_v28  ;;  %v486_v42 = vadd.f32 %v470_v10, %v1059_v60  ;;  %v471_v44 = vmul.f32 %v455_v34, %v1073_v17  ;;  %v440_v48 = vmul.f32 0.044715, %v1085_v31 }
  0xc4   :  { %565 = vst [vmem:[%s1133_s3 + $0x10] sm:$0xff] %v557_v35  ;;  %v530_v39 = vadd.f32 1.0, %v760_v32  ;;  %765 = vtanh.f32 %v501_v40  ;;  %v441_v43 = vmul.f32 0.044715, %v1090_v37  ;;  %v410_v56 = vadd.f32 %v1006_v45, %v331_v36 }
  0xc5   :  { %v545_v41 = vmul.f32 %v529_v33, %v417_v24  ;;  %v762_v51 = vpop.eup %761  ;;  %v502_v52 = vmul.f32 0.7978846, %v486_v42  ;;  %v487_v53 = vadd.f32 %v471_v44, %v1073_v17  ;;  %v456_v16 = vmul.f32 %v440_v48, %v1085_v31 }
  0xc6   :  { %v546_v49 = vmul.f32 %v530_v39, %v418_v38  ;;  %v531_v50 = vadd.f32 1.0, %v762_v51  ;;  %v457_v58 = vmul.f32 %v441_v43, %v1090_v37  ;;  %v419_v61 = vmul.f32 0.5, %v1039_v25 }
  0xc7   :  { %767 = vtanh.f32 %v502_v52  ;;  %v503_v62 = vmul.f32 0.7978846, %v487_v53  ;;  %v472_v54 = vmul.f32 %v456_v16, %v1085_v31  ;;  %v420_v0 = vmul.f32 0.5, %v1048_v46 }
  0xc8   :  { %v558_v57 = vpack.c.bf16 %v546_v49, %v545_v41  ;;  %v764_v63 = vpop.eup %763  ;;  %v473_v1 = vmul.f32 %v457_v58, %v1090_v37  ;;  %v442_v45 = vmul.f32 0.044715, %v410_v56  ;;  %v547_v2 = vmul.f32 %v531_v50, %v419_v61 }
  0xc9   :  { %v532_v55 = vadd.f32 1.0, %v764_v63  ;;  %769 = vtanh.f32 %v503_v62  ;;  %v488_v3 = vadd.f32 %v472_v54, %v1085_v31  ;;  %v421_v9 = vmul.f32 0.5, %v1051_v47 }
  0xca   :  { %566 = vst [vmem:[%s1133_s3 + $0x18] sm:$0xff] %v558_v57  ;;  %v766_v25 = vpop.eup %765  ;;  %v489_v4 = vadd.f32 %v473_v1, %v1090_v37  ;;  %v458_v5 = vmul.f32 %v442_v45, %v410_v56  ;;  %v422_v14 = vmul.f32 0.5, %v1059_v60  ;;  %v423_v23 = vmul.f32 0.5, %v1073_v17 }
  0xcb   :  { %v548_v6 = vmul.f32 %v532_v55, %v420_v0  ;;  %v533_v7 = vadd.f32 1.0, %v766_v25  ;;  %v504_v8 = vmul.f32 0.7978846, %v488_v3  ;;  %v424_v27 = vmul.f32 0.5, %v1085_v31 }
  0xcc   :  { %v505_v11 = vmul.f32 0.7978846, %v489_v4  ;;  %v474_v12 = vmul.f32 %v458_v5, %v410_v56  ;;  %v425_v30 = vmul.f32 0.5, %v1090_v37  ;;  %v426_v34 = vmul.f32 0.5, %v410_v56 }
  0xcd   :  { %v768_v46 = vpop.eup %767  ;;  %v559_v13 = vpack.c.bf16 %v548_v6, %v547_v2  ;;  %771 = vtanh.f32 %v504_v8  ;;  %v549_v15 = vmul.f32 %v533_v7, %v421_v9 }
  0xce   :  { %v534_v59 = vadd.f32 1.0, %v768_v46  ;;  %773 = vtanh.f32 %v505_v11  ;;  %v490_v18 = vadd.f32 %v474_v12, %v410_v56 }
  0xcf   :  { %v770_v19 = vpop.eup %769  ;;  %567 = vst [vmem:[%s1133_s3 + $0x20] sm:$0xff] %v559_v13 }
  0xd0   :  { %v550_v20 = vmul.f32 %v534_v59, %v422_v14  ;;  %v535_v21 = vadd.f32 1.0, %v770_v19  ;;  %v506_v22 = vmul.f32 0.7978846, %v490_v18 }
  0xd2   :  { %v560_v47 = vpack.c.bf16 %v550_v20, %v549_v15  ;;  %775 = vtanh.f32 %v506_v22  ;;  %v551_v60 = vmul.f32 %v535_v21, %v423_v23 }
  0xd3   :  { %v772_v24 = vpop.eup %771 }
  0xd4   :  { %v774_v26 = vpop.eup %773  ;;  %568 = vst [vmem:[%s1133_s3 + $0x28] sm:$0xff] %v560_v47  ;;  %v536_v28 = vadd.f32 1.0, %v772_v24 }
  0xd5   :  { %v537_v35 = vadd.f32 1.0, %v774_v26 }
  0xd6   :  { %v552_v29 = vmul.f32 %v536_v28, %v424_v27 }
  0xd7   :  { %v553_v10 = vmul.f32 %v537_v35, %v425_v30 }
  0xd8   :  { %v776_v32 = vpop.eup %775  ;;  %v561_v33 = vpack.c.bf16 %v552_v29, %v551_v60 }
  0xd9   :  { %v538_v17 = vadd.f32 1.0, %v776_v32 }
  0xda   :  { %569 = vst [vmem:[%s1133_s3 + $0x30] sm:$0xff] %v561_v33 }
  0xdb   :  { %v554_v38 = vmul.f32 %v538_v17, %v426_v34 }
  0xdd   :  { %v562_v39 = vpack.c.bf16 %v554_v38, %v553_v10 }
  0xdf   :  { %570 = vst [vmem:[%s1133_s3 + $0x38] sm:$0xff] %v562_v39 }

// kernel: transformer_block.6
= control target key start
LH: loop header
LB: loop body
LE: loop exit
PB: predicated region body
PF: predicated region fallthrough
CT: control target
= control target key end

     0   :  { %s1314_s12 = smov 0   ;;  %s1316_s13 = smov 0   ;;  %s1582_s0 = inlined_call_operand.vmem [shape: bf16[2,4,16,32], index: 0, kind: input, shape index: {}]   ;;  %s1583_s1 = inlined_call_operand.vmem [shape: bf16[2,4,16,32], index: 1, kind: input, shape index: {}]   ;;  %s1584_s2 = inlined_call_operand.vmem [shape: bf16[2,4,16,32], index: 2, kind: input, shape index: {}]   ;;  %s1585_s3 = inlined_call_operand.vmem [shape: bf16[2,16,128], index: 3, kind: output, shape index: {}]  }
   0x1   :  { %s1318_s14 = smov 0  }
   0x2 LB: > { %s32_s15 = sadd.s32 1, %s1282_s13  ;;  %p1100_p0 = scmp.ge.s32.totalorder %s1286_s14, 1  ;;  %s1286_s14 = sphi %s1318_s14, %s13_s14   ;;  %s1282_s13 = sphi %s1316_s13, %s1587_s13   ;;  %s1278_s12 = sphi %s1314_s12, %s1586_s12  }
   0x3   : > { %p34_p1 = scmp.ge.s32.totalorder %s32_s15, 2  ;;  %p199_p2 = scmp.lt.s32.totalorder %s1286_s14, 3 }
   0x5   : > { %s1589_s15 = smov (%p34_p1, %s32_s15), 0  ;;  %p200_p3 = pnand %p1100_p0, %p199_p2 }
   0x6   : > { %p250_p4 = scmp.lt.s32.totalorder (!%p200_p3), %s1278_s12, 1  ;;  %s1291_s26 = smov (!%p200_p3), 32  }
   0x7   : > { %203 = sbr.rel (%p200_p3) target bundleno = 837 (0x345), region = 32  ;;  %s1292_s27 = smov (!%p200_p3), 64  }
   0x8   : > { %s1293_s28 = smov (!%p200_p3), 96  }
   0xc   : > { %s1591_s12 = smov (!%p250_p4, %s1278_s12), 1  ;;  %vm311_vm0 = vcmask 261120   ;;  %vm294_vm1 = vcmask 7168   ;;  %v1288_v12 = vmov -inf   ;;  %vm473_vm2 = vcmask 130048  }
   0xd   : > { %s1335_s16 = sshll.u32 %s1591_s12, 5  ;;  %297 = vst.msk [vmem:[#allocation2 + $0x10] sm:$0xff] %vm294_vm1, %v1288_v12  ;;  %v1289_v29 = vmov 0   ;;  %v1290_v30 = vmov 0.0   ;;  %s1170_s29 = sshll.u32 %s1591_s12, 3  ;;  %vm928_vm3 = vcmask 257024  }
   0xe   : > { %s267_s19 = scalar_lea.vmem %s1583_s1, %s1335_s16  ;;  %s257_s22 = scalar_lea.vmem %s1582_s0, %s1335_s16  ;;  %295 = vst.msk [vmem:[#allocation2] sm:$0xff] %vm294_vm1, %v1288_v12  ;;  %1214 = vset.pattern.permute.xlu2 %v1289_v29  ;;  %1213 = vset.pattern.permute.xlu0 %v1289_v29  ;;  %vm941_vm4 = vcmask 519424   ;;  %vm954_vm5 = vcmask 781824   ;;  %vm967_vm6 = vcmask 1044224  }
   0xf   : > { %v1176_v0 = vld [vmem:[%s267_s19 + $0x8] sm:$0xff]  ;;  %v1177_v1 = vld [vmem:[%s267_s19 + $0x10] sm:$0xff]  ;;  %v1178_v2 = vld [vmem:[%s267_s19 + $0x18] sm:$0xff]  ;;  %296 = vst.msk [vmem:[#allocation2 + $0x8] sm:$0xff] %vm294_vm1, %v1288_v12  ;;  %1215 = vset.pattern.permute.xlu1 %v1289_v29  ;;  %s277_s25 = scalar_lea.vmem %s1584_s2, %s1335_s16  ;;  %s1560_s5 = scalar_lea.vmem %s1585_s3, %s1170_s29 }
  0x10   : > { %v389_v3 = vsel %vm311_vm0, %v1176_v0, 0  ;;  %v419_v4 = vsel %vm311_vm0, %v1177_v1, 0  ;;  %v449_v5 = vsel %vm311_vm0, %v1178_v2, 0  ;;  %v1175_v6 = vld [vmem:[%s267_s19] sm:$0xff]  ;;  %v1172_v8 = vld [vmem:[%s257_s22 + $0x8] sm:$0xff]  ;;  %v1173_v9 = vld [vmem:[%s257_s22 + $0x10] sm:$0xff] }
  0x11   : > { %398 = vmatpush.bf16.xpose.msra.mxu1 %v389_v3  ;;  %428 = vmatpush.bf16.xpose.msra.mxu2 %v419_v4  ;;  %v359_v7 = vsel %vm311_vm0, %v1175_v6, 0  ;;  %v1174_v10 = vld [vmem:[%s257_s22 + $0x18] sm:$0xff]  ;;  %v1171_v11 = vld [vmem:[%s257_s22] sm:$0xff]  ;;  %298 = vst.msk [vmem:[#allocation2 + $0x18] sm:$0xff] %vm294_vm1, %v1288_v12 }
  0x12   : > { %458 = vmatpush.bf16.xpose.msra.mxu3 %v449_v5  ;;  %368 = vmatpush.bf16.xpose.msra.mxu0 %v359_v7  ;;  %299 = vst.msk [vmem:[#allocation2 + $0x20] sm:$0xff] %vm294_vm1, %v1288_v12  ;;  %v1181_v5 = vld [vmem:[%s277_s25 + $0x10] sm:$0xff] }
  0x13   : > { %300 = vst.msk [vmem:[#allocation2 + $0x28] sm:$0xff] %vm294_vm1, %v1288_v12 }
  0x14   : > { %301 = vst.msk [vmem:[#allocation2 + $0x30] sm:$0xff] %vm294_vm1, %v1288_v12  ;;  %v1409_v31 = vld [vmem:[#allocation2 + $0x10] sm:$0xff] }
  0x15   : > { %302 = vst.msk [vmem:[#allocation2 + $0x38] sm:$0xff] %vm294_vm1, %v1288_v12  ;;  %v465_v38 = vld [vmem:[#allocation2] sm:$0xff]  ;;  %v1180_v12 = vld [vmem:[%s277_s25 + $0x8] sm:$0xff] }
  0x16   : > { %312 = vst.msk [vmem:[#allocation4] sm:$0xff] %vm311_vm0, %v1290_v30  ;;  %v1468_v58 = vld [vmem:[#allocation2 + $0x8] sm:$0xff] }
  0x17   : > { %303 = vst.msk [vmem:[#allocation3] sm:$0xff] %vm294_vm1, %v1290_v30 }
  0x18   : > { %1126 = vmatmul.msk.bf16.vlgmr.msra.gmra.mxu1 %vm311_vm0, %v1172_v8  ;;  %1135 = vmatmul.msk.bf16.vlgmr.msra.gmra.mxu2 %vm311_vm0, %v1173_v9  ;;  %304 = vst.msk [vmem:[#allocation3 + $0x8] sm:$0xff] %vm294_vm1, %v1290_v30  ;;  %v1443_v49 = vld [vmem:[#allocation2 + $0x18] sm:$0xff] }
  0x19   : > { %1144 = vmatmul.msk.bf16.vlgmr.msra.gmra.mxu3 %vm311_vm0, %v1174_v10  ;;  %1117 = vmatmul.msk.bf16.vlgmr.msra.gmra.mxu0 %vm311_vm0, %v1171_v11  ;;  %305 = vst.msk [vmem:[#allocation3 + $0x10] sm:$0xff] %vm294_vm1, %v1290_v30  ;;  %v1418_v35 = vld [vmem:[#allocation2 + $0x20] sm:$0xff]  ;;  %v1182_v8 = vld [vmem:[%s277_s25 + $0x18] sm:$0xff] }
  0x1a   : > { %306 = vst.msk [vmem:[#allocation3 + $0x18] sm:$0xff] %vm294_vm1, %v1290_v30  ;;  %v1439_v46 = vld [vmem:[#allocation2 + $0x28] sm:$0xff]  ;;  %792 = vmatpush.bf16.msrb.mxu2 %v1181_v5  ;;  %820 = vmatpush.bf16.msrb.mxu3 %v1182_v8 }
  0x1b   : > { %307 = vst.msk [vmem:[#allocation3 + $0x20] sm:$0xff] %vm294_vm1, %v1290_v30  ;;  %v1420_v36 = vld [vmem:[#allocation2 + $0x30] sm:$0xff]  ;;  %764 = vmatpush.bf16.msrb.mxu1 %v1180_v12 }
  0x1c   : > { %308 = vst.msk [vmem:[#allocation3 + $0x28] sm:$0xff] %vm294_vm1, %v1290_v30  ;;  %v1441_v47 = vld [vmem:[#allocation2 + $0x38] sm:$0xff] }
  0x1d   : > { %309 = vst.msk [vmem:[#allocation3 + $0x30] sm:$0xff] %vm294_vm1, %v1290_v30 }
  0x1e   : > { %310 = vst.msk [vmem:[#allocation3 + $0x38] sm:$0xff] %vm294_vm1, %v1290_v30 }
  0x1f   : > { %313 = vst.msk [vmem:[#allocation4 + $0x8] sm:$0xff] %vm311_vm0, %v1290_v30 }
  0x20   : > { %314 = vst.msk [vmem:[#allocation4 + $0x10] sm:$0xff] %vm311_vm0, %v1290_v30 }
  0x21   : > { %315 = vst.msk [vmem:[#allocation4 + $0x18] sm:$0xff] %vm311_vm0, %v1290_v30 }
  0x22   : > { %316 = vst.msk [vmem:[#allocation4 + $0x20] sm:$0xff] %vm311_vm0, %v1290_v30 }
  0x23   : > { %317 = vst.msk [vmem:[#allocation4 + $0x28] sm:$0xff] %vm311_vm0, %v1290_v30 }
  0x24   : > { %318 = vst.msk [vmem:[#allocation4 + $0x30] sm:$0xff] %vm311_vm0, %v1290_v30 }
  0x25   : > { %319 = vst.msk [vmem:[#allocation4 + $0x38] sm:$0xff] %vm311_vm0, %v1290_v30 }
  0x95   : > { %v1358_v13 = vpop.f32.mrf.mxu1 }
  0x96   : > { %v480_v14 = vsel %vm473_vm2, %v1358_v13, -inf  ;;  %v1365_v15 = vpop.f32.mrf.mxu0 }
  0x97   : > { %481 = vmax.xlane.f32.xlu2 %v480_v14  ;;  %v474_v19 = vsel %vm473_vm2, %v1365_v15, -inf }
  0x9b   : > { %v1367_v16 = vpop.f32.mrf.mxu2 }
  0x9c   : > { %v1369_v17 = vpop.f32.mrf.mxu3  ;;  %v486_v18 = vsel %vm473_vm2, %v1367_v16, -inf }
  0x9d   : > { %v492_v20 = vsel %vm473_vm2, %v1369_v17, -inf  ;;  %487 = vmax.xlane.f32.xlu0 %v486_v18  ;;  %v1377_v21 = vpop.f32.mrf.mxu1 }
  0x9e   : > { %493 = vmax.xlane.f32.xlu1 %v492_v20  ;;  %v483_v24 = vsel %vm473_vm2, %v1377_v21, -inf  ;;  %v1389_v27 = vpop.f32.mrf.mxu0 }
  0x9f   : > { %475 = vmax.xlane.f32.xlu2 %v474_v19  ;;  %v477_v28 = vsel %vm473_vm2, %v1389_v27, -inf }
  0xa3   : > { %v1379_v22 = vpop.f32.mrf.mxu2 }
  0xa4   : > { %v489_v23 = vsel %vm473_vm2, %v1379_v22, -inf  ;;  %v1385_v25 = vpop.f32.mrf.mxu3 }
  0xa5   : > { %490 = vmax.xlane.f32.xlu0 %v489_v23  ;;  %v495_v26 = vsel %vm473_vm2, %v1385_v25, -inf }
  0xa6   : > { %496 = vmax.xlane.f32.xlu1 %v495_v26 }
  0xa7   : > { %484 = vmax.xlane.f32.xlu2 %v483_v24 }
  0xaf   : > { %478 = vmax.xlane.f32.xlu2 %v477_v28 }
 0x10a   : > { %v482_v32 = vpop.xlane.xlu2 %481 }
 0x10b   : > { %v1412_v33 = vmax.f32 %v1409_v31, %v482_v32 }
 0x10d   : > { %v508_v34 = vsub.f32 %v1409_v31, %v1412_v33  ;;  %845 = vst.msk [vmem:[#allocation2 + $0x10] sm:$0xff] %vm294_vm1, %v1412_v33 }
 0x110   : > { %v488_v37 = vpop.xlane.xlu0 %487 }
 0x111   : > { %v494_v39 = vpop.xlane.xlu1 %493  ;;  %v1423_v40 = vmax.f32 %v1418_v35, %v488_v37 }
 0x112   : > { %v1426_v41 = vmax.f32 %v1420_v36, %v494_v39  ;;  %v476_v42 = vpop.xlane.xlu2 %475 }
 0x113   : > { %v510_v43 = vsub.f32 %v1418_v35, %v1423_v40  ;;  %847 = vst.msk [vmem:[#allocation2 + $0x20] sm:$0xff] %vm294_vm1, %v1423_v40  ;;  %v498_v44 = vmax.f32 %v465_v38, %v476_v42  ;;  %552 = vperm.xlu0 %1213, %v1423_v40  }
 0x114   : > { %v512_v45 = vsub.f32 %v1420_v36, %v1426_v41  ;;  %849 = vst.msk [vmem:[#allocation2 + $0x30] sm:$0xff] %vm294_vm1, %v1426_v41  ;;  %562 = vperm.xlu2 %1214, %v1426_v41  }
 0x115   : > { %843 = vst.msk [vmem:[#allocation2] sm:$0xff] %vm294_vm1, %v498_v44  ;;  %v506_v62 = vsub.f32 %v465_v38, %v498_v44 }
 0x117   : > { %v514_v63 = vmul.f32 1.442695, %v506_v62 }
 0x118   : > { %v491_v48 = vpop.xlane.xlu0 %490 }
 0x119   : > { %v1446_v50 = vmax.f32 %v1439_v46, %v491_v48  ;;  %v497_v51 = vpop.xlane.xlu1 %496  ;;  %1216 = vpow2.f32 %v514_v63  ;;  %v522_v63 = vmul.f32 1.442695, %v510_v43 }
 0x11a   : > { %v485_v52 = vpop.xlane.xlu2 %484  ;;  %v1449_v53 = vmax.f32 %v1441_v47, %v497_v51 }
 0x11b   : > { %v511_v54 = vsub.f32 %v1439_v46, %v1446_v50  ;;  %848 = vst.msk [vmem:[#allocation2 + $0x28] sm:$0xff] %vm294_vm1, %v1446_v50  ;;  %v1456_v55 = vmax.f32 %v1443_v49, %v485_v52  ;;  %557 = vperm.xlu1 %1215, %v1446_v50  }
 0x11c   : > { %532 = vperm.xlu2 %1214, %v498_v44   ;;  %v513_v56 = vsub.f32 %v1441_v47, %v1449_v53  ;;  %850 = vst.msk [vmem:[#allocation2 + $0x38] sm:$0xff] %vm294_vm1, %v1449_v53  ;;  %v597_v47 = vld [vmem:[#allocation3 + $0x18] sm:$0xff] }
 0x11d   : > { %v509_v57 = vsub.f32 %v1443_v49, %v1456_v55  ;;  %846 = vst.msk [vmem:[#allocation2 + $0x18] sm:$0xff] %vm294_vm1, %v1456_v55  ;;  %547 = vperm.xlu0 %1213, %v1456_v55   ;;  %v594_v55 = vld [vmem:[#allocation3] sm:$0xff] }
 0x11f   : > { %v1480_v0 = vpop.eup %1216 }
 0x120   : > { %v602_v46 = vmul.f32 %v1480_v0, %v594_v55 }
 0x122   : > { %v479_v59 = vpop.xlane.xlu2 %478 }
 0x123   : > { %567 = vperm.xlu1 %1215, %v1449_v53   ;;  %v1472_v60 = vmax.f32 %v1468_v58, %v479_v59 }
 0x125   : > { %v507_v61 = vsub.f32 %v1468_v58, %v1472_v60  ;;  %844 = vst.msk [vmem:[#allocation2 + $0x8] sm:$0xff] %vm294_vm1, %v1472_v60  ;;  %v653_v58 = vld [vmem:[#allocation4 + $0x10] sm:$0xff] }
 0x12b   : > { %542 = vperm.xlu1 %1215, %v1412_v33   ;;  %v520_v33 = vmul.f32 1.442695, %v509_v57 }
 0x133   : > { %537 = vperm.xlu1 %1215, %v1472_v60  }
 0x13b   : > { %661 = vperm.xlu1 %1215, %v1480_v0   ;;  %v599_v0 = vld [vmem:[#allocation3 + $0x28] sm:$0xff] }
 0x16e   : > { %v563_v1 = vpop.permute.xlu2 %562 }
 0x176   : > { %v533_v2 = vpop.permute.xlu2 %532 }
 0x177   : > { %v570_v3 = vsub.f32 %v1365_v15, %v533_v2  ;;  %v576_v15 = vsub.f32 %v1369_v17, %v563_v1 }
 0x179   : > { %v578_v4 = vmul.f32 1.442695, %v570_v3  ;;  %v590_v28 = vmul.f32 1.442695, %v576_v15 }
 0x17b   : > { %1218 = vpow2.f32 %v578_v4 }
 0x181   : > { %v1488_v6 = vpop.eup %1218 }
 0x182   : > { %v610_v7 = vsel %vm473_vm2, %v1488_v6, 0.0 }
 0x183   : > { %611 = vadd.xlane.f32.xlu2 %v610_v7 }
 0x185   : > { %v553_v9 = vpop.permute.xlu0 %552 }
 0x186   : > { %v574_v10 = vsub.f32 %v1367_v16, %v553_v9  ;;  %v1179_v16 = vld [vmem:[%s277_s25] sm:$0xff] }
 0x187   : > { %736 = vmatpush.bf16.msrb.mxu0 %v1179_v16 }
 0x188   : > { %v586_v11 = vmul.f32 1.442695, %v574_v10 }
 0x18a   : > { %1220 = vpow2.f32 %v586_v11 }
 0x18d   : > { %v558_v14 = vpop.permute.xlu1 %557 }
 0x18e   : > { %v575_v18 = vsub.f32 %v1379_v22, %v558_v14 }
 0x18f   : > { %v548_v19 = vpop.permute.xlu0 %547 }
 0x190   : > { %v1221_v20 = vpop.eup %1220  ;;  %v588_v23 = vmul.f32 1.442695, %v575_v18  ;;  %v573_v24 = vsub.f32 %v1377_v21, %v548_v19  ;;  %v707_v18 = vpack.c.bf16 %v1488_v6, %v1488_v6  ;;  %v518_v19 = vmul.f32 1.442695, %v508_v34 }
 0x191   : > { %v622_v26 = vsel %vm473_vm2, %v1221_v20, 0.0  ;;  %v711_v32 = vpack.c.bf16 %v1221_v20, %v1221_v20  ;;  %v526_v6 = vmul.f32 1.442695, %v512_v45  ;;  %v524_v34 = vmul.f32 1.442695, %v511_v54 }
 0x192   : > { %1222 = vpow2.f32 %v588_v23  ;;  %v584_v29 = vmul.f32 1.442695, %v573_v24  ;;  %623 = vadd.xlane.f32.xlu1 %v622_v26  ;;  %v717_v24 = vunpack.c.l.b16 %v707_v18  ;;  %v528_v45 = vmul.f32 1.442695, %v513_v56 }
 0x193   : > { %v773_v21 = vunpack.c.l.b16 %v711_v32 }
 0x194   : > { %1224 = vpow2.f32 %v584_v29 }
 0x195   : > { %v568_v30 = vpop.permute.xlu1 %567  ;;  %1226 = vpow2.f32 %v590_v28 }
 0x196   : > { %v577_v17 = vsub.f32 %v1385_v25, %v568_v30 }
 0x198   : > { %v1223_v22 = vpop.eup %1222  ;;  %v592_v37 = vmul.f32 1.442695, %v577_v17  ;;  %v598_v17 = vld [vmem:[#allocation3 + $0x20] sm:$0xff] }
 0x199   : > { %v712_v38 = vpack.c.bf16 %v1223_v22, %v1223_v22  ;;  %v625_v5 = vsel %vm473_vm2, %v1223_v22, 0.0 }
 0x19a   : > { %v1225_v39 = vpop.eup %1224  ;;  %1228 = vpow2.f32 %v592_v37 }
 0x19b   : > { %v774_v42 = vunpack.c.l.b16 %v712_v38  ;;  %v619_v44 = vsel %vm473_vm2, %v1225_v39, 0.0  ;;  %v1227_v48 = vpop.eup %1226  ;;  %v710_v9 = vpack.c.bf16 %v1225_v39, %v1225_v39 }
 0x19c   : > { %620 = vadd.xlane.f32.xlu2 %v619_v44  ;;  %v713_v62 = vpack.c.bf16 %v1227_v48, %v1227_v48  ;;  %v628_v23 = vsel %vm473_vm2, %v1227_v48, 0.0 }
 0x19d   : > { %v543_v51 = vpop.permute.xlu1 %542  ;;  %v775_v52 = vpack.c.b16 %v774_v42, %v773_v21  ;;  %v746_v12 = vunpack.c.l.b16 %v710_v9 }
 0x19e   : > { %v572_v59 = vsub.f32 %v1358_v13, %v543_v51  ;;  %v801_v3 = vunpack.c.l.b16 %v713_v62  ;;  %v596_v51 = vld [vmem:[#allocation3 + $0x10] sm:$0xff] }
 0x19f   : > { %1159 = vmatmul.msk.bf16.vlgmr.msrb.gmra.mxu2 %vm473_vm2, %v775_v52 }
 0x1a0   : > { %v1229_v25 = vpop.eup %1228  ;;  %v582_v1 = vmul.f32 1.442695, %v572_v59 }
 0x1a1   : > { %v714_v2 = vpack.c.bf16 %v1229_v25, %v1229_v25  ;;  %v631_v36 = vsel %vm473_vm2, %v1229_v25, 0.0 }
 0x1a2   : > { %1230 = vpow2.f32 %v582_v1 }
 0x1a3   : > { %v802_v4 = vunpack.c.l.b16 %v714_v2  ;;  %1232 = vpow2.f32 %v522_v63  ;;  %v655_v63 = vld [vmem:[#allocation4 + $0x20] sm:$0xff]  ;;  %v516_v2 = vmul.f32 1.442695, %v507_v61 }
 0x1a4   : > { %626 = vadd.xlane.f32.xlu2 %v625_v5 }
 0x1a5   : > { %v538_v7 = vpop.permute.xlu1 %537  ;;  %v803_v8 = vpack.c.b16 %v802_v4, %v801_v3 }
 0x1a6   : > { %v571_v13 = vsub.f32 %v1389_v27, %v538_v7  ;;  %v600_v7 = vld [vmem:[#allocation3 + $0x30] sm:$0xff] }
 0x1a7   : > { %1164 = vmatmul.msk.bf16.vlgmr.msrb.gmra.mxu3 %vm473_vm2, %v803_v8 }
 0x1a8   : > { %v1231_v10 = vpop.eup %1230  ;;  %v580_v11 = vmul.f32 1.442695, %v571_v13 }
 0x1a9   : > { %v709_v35 = vpack.c.bf16 %v1231_v10, %v1231_v10  ;;  %v616_v40 = vsel %vm473_vm2, %v1231_v10, 0.0  ;;  %v1233_v43 = vpop.eup %1232 }
 0x1aa   : > { %1234 = vpow2.f32 %v580_v11  ;;  %617 = vadd.xlane.f32.xlu0 %v616_v40  ;;  %v606_v32 = vmul.f32 %v1233_v43, %v598_v17  ;;  %v657_v11 = vld [vmem:[#allocation4 + $0x30] sm:$0xff]  ;;  %v601_v17 = vld [vmem:[#allocation3 + $0x38] sm:$0xff] }
 0x1ab   : > { %v745_v14 = vunpack.c.l.b16 %v709_v35  ;;  %681 = vperm.xlu1 %1215, %v1233_v43   ;;  %1236 = vpow2.f32 %v518_v19 }
 0x1ac   : > { %1238 = vpow2.f32 %v526_v6 }
 0x1ad   : > { %v747_v15 = vpack.c.b16 %v746_v12, %v745_v14  ;;  %1240 = vpow2.f32 %v520_v33  ;;  %v1535_v57 = vpop.permute.xlu1 %661  ;;  %v595_v12 = vld [vmem:[#allocation3 + $0x8] sm:$0xff] }
 0x1ae   : > { %1242 = vpow2.f32 %v524_v34 }
 0x1af   : > { %1154 = vmatmul.msk.bf16.vlgmr.msrb.gmra.mxu1 %vm473_vm2, %v747_v15  ;;  %1244 = vpow2.f32 %v528_v45  ;;  %v654_v45 = vld [vmem:[#allocation4 + $0x18] sm:$0xff] }
 0x1b0   : > { %v1235_v27 = vpop.eup %1234 }
 0x1b1   : > { %v708_v20 = vpack.c.bf16 %v1235_v27, %v1235_v27  ;;  %v613_v29 = vsel %vm473_vm2, %v1235_v27, 0.0  ;;  %v1237_v16 = vpop.eup %1236 }
 0x1b2   : > { %629 = vadd.xlane.f32.xlu0 %v628_v23  ;;  %v1239_v31 = vpop.eup %1238  ;;  %v604_v59 = vmul.f32 %v1237_v16, %v596_v51 }
 0x1b3   : > { %v718_v26 = vunpack.c.l.b16 %v708_v20  ;;  %v1241_v30 = vpop.eup %1240  ;;  %v608_v9 = vmul.f32 %v1239_v31, %v600_v7 }
 0x1b4   : > { %v1243_v41 = vpop.eup %1242  ;;  %v605_v53 = vmul.f32 %v1241_v30, %v597_v47 }
 0x1b5   : > { %v719_v28 = vpack.c.b16 %v718_v26, %v717_v24  ;;  %v1530_v49 = vpop.eup %1244  ;;  %v607_v42 = vmul.f32 %v1243_v41, %v599_v0 }
 0x1b7   : > { %1149 = vmatmul.msk.bf16.vlgmr.msrb.gmra.mxu0 %vm473_vm2, %v719_v28 }
 0x1ba   : > { %614 = vadd.xlane.f32.xlu0 %v613_v29  ;;  %v651_v29 = vld [vmem:[#allocation4] sm:$0xff] }
 0x1bc   : > { %671 = vperm.xlu2 %1214, %v1237_v16   ;;  %v699_v16 = vmul.f32 %v1535_v57, %v651_v29  ;;  %v656_v57 = vld [vmem:[#allocation4 + $0x28] sm:$0xff] }
 0x1c4   : > { %691 = vperm.xlu2 %1214, %v1239_v31  }
 0x1ce   : > { %676 = vperm.xlu0 %1213, %v1241_v30  }
 0x1d5   : > { %632 = vadd.xlane.f32.xlu1 %v631_v36 }
 0x1d6   : > { %686 = vperm.xlu0 %1213, %v1243_v41  }
 0x1ee   : > { %696 = vperm.xlu1 %1215, %v1530_v49  }
 0x1f6   : > { %v612_v50 = vpop.xlane.xlu2 %611 }
 0x1f7   : > { %v634_v54 = vadd.f32 %v612_v50, %v602_v46 }
 0x1f9   : > { %643 = vst.msk [vmem:[#allocation3] sm:$0xff] %vm294_vm1, %v634_v54 }
 0x200   : > { %v862_v30 = vld [vmem:[#allocation3] sm:$0xff] }
 0x205   : > { %v624_v22 = vpop.xlane.xlu1 %623 }
 0x206   : > { %v638_v37 = vadd.f32 %v624_v22, %v606_v32  ;;  %v609_v32 = vmul.f32 %v1530_v49, %v601_v17 }
 0x208   : > { %647 = vst.msk [vmem:[#allocation3 + $0x20] sm:$0xff] %vm294_vm1, %v638_v37 }
 0x20f   : > { %v621_v56 = vpop.xlane.xlu2 %620  ;;  %v866_v38 = vld [vmem:[#allocation3 + $0x20] sm:$0xff] }
 0x210   : > { %v637_v39 = vadd.f32 %v621_v56, %v605_v53  ;;  %1246 = vrcp.f32 %v866_v38 }
 0x212   : > { %646 = vst.msk [vmem:[#allocation3 + $0x18] sm:$0xff] %vm294_vm1, %v637_v39 }
 0x216   : > { %v1247_v21 = vpop.eup %1246 }
 0x217   : > { %900 = vperm.xlu1 %1215, %v1247_v21   ;;  %v627_v44 = vpop.xlane.xlu2 %626 }
 0x218   : > { %v639_v48 = vadd.f32 %v627_v44, %v607_v42  ;;  %v658_v42 = vld [vmem:[#allocation4 + $0x38] sm:$0xff] }
 0x219   : > { %v865_v52 = vld [vmem:[#allocation3 + $0x18] sm:$0xff] }
 0x21a   : > { %648 = vst.msk [vmem:[#allocation3 + $0x28] sm:$0xff] %vm294_vm1, %v639_v48  ;;  %1248 = vrcp.f32 %v865_v52 }
 0x21b   : > { %1250 = vpow2.f32 %v516_v2 }
 0x21d   : > { %v618_v62 = vpop.xlane.xlu0 %617  ;;  %v682_v1 = vpop.permute.xlu1 %681 }
 0x21e   : > { %v636_v25 = vadd.f32 %v618_v62, %v604_v59  ;;  %v703_v5 = vmul.f32 %v682_v1, %v655_v63 }
 0x21f   : > { %v672_v3 = vpop.permute.xlu2 %671 }
 0x220   : > { %v1249_v4 = vpop.eup %1248  ;;  %645 = vst.msk [vmem:[#allocation3 + $0x10] sm:$0xff] %vm294_vm1, %v636_v25  ;;  %v701_v15 = vmul.f32 %v672_v3, %v653_v58 }
 0x221   : > { %895 = vperm.xlu2 %1214, %v1249_v4   ;;  %v1251_v61 = vpop.eup %1250  ;;  %v867_v20 = vld [vmem:[#allocation3 + $0x28] sm:$0xff] }
 0x222   : > { %v794_v8 = vpop.f32.mrf.mxu2  ;;  %v603_v19 = vmul.f32 %v1251_v61, %v595_v12 }
 0x223   : > { %v831_v13 = vadd.f32 %v794_v8, %v703_v5 }
 0x225   : > { %839 = vst.msk [vmem:[#allocation4 + $0x20] sm:$0xff] %vm311_vm0, %v831_v13  ;;  %v630_v10 = vpop.xlane.xlu0 %629 }
 0x226   : > { %v640_v35 = vadd.f32 %v630_v10, %v608_v9 }
 0x227   : > { %v692_v40 = vpop.permute.xlu2 %691  ;;  %v864_v43 = vld [vmem:[#allocation3 + $0x10] sm:$0xff] }
 0x228   : > { %649 = vst.msk [vmem:[#allocation3 + $0x30] sm:$0xff] %vm294_vm1, %v640_v35  ;;  %v705_v60 = vmul.f32 %v692_v40, %v657_v11  ;;  %1252 = vrcp.f32 %v864_v43 }
 0x229   : > { %1254 = vrcp.f32 %v867_v20 }
 0x22a   : > { %v822_v14 = vpop.f32.mrf.mxu3  ;;  %v796_v56 = vpop.f32.mrf.mxu2 }
 0x22b   : > { %v833_v18 = vadd.f32 %v822_v14, %v705_v60 }
 0x22c   : > { %v766_v27 = vpop.f32.mrf.mxu1  ;;  %v858_v1 = vld [vmem:[#allocation4 + $0x20] sm:$0xff] }
 0x22d   : > { %841 = vst.msk [vmem:[#allocation4 + $0x30] sm:$0xff] %vm311_vm0, %v833_v18  ;;  %v829_v23 = vadd.f32 %v766_v27, %v701_v15  ;;  %v615_v24 = vpop.xlane.xlu0 %614  ;;  %v652_v18 = vld [vmem:[#allocation4 + $0x8] sm:$0xff] }
 0x22e   : > { %v1253_v26 = vpop.eup %1252  ;;  %v635_v28 = vadd.f32 %v615_v24, %v603_v19 }
 0x22f   : > { %837 = vst.msk [vmem:[#allocation4 + $0x10] sm:$0xff] %vm311_vm0, %v829_v23  ;;  %890 = vperm.xlu0 %1213, %v1253_v26   ;;  %v868_v6 = vld [vmem:[#allocation3 + $0x30] sm:$0xff]  ;;  %v1255_v33 = vpop.eup %1254 }
 0x230   : > { %644 = vst.msk [vmem:[#allocation3 + $0x8] sm:$0xff] %vm294_vm1, %v635_v28  ;;  %1256 = vrcp.f32 %v868_v6 }
 0x231   : > { %1258 = vrcp.f32 %v862_v30 }
 0x232   : > { %v824_v51 = vpop.f32.mrf.mxu3 }
 0x234   : > { %v738_v31 = vpop.f32.mrf.mxu0  ;;  %v768_v50 = vpop.f32.mrf.mxu1  ;;  %v860_v5 = vld [vmem:[#allocation4 + $0x30] sm:$0xff] }
 0x235   : > { %v827_v34 = vadd.f32 %v738_v31, %v699_v16 }
 0x236   : > { %v1257_v36 = vpop.eup %1256  ;;  %v856_v43 = vld [vmem:[#allocation4 + $0x10] sm:$0xff] }
 0x237   : > { %835 = vst.msk [vmem:[#allocation4] sm:$0xff] %vm311_vm0, %v827_v34  ;;  %910 = vperm.xlu2 %1214, %v1257_v36   ;;  %905 = vperm.xlu0 %1213, %v1255_v33   ;;  %v1259_v41 = vpop.eup %1258  ;;  %v863_v0 = vld [vmem:[#allocation3 + $0x8] sm:$0xff] }
 0x23c   : > { %v740_v20 = vpop.f32.mrf.mxu0 }
 0x23e   : > { %v854_v9 = vld [vmem:[#allocation4] sm:$0xff] }
 0x23f   : > { %880 = vperm.xlu2 %1214, %v1259_v41   ;;  %666 = vperm.xlu0 %1213, %v1251_v61  }
 0x240   : > { %v677_v55 = vpop.permute.xlu0 %676 }
 0x241   : > { %v702_v46 = vmul.f32 %v677_v55, %v654_v45 }
 0x243   : > { %v830_v54 = vadd.f32 %v768_v50, %v702_v46 }
 0x245   : > { %838 = vst.msk [vmem:[#allocation4 + $0x18] sm:$0xff] %vm311_vm0, %v830_v54 }
 0x248   : > { %v633_v22 = vpop.xlane.xlu1 %632  ;;  %v687_v37 = vpop.permute.xlu0 %686 }
 0x249   : > { %v641_v47 = vadd.f32 %v633_v22, %v609_v32  ;;  %v704_v53 = vmul.f32 %v687_v37, %v656_v57 }
 0x24b   : > { %650 = vst.msk [vmem:[#allocation3 + $0x38] sm:$0xff] %vm294_vm1, %v641_v47  ;;  %v832_v38 = vadd.f32 %v796_v56, %v704_v53 }
 0x24c   : > { %v857_v59 = vld [vmem:[#allocation4 + $0x18] sm:$0xff] }
 0x24d   : > { %840 = vst.msk [vmem:[#allocation4 + $0x28] sm:$0xff] %vm311_vm0, %v832_v38 }
 0x252   : > { %v869_v39 = vld [vmem:[#allocation3 + $0x38] sm:$0xff] }
 0x253   : > { %1260 = vrcp.f32 %v869_v39 }
 0x254   : > { %1262 = vrcp.f32 %v863_v0  ;;  %v859_v61 = vld [vmem:[#allocation4 + $0x28] sm:$0xff] }
 0x259   : > { %v1261_v21 = vpop.eup %1260 }
 0x25a   : > { %915 = vperm.xlu1 %1215, %v1261_v21   ;;  %v1263_v48 = vpop.eup %1262 }
 0x260   : > { %v697_v44 = vpop.permute.xlu1 %696 }
 0x261   : > { %v706_v49 = vmul.f32 %v697_v44, %v658_v42 }
 0x262   : > { %885 = vperm.xlu1 %1215, %v1263_v48  }
 0x263   : > { %v834_v52 = vadd.f32 %v824_v51, %v706_v49 }
 0x265   : > { %842 = vst.msk [vmem:[#allocation4 + $0x38] sm:$0xff] %vm311_vm0, %v834_v52 }
 0x26c   : > { %v861_v26 = vld [vmem:[#allocation4 + $0x38] sm:$0xff] }
 0x27b   : > { %v896_v62 = vpop.permute.xlu2 %895 }
 0x27c   : > { %v921_v25 = vmul.f32 %v896_v62, %v857_v59 }
 0x27e   : > { %v932_v63 = vpack.c.bf16 %v921_v25, %v921_v25 }
 0x280   : > { %937 = vrot.lane.b32.xlu2 %v932_v63, %s1291_s26 }
 0x289   : > { %v901_v2 = vpop.permute.xlu1 %900 }
 0x28a   : > { %v922_v3 = vmul.f32 %v901_v2, %v858_v1 }
 0x28c   : > { %v944_v4 = vpack.c.bf16 %v922_v3, %v922_v3 }
 0x28e   : > { %948 = vrot.lane.b32.xlu1 %v944_v4, %s1292_s27 }
 0x291   : > { %v911_v7 = vpop.permute.xlu2 %910 }
 0x292   : > { %v924_v8 = vmul.f32 %v911_v7, %v860_v5 }
 0x294   : > { %v957_v13 = vpack.c.bf16 %v924_v8, %v924_v8 }
 0x296   : > { %961 = vrot.lane.b32.xlu2 %v957_v13, %s1293_s28 }
 0x299   : > { %v881_v10 = vpop.permute.xlu2 %880 }
 0x29a   : > { %v918_v11 = vmul.f32 %v881_v10, %v854_v9 }
 0x29c   : > { %v926_v35 = vpack.c.bf16 %v918_v11, %v918_v11 }
 0x29e   : > { %929 = vst.msk [vmem:[%s1560_s5] sm:$0xf] %vm928_vm3, %v926_v35 }
 0x2a1   : > { %v891_v40 = vpop.permute.xlu0 %890 }
 0x2a2   : > { %v920_v58 = vmul.f32 %v891_v40, %v856_v43 }
 0x2a4   : > { %v931_v60 = vpack.c.bf16 %v920_v58, %v920_v58 }
 0x2a6   : > { %935 = vrot.lane.b32.xlu0 %v931_v60, %s1291_s26 }
 0x2a9   : > { %v906_v12 = vpop.permute.xlu0 %905 }
 0x2aa   : > { %v923_v14 = vmul.f32 %v906_v12, %v859_v61 }
 0x2ac   : > { %v945_v15 = vpack.c.bf16 %v923_v14, %v923_v14 }
 0x2ae   : > { %950 = vrot.lane.b32.xlu0 %v945_v15, %s1292_s27 }
 0x2b1   : > { %v667_v27 = vpop.permute.xlu0 %666 }
 0x2b2   : > { %v700_v19 = vmul.f32 %v667_v27, %v652_v18 }
 0x2b4   : > { %v828_v23 = vadd.f32 %v740_v20, %v700_v19 }
 0x2b6   : > { %836 = vst.msk [vmem:[#allocation4 + $0x8] sm:$0xff] %vm311_vm0, %v828_v23 }
 0x2bd   : > { %v855_v16 = vld [vmem:[#allocation4 + $0x8] sm:$0xff] }
 0x2cc   : > { %v916_v24 = vpop.permute.xlu1 %915 }
 0x2cd   : > { %v925_v28 = vmul.f32 %v916_v24, %v861_v26 }
 0x2cf   : > { %v958_v6 = vpack.c.bf16 %v925_v28, %v925_v28 }
 0x2d1   : > { %963 = vrot.lane.b32.xlu1 %v958_v6, %s1293_s28 }
 0x2d4   : > { %v886_v29 = vpop.permute.xlu1 %885 }
 0x2d5   : > { %v919_v31 = vmul.f32 %v886_v29, %v855_v16 }
 0x2d7   : > { %v927_v33 = vpack.c.bf16 %v919_v31, %v919_v31 }
 0x2d9   : > { %930 = vst.msk [vmem:[%s1560_s5 + $0x4] sm:$0xf] %vm928_vm3, %v927_v33 }
 0x2da   : > { %v938_v34 = vpop.permute.xlu2 %937 }
 0x2db   : > { %943 = vst.msk [vmem:[%s1560_s5 + $0x4] sm:$0xf] %vm941_vm4, %v938_v34 }
 0x2f0   : > { %v962_v41 = vpop.permute.xlu2 %961 }
 0x300   : > { %v949_v36 = vpop.permute.xlu1 %948 }
 0x318   : > { %v936_v30 = vpop.permute.xlu0 %935 }
 0x319   : > { %942 = vst.msk [vmem:[%s1560_s5] sm:$0xf] %vm941_vm4, %v936_v30 }
 0x31a   : > { %955 = vst.msk [vmem:[%s1560_s5] sm:$0xf] %vm954_vm5, %v949_v36 }
 0x31b   : > { %968 = vst.msk [vmem:[%s1560_s5] sm:$0xf] %vm967_vm6, %v962_v41 }
 0x320   : > { %v951_v45 = vpop.permute.xlu0 %950 }
 0x321   : > { %956 = vst.msk [vmem:[%s1560_s5 + $0x4] sm:$0xf] %vm954_vm5, %v951_v45 }
 0x343   : > { %v964_v55 = vpop.permute.xlu1 %963 }
 0x344   : > { %969 = vst.msk [vmem:[%s1560_s5 + $0x4] sm:$0xf] %vm967_vm6, %v964_v55 }
 0x345 PF: > { %s13_s14 = sadd.s32 1, %s1286_s14   ;;  %s1586_s12 = smov %s1282_s13 }
 0x346   : > { %p10_p5 = scmp.ge.s32.totalorder %s13_s14, 4   ;;  %s1587_s13 = smov %s1589_s15 }
 0x348   :  { %12 = sbr.rel (!%p10_p5) target bundleno = 2 (0x2), region = 76 }

// kernel: transformer_block.9
= control target key start
LH: loop header
LB: loop body
LE: loop exit
PB: predicated region body
PF: predicated region fallthrough
CT: control target
= control target key end

     0   :  { %s1146_s0 = inlined_call_operand.vmem [shape: bf16[32,512], index: 0, kind: input, shape index: {}]   ;;  %s1147_s1 = inlined_call_operand.vmem [shape: bf16[512,128], index: 1, kind: input, shape index: {}]   ;;  %s1148_s2 = inlined_call_operand.vmem [shape: f32[1,128], index: 2, kind: input, shape index: {}]   ;;  %s1149_s3 = inlined_call_operand.vmem [shape: f32[32,128], index: 3, kind: input, shape index: {}]   ;;  %s1150_s4 = inlined_call_operand.vmem [shape: f32[1,128], index: 4, kind: input, shape index: {}]   ;;  %s1151_s5 = inlined_call_operand.vmem [shape: f32[1,128], index: 5, kind: input, shape index: {}]   ;;  %s1152_s6 = inlined_call_operand.hbm [shape: f32[32,128], index: 6, kind: output, shape index: {}]  }
   0x1   :  { %v818_v0 = vld [vmem:[%s1147_s1 + $0x38] sm:$0xff]  ;;  %v817_v4 = vld [vmem:[%s1147_s1 + $0x30] sm:$0xff]  ;;  %v816_v8 = vld [vmem:[%s1147_s1 + $0x28] sm:$0xff] }
   0x2   :  { %v826_v1 = vld [vmem:[%s1147_s1 + $0x78] sm:$0xff]  ;;  %340 = vmatpush.bf16.msra.mxu0 %v818_v0  ;;  %v825_v5 = vld [vmem:[%s1147_s1 + $0x70] sm:$0xff]  ;;  %v824_v9 = vld [vmem:[%s1147_s1 + $0x68] sm:$0xff] }
   0x3   :  { %v834_v2 = vld [vmem:[%s1147_s1 + $0xb8] sm:$0xff]  ;;  %359 = vmatpush.bf16.msra.mxu1 %v826_v1  ;;  %v833_v6 = vld [vmem:[%s1147_s1 + $0xb0] sm:$0xff]  ;;  %v832_v10 = vld [vmem:[%s1147_s1 + $0xa8] sm:$0xff] }
   0x4   :  { %v842_v3 = vld [vmem:[%s1147_s1 + $0xf8] sm:$0xff]  ;;  %378 = vmatpush.bf16.msra.mxu2 %v834_v2  ;;  %v841_v7 = vld [vmem:[%s1147_s1 + $0xf0] sm:$0xff]  ;;  %v840_v11 = vld [vmem:[%s1147_s1 + $0xe8] sm:$0xff] }
   0x5   :  { %397 = vmatpush.bf16.msra.mxu3 %v842_v3  ;;  %v815_v12 = vld [vmem:[%s1147_s1 + $0x20] sm:$0xff]  ;;  %v814_v16 = vld [vmem:[%s1147_s1 + $0x18] sm:$0xff] }
   0x6   :  { %341 = vmatpush.bf16.msra.mxu0 %v817_v4  ;;  %v823_v13 = vld [vmem:[%s1147_s1 + $0x60] sm:$0xff]  ;;  %v822_v17 = vld [vmem:[%s1147_s1 + $0x58] sm:$0xff] }
   0x7   :  { %360 = vmatpush.bf16.msra.mxu1 %v825_v5  ;;  %v831_v14 = vld [vmem:[%s1147_s1 + $0xa0] sm:$0xff] }
   0x8   :  { %379 = vmatpush.bf16.msra.mxu2 %v833_v6  ;;  %v839_v15 = vld [vmem:[%s1147_s1 + $0xe0] sm:$0xff] }
   0x9   :  { %398 = vmatpush.bf16.msra.mxu3 %v841_v7 }
   0xa   :  { %342 = vmatpush.bf16.msra.mxu0 %v816_v8 }
   0xb   :  { %361 = vmatpush.bf16.msra.mxu1 %v824_v9 }
   0xc   :  { %380 = vmatpush.bf16.msra.mxu2 %v832_v10 }
   0xd   :  { %399 = vmatpush.bf16.msra.mxu3 %v840_v11 }
   0xe   :  { %343 = vmatpush.bf16.msra.mxu0 %v815_v12 }
   0xf   :  { %362 = vmatpush.bf16.msra.mxu1 %v823_v13 }
  0x10   :  { %11 = vsyncpa [#allocation4], 0  ;;  %381 = vmatpush.bf16.msra.mxu2 %v831_v14  ;;  %v830_v18 = vld [vmem:[%s1147_s1 + $0x98] sm:$0xff]  ;;  %v813_v20 = vld [vmem:[%s1147_s1 + $0x10] sm:$0xff]  ;;  %s631_s8 = sshll.u32 %s1152_s6, 4  ;;  %s900_s9 = smov 128   ;;  %s632_s8 = int_to_ptr.hbm [resolvable:$true] %s631_s8 }
  0x11   :  { %400 = vmatpush.bf16.msra.mxu3 %v839_v15  ;;  %v838_v19 = vld [vmem:[%s1147_s1 + $0xd8] sm:$0xff]  ;;  %v821_v21 = vld [vmem:[%s1147_s1 + $0x50] sm:$0xff]  ;;  %v812_v24 = vld [vmem:[%s1147_s1 + $0x8] sm:$0xff]  ;;  %s901_s10 = smov 8  }
  0x12   :  { %344 = vmatpush.bf16.msra.mxu0 %v814_v16  ;;  %v829_v22 = vld [vmem:[%s1147_s1 + $0x90] sm:$0xff]  ;;  %v820_v25 = vld [vmem:[%s1147_s1 + $0x48] sm:$0xff]  ;;  %v811_v28 = vld [vmem:[%s1147_s1] sm:$0xff] }
  0x13   :  { %363 = vmatpush.bf16.msra.mxu1 %v822_v17  ;;  %v837_v23 = vld [vmem:[%s1147_s1 + $0xd0] sm:$0xff]  ;;  %v828_v26 = vld [vmem:[%s1147_s1 + $0x88] sm:$0xff]  ;;  %v819_v29 = vld [vmem:[%s1147_s1 + $0x40] sm:$0xff] }
  0x14   :  { %382 = vmatpush.bf16.msra.mxu2 %v830_v18  ;;  %v836_v27 = vld [vmem:[%s1147_s1 + $0xc8] sm:$0xff]  ;;  %v827_v30 = vld [vmem:[%s1147_s1 + $0x80] sm:$0xff]  ;;  %v805_v33 = vld [vmem:[%s1146_s0 + $0xc] sm:$0xf0] }
  0x15   :  { %401 = vmatpush.bf16.msra.mxu3 %v838_v19  ;;  %v835_v31 = vld [vmem:[%s1147_s1 + $0xc0] sm:$0xff]  ;;  %v647_v35 = vld [vmem:[%s1146_s0 + $0x10] sm:$0xf0]  ;;  %v653_v36 = vld [vmem:[%s1146_s0 + $0x8] sm:$0xf] }
  0x16   :  { %345 = vmatpush.bf16.msra.mxu0 %v813_v20  ;;  %v645_v32 = vld [vmem:[%s1146_s0] sm:$0xf]  ;;  %v803_v34 = vld [vmem:[%s1146_s0 + $0x4] sm:$0xf]  ;;  %v806_v37 = vld [vmem:[%s1146_s0 + $0x14] sm:$0xf0] }
  0x17   :  { %364 = vmatpush.bf16.msra.mxu1 %v821_v21  ;;  %v804_v38 = vld [vmem:[%s1146_s0 + $0xc] sm:$0xf]  ;;  %v655_v39 = vld [vmem:[%s1146_s0 + $0x18] sm:$0xf0]  ;;  %v646_v40 = vor.u32 %v805_v33, %v645_v32  ;;  %v650_v41 = vor.u32 %v803_v34, %v647_v35  ;;  %v654_v42 = vor.u32 %v806_v37, %v653_v36  ;;  %v661_v44 = vld [vmem:[%s1146_s0 + $0x20] sm:$0xf] }
  0x18   :  { %383 = vmatpush.bf16.msra.mxu2 %v829_v22  ;;  %v658_v43 = vor.u32 %v804_v38, %v655_v39  ;;  %v809_v45 = vld [vmem:[%s1146_s0 + $0x2c] sm:$0xf0]  ;;  %v807_v46 = vld [vmem:[%s1146_s0 + $0x24] sm:$0xf]  ;;  %v663_v47 = vld [vmem:[%s1146_s0 + $0x30] sm:$0xf0] }
  0x19   :  { %402 = vmatpush.bf16.msra.mxu3 %v837_v23  ;;  %v669_v48 = vld [vmem:[%s1146_s0 + $0x28] sm:$0xf]  ;;  %v810_v49 = vld [vmem:[%s1146_s0 + $0x34] sm:$0xf0]  ;;  %v808_v50 = vld [vmem:[%s1146_s0 + $0x2c] sm:$0xf]  ;;  %v662_v52 = vor.u32 %v809_v45, %v661_v44  ;;  %v666_v53 = vor.u32 %v807_v46, %v663_v47 }
  0x1a   :  { %346 = vmatpush.bf16.msra.mxu0 %v812_v24  ;;  %v671_v51 = vld [vmem:[%s1146_s0 + $0x38] sm:$0xf0]  ;;  %v670_v54 = vor.u32 %v810_v49, %v669_v48  ;;  %v427_v0 = vld [vmem:[%s1149_s3] sm:$0xff]  ;;  %v428_v9 = vld [vmem:[%s1149_s3 + $0x8] sm:$0xff]  ;;  %v897_v33 = vmov 128.0  }
  0x1b   :  { %365 = vmatpush.bf16.msra.mxu1 %v820_v25  ;;  %v674_v55 = vor.u32 %v808_v50, %v671_v51  ;;  %v848_v2 = vld [vmem:[%s1148_s2] ss:$0 sm:$0xff]  ;;  %v429_v19 = vld [vmem:[%s1149_s3 + $0x10] sm:$0xff]  ;;  %851 = vrcp.f32 %v897_v33 }
  0x1c   :  { %384 = vmatpush.bf16.msra.mxu2 %v828_v26 }
  0x1d   :  { %403 = vmatpush.bf16.msra.mxu3 %v836_v27 }
  0x1e   :  { %347 = vmatpush.bf16.msra.mxu0 %v811_v28 }
  0x1f   :  { %366 = vmatpush.bf16.msra.mxu1 %v819_v29  ;;  %v430_v29 = vld [vmem:[%s1149_s3 + $0x18] sm:$0xff] }
  0x20   :  { %385 = vmatpush.bf16.msra.mxu2 %v827_v30 }
  0x21   :  { %404 = vmatpush.bf16.msra.mxu3 %v835_v31  ;;  %348 = vmatmul.bf16.vlgmr.msra.gmra.mxu0 %v646_v40  ;;  %v852_v34 = vpop.eup %851 }
  0x22   :  { %367 = vmatmul.bf16.vlgmr.msra.gmra.mxu1 %v650_v41  ;;  %v456_v35 = vmul.f32 128.0, %v852_v34  ;;  %vm460_vm0 = vweird.f32 %v852_v34 }
  0x23   :  { %386 = vmatmul.bf16.vlgmr.msra.gmra.mxu2 %v654_v42 }
  0x24   :  { %405 = vmatmul.bf16.vlgmr.msra.gmra.mxu3 %v658_v43  ;;  %v457_v36 = vsub.f32 1.0, %v456_v35 }
  0x26   :  { %v458_v37 = vmul.f32 %v852_v34, %v457_v36 }
  0x28   :  { %v459_v38 = vadd.f32 %v852_v34, %v458_v37 }
  0x2a   :  { %v461_v39 = vsel %vm460_vm0, %v852_v34, %v459_v38 }
  0x31   :  { %353 = vmatmul.bf16.gmra.mxu0 %v662_v52 }
  0x32   :  { %372 = vmatmul.bf16.gmra.mxu1 %v666_v53 }
  0x33   :  { %391 = vmatmul.bf16.gmra.mxu2 %v670_v54 }
  0x34   :  { %410 = vmatmul.bf16.gmra.mxu3 %v674_v55 }
  0x9e   :  { %v349_v56 = vpop.f32.mrf.mxu0 }
  0x9f   :  { %v368_v57 = vpop.f32.mrf.mxu1 }
  0xa0   :  { %v369_v58 = vadd.f32 %v368_v57, %v349_v56  ;;  %v898_v56 = vmov 127.0  }
  0xa1   :  { %853 = vrcp.f32 %v898_v56 }
  0xa6   :  { %v387_v59 = vpop.f32.mrf.mxu2  ;;  %v351_v62 = vpop.f32.mrf.mxu0 }
  0xa7   :  { %v406_v60 = vpop.f32.mrf.mxu3  ;;  %v388_v61 = vadd.f32 %v387_v59, %v369_v58  ;;  %v370_v63 = vpop.f32.mrf.mxu1 }
  0xa8   :  { %v371_v4 = vadd.f32 %v370_v63, %v351_v62  ;;  %v854_v57 = vpop.eup %853 }
  0xa9   :  { %v407_v1 = vadd.f32 %v406_v60, %v388_v61  ;;  %v483_v58 = vmul.f32 127.0, %v854_v57  ;;  %vm487_vm1 = vweird.f32 %v854_v57 }
  0xab   :  { %v435_v3 = vadd.f32 %v427_v0, %v407_v1  ;;  %v484_v59 = vsub.f32 1.0, %v483_v58 }
  0xad   :  { %v443_v5 = vadd.f32 %v848_v2, %v435_v3  ;;  %v485_v60 = vmul.f32 %v854_v57, %v484_v59 }
  0xae   :  { %v389_v6 = vpop.f32.mrf.mxu2  ;;  %v354_v10 = vpop.f32.mrf.mxu0 }
  0xaf   :  { %v408_v7 = vpop.f32.mrf.mxu3  ;;  %v390_v8 = vadd.f32 %v389_v6, %v371_v4  ;;  %447 = vadd.xlane.f32.xlu0 %v443_v5  ;;  %v373_v11 = vpop.f32.mrf.mxu1  ;;  %v486_v61 = vadd.f32 %v854_v57, %v485_v60 }
  0xb0   :  { %v374_v14 = vadd.f32 %v373_v11, %v354_v10 }
  0xb1   :  { %v409_v12 = vadd.f32 %v408_v7, %v390_v8  ;;  %v488_v62 = vsel %vm487_vm1, %v854_v57, %v486_v61 }
  0xb3   :  { %v436_v13 = vadd.f32 %v428_v9, %v409_v12 }
  0xb5   :  { %v444_v15 = vadd.f32 %v848_v2, %v436_v13 }
  0xb6   :  { %v392_v16 = vpop.f32.mrf.mxu2  ;;  %v356_v21 = vpop.f32.mrf.mxu0 }
  0xb7   :  { %v411_v17 = vpop.f32.mrf.mxu3  ;;  %v393_v18 = vadd.f32 %v392_v16, %v374_v14  ;;  %449 = vadd.xlane.f32.xlu0 %v444_v15  ;;  %v375_v22 = vpop.f32.mrf.mxu1 }
  0xb8   :  { %v376_v24 = vadd.f32 %v375_v22, %v356_v21 }
  0xb9   :  { %v412_v20 = vadd.f32 %v411_v17, %v393_v18 }
  0xbb   :  { %v437_v23 = vadd.f32 %v429_v19, %v412_v20 }
  0xbd   :  { %v445_v25 = vadd.f32 %v848_v2, %v437_v23 }
  0xbe   :  { %v394_v26 = vpop.f32.mrf.mxu2 }
  0xbf   :  { %v395_v27 = vadd.f32 %v394_v26, %v376_v24  ;;  %451 = vadd.xlane.f32.xlu1 %v445_v25  ;;  %v413_v28 = vpop.f32.mrf.mxu3 }
  0xc1   :  { %v414_v30 = vadd.f32 %v413_v28, %v395_v27 }
  0xc3   :  { %v438_v31 = vadd.f32 %v430_v29, %v414_v30 }
  0xc5   :  { %v446_v32 = vadd.f32 %v848_v2, %v438_v31 }
  0xc7   :  { %453 = vadd.xlane.f32.xlu1 %v446_v32 }
 0x122   :  { %v448_v40 = vpop.xlane.xlu0 %447 }
 0x123   :  { %v462_v41 = vmul.f32 %v461_v39, %v448_v40 }
 0x125   :  { %v1096_v42 = vsub.f32 %v443_v5, %v462_v41 }
 0x127   :  { %v470_v43 = vmul.f32 %v1096_v42, %v1096_v42 }
 0x129   :  { %474 = vadd.xlane.f32.xlu2 %v470_v43 }
 0x12a   :  { %v450_v44 = vpop.xlane.xlu0 %449 }
 0x12b   :  { %v463_v45 = vmul.f32 %v461_v39, %v450_v44  ;;  %v1119_v44 = vld [vmem:[%s1150_s4] ss:$0 sm:$0xff] }
 0x12c   :  { %v605_v59 = vmul.f32 %v1119_v44, %v1096_v42 }
 0x12d   :  { %v1100_v46 = vsub.f32 %v444_v15, %v463_v45 }
 0x12f   :  { %v471_v47 = vmul.f32 %v1100_v46, %v1100_v46 }
 0x131   :  { %476 = vadd.xlane.f32.xlu2 %v471_v47 }
 0x132   :  { %v452_v48 = vpop.xlane.xlu1 %451 }
 0x133   :  { %v464_v49 = vmul.f32 %v461_v39, %v452_v48 }
 0x135   :  { %v1104_v50 = vsub.f32 %v445_v25, %v464_v49 }
 0x137   :  { %v472_v51 = vmul.f32 %v1104_v50, %v1104_v50 }
 0x139   :  { %478 = vadd.xlane.f32.xlu0 %v472_v51 }
 0x13a   :  { %v454_v52 = vpop.xlane.xlu1 %453 }
 0x13b   :  { %v465_v53 = vmul.f32 %v461_v39, %v454_v52 }
 0x13d   :  { %v1108_v54 = vsub.f32 %v446_v32, %v465_v53 }
 0x13f   :  { %v473_v55 = vmul.f32 %v1108_v54, %v1108_v54 }
 0x141   :  { %480 = vadd.xlane.f32.xlu1 %v473_v55 }
 0x19c   :  { %v475_v63 = vpop.xlane.xlu2 %474 }
 0x19d   :  { %v489_v0 = vmul.f32 %v488_v62, %v475_v63 }
 0x19f   :  { %855 = vrsqrt.f32 %v489_v0  ;;  %vm500_vm2 = vcmp.eq.f32.partialorder %v489_v0, inf  ;;  %v503_v15 = vand.u32 2147483648, %v489_v0  ;;  %vm502_vm3 = vcmp.eq.f32.partialorder %v489_v0, 0.0 }
 0x1a4   :  { %v477_v1 = vpop.xlane.xlu2 %476 }
 0x1a5   :  { %v856_v2 = vpop.eup %855  ;;  %v490_v3 = vmul.f32 %v488_v62, %v477_v1 }
 0x1a6   :  { %v494_v4 = vmul.f32 %v856_v2, %v489_v0 }
 0x1a7   :  { %857 = vrsqrt.f32 %v490_v3  ;;  %vm512_vm4 = vcmp.eq.f32.partialorder %v490_v3, inf  ;;  %v515_v28 = vand.u32 2147483648, %v490_v3  ;;  %vm514_vm5 = vcmp.eq.f32.partialorder %v490_v3, 0.0 }
 0x1a8   :  { %v495_v5 = vmul.f32 %v856_v2, %v494_v4 }
 0x1aa   :  { %v496_v6 = vmul.f32 0.5, %v495_v5 }
 0x1ac   :  { %v497_v7 = vsub.f32 1.5, %v496_v6  ;;  %v479_v8 = vpop.xlane.xlu0 %478 }
 0x1ad   :  { %v858_v9 = vpop.eup %857  ;;  %v491_v10 = vmul.f32 %v488_v62, %v479_v8 }
 0x1ae   :  { %v498_v11 = vmul.f32 %v856_v2, %v497_v7  ;;  %v506_v12 = vmul.f32 %v858_v9, %v490_v3 }
 0x1af   :  { %859 = vrsqrt.f32 %v491_v10  ;;  %vm524_vm6 = vcmp.eq.f32.partialorder %v491_v10, inf  ;;  %v527_v45 = vand.u32 2147483648, %v491_v10  ;;  %vm526_vm8 = vcmp.eq.f32.partialorder %v491_v10, 0.0 }
 0x1b0   :  { %v499_v13 = vmul.f32 %v498_v11, %v489_v0  ;;  %v507_v14 = vmul.f32 %v858_v9, %v506_v12 }
 0x1b2   :  { %v501_v16 = vsel %vm500_vm2, %v489_v0, %v499_v13  ;;  %v508_v17 = vmul.f32 0.5, %v507_v14  ;;  %v606_v14 = vmul.f32 %v1119_v44, %v1100_v46  ;;  %v607_v46 = vmul.f32 %v1119_v44, %v1104_v50 }
 0x1b3   :  { %v504_v18 = vsel %vm502_vm3, %v503_v15, %v501_v16  ;;  %v608_v50 = vmul.f32 %v1119_v44, %v1108_v54 }
 0x1b4   :  { %v541_v19 = vadd.f32 1e-06, %v504_v18  ;;  %v509_v20 = vsub.f32 1.5, %v508_v17  ;;  %v481_v21 = vpop.xlane.xlu1 %480 }
 0x1b5   :  { %v860_v22 = vpop.eup %859  ;;  %v1112_v23 = vmul.f32 %v488_v62, %v481_v21  ;;  %v1126_v62 = vld [vmem:[%s1151_s5] ss:$0 sm:$0xff]  ;;  %s899_s5 = smov [#allocation3]  }
 0x1b6   :  { %861 = vrcp.f32 %v541_v19  ;;  %v510_v24 = vmul.f32 %v858_v9, %v509_v20  ;;  %v518_v25 = vmul.f32 %v860_v22, %v491_v10  ;;  %v556_v43 = vand.u32 2147483648, %v541_v19  ;;  %s629_s29 = sshll.u32 %s899_s5, 4  ;;  %s630_s29 = int_to_ptr.vmem [resolvable:$true] %s629_s29 }
 0x1b7   :  { %863 = vrsqrt.f32 %v1112_v23  ;;  %v554_v48 = vand.u32 2147483647, %v541_v19  ;;  %vm550_vm9 = vweird.f32 %v541_v19  ;;  %vm536_vm12 = vcmp.eq.f32.partialorder %v1112_v23, inf }
 0x1b8   :  { %v511_v26 = vmul.f32 %v510_v24, %v490_v3  ;;  %v519_v27 = vmul.f32 %v860_v22, %v518_v25  ;;  %v557_v58 = vor.u32 1.1754944e-38, %v556_v43  ;;  %v539_v4 = vand.u32 2147483648, %v1112_v23 }
 0x1b9   :  { %vm555_vm11 = vcmp.eq.f32.partialorder %v554_v48, 8.507059e+37  ;;  %vm538_vm14 = vcmp.eq.f32.partialorder %v1112_v23, 0.0 }
 0x1ba   :  { %v513_v29 = vsel %vm512_vm4, %v490_v3, %v511_v26  ;;  %v520_v30 = vmul.f32 0.5, %v519_v27 }
 0x1bb   :  { %v516_v31 = vsel %vm514_vm5, %v515_v28, %v513_v29 }
 0x1bc   :  { %v862_v32 = vpop.eup %861  ;;  %v542_v33 = vadd.f32 1e-06, %v516_v31  ;;  %v521_v34 = vsub.f32 1.5, %v520_v30 }
 0x1bd   :  { %v864_v35 = vpop.eup %863  ;;  %v546_v36 = vmul.f32 %v862_v32, %v541_v19  ;;  %vm551_vm7 = vweird.f32 %v862_v32 }
 0x1be   :  { %865 = vrcp.f32 %v542_v33  ;;  %v522_v37 = vmul.f32 %v860_v22, %v521_v34  ;;  %v530_v38 = vmul.f32 %v864_v35, %v1112_v23  ;;  %vm552_vm10 = vmor %vm550_vm9, %vm551_vm7  ;;  %v570_v42 = vand.u32 2147483648, %v542_v33 }
 0x1bf   :  { %v547_v39 = vsub.f32 1.0, %v546_v36  ;;  %v568_v6 = vand.u32 2147483647, %v542_v33  ;;  %vm564_vm15 = vweird.f32 %v542_v33 }
 0x1c0   :  { %v523_v40 = vmul.f32 %v522_v37, %v491_v10  ;;  %v531_v41 = vmul.f32 %v864_v35, %v530_v38  ;;  %v571_v13 = vor.u32 1.1754944e-38, %v570_v42 }
 0x1c1   :  { %v548_v47 = vmul.f32 %v862_v32, %v547_v39  ;;  %vm569_vm1 = vcmp.eq.f32.partialorder %v568_v6, 8.507059e+37 }
 0x1c2   :  { %v525_v49 = vsel %vm524_vm6, %v491_v10, %v523_v40  ;;  %v532_v51 = vmul.f32 0.5, %v531_v41 }
 0x1c3   :  { %v528_v52 = vsel %vm526_vm8, %v527_v45, %v525_v49  ;;  %v549_v53 = vadd.f32 %v862_v32, %v548_v47 }
 0x1c4   :  { %v866_v55 = vpop.eup %865  ;;  %v543_v56 = vadd.f32 1e-06, %v528_v52  ;;  %v533_v57 = vsub.f32 1.5, %v532_v51 }
 0x1c5   :  { %v553_v60 = vsel %vm552_vm10, %v862_v32, %v549_v53  ;;  %v560_v61 = vmul.f32 %v866_v55, %v542_v33  ;;  %vm565_vm13 = vweird.f32 %v866_v55 }
 0x1c6   :  { %867 = vrcp.f32 %v543_v56  ;;  %v534_v63 = vmul.f32 %v864_v35, %v533_v57  ;;  %v558_v0 = vsel %vm555_vm11, %v557_v58, %v553_v60  ;;  %vm566_vm0 = vmor %vm564_vm15, %vm565_vm13  ;;  %v584_v20 = vand.u32 2147483648, %v543_v56 }
 0x1c7   :  { %v561_v1 = vsub.f32 1.0, %v560_v61  ;;  %v609_v2 = vmul.f32 %v605_v59, %v558_v0  ;;  %v582_v22 = vand.u32 2147483647, %v543_v56  ;;  %vm578_vm3 = vweird.f32 %v543_v56 }
 0x1c8   :  { %v535_v3 = vmul.f32 %v534_v63, %v1112_v23  ;;  %v585_v26 = vor.u32 1.1754944e-38, %v584_v20 }
 0x1c9   :  { %v562_v5 = vmul.f32 %v866_v55, %v561_v1  ;;  %v617_v7 = vadd.f32 %v1126_v62, %v609_v2  ;;  %vm583_vm5 = vcmp.eq.f32.partialorder %v582_v22, 8.507059e+37 }
 0x1ca   :  { %v537_v8 = vsel %vm536_vm12, %v1112_v23, %v535_v3 }
 0x1cb   :  { %v540_v9 = vsel %vm538_vm14, %v539_v4, %v537_v8  ;;  %v563_v10 = vadd.f32 %v866_v55, %v562_v5  ;;  %621 = vst [vmem:[#allocation3] sm:$0xff] %v617_v7 }
 0x1cc   :  { %v868_v11 = vpop.eup %867  ;;  %v544_v12 = vadd.f32 1e-06, %v540_v9 }
 0x1cd   :  { %v567_v15 = vsel %vm566_vm0, %v866_v55, %v563_v10  ;;  %v574_v16 = vmul.f32 %v868_v11, %v543_v56  ;;  %vm579_vm2 = vweird.f32 %v868_v11 }
 0x1ce   :  { %869 = vrcp.f32 %v544_v12  ;;  %v572_v17 = vsel %vm569_vm1, %v571_v13, %v567_v15  ;;  %vm580_vm4 = vmor %vm578_vm3, %vm579_vm2  ;;  %v598_v32 = vand.u32 2147483648, %v544_v12  ;;  %v596_v34 = vand.u32 2147483647, %v544_v12 }
 0x1cf   :  { %v575_v18 = vsub.f32 1.0, %v574_v16  ;;  %v610_v19 = vmul.f32 %v606_v14, %v572_v17  ;;  %vm592_vm7 = vweird.f32 %v544_v12 }
 0x1d0   :  { %v599_v37 = vor.u32 1.1754944e-38, %v598_v32  ;;  %vm597_vm9 = vcmp.eq.f32.partialorder %v596_v34, 8.507059e+37 }
 0x1d1   :  { %v576_v21 = vmul.f32 %v868_v11, %v575_v18  ;;  %v618_v23 = vadd.f32 %v1126_v62, %v610_v19 }
 0x1d3   :  { %v577_v24 = vadd.f32 %v868_v11, %v576_v21  ;;  %622 = vst [vmem:[#allocation3 + $0x8] sm:$0xff] %v618_v23 }
 0x1d4   :  { %v870_v25 = vpop.eup %869 }
 0x1d5   :  { %v581_v27 = vsel %vm580_vm4, %v868_v11, %v577_v24  ;;  %v588_v28 = vmul.f32 %v870_v25, %v544_v12  ;;  %vm593_vm6 = vweird.f32 %v870_v25 }
 0x1d6   :  { %v586_v29 = vsel %vm583_vm5, %v585_v26, %v581_v27  ;;  %vm594_vm8 = vmor %vm592_vm7, %vm593_vm6 }
 0x1d7   :  { %v589_v30 = vsub.f32 1.0, %v588_v28  ;;  %v611_v31 = vmul.f32 %v607_v46, %v586_v29 }
 0x1d9   :  { %v590_v33 = vmul.f32 %v870_v25, %v589_v30  ;;  %v619_v35 = vadd.f32 %v1126_v62, %v611_v31 }
 0x1db   :  { %v591_v36 = vadd.f32 %v870_v25, %v590_v33  ;;  %623 = vst [vmem:[#allocation3 + $0x10] sm:$0xff] %v619_v35 }
 0x1dd   :  { %v595_v38 = vsel %vm594_vm8, %v870_v25, %v591_v36 }
 0x1de   :  { %v600_v39 = vsel %vm597_vm9, %v599_v37, %v595_v38 }
 0x1df   :  { %v612_v40 = vmul.f32 %v608_v50, %v600_v39 }
 0x1e1   :  { %v620_v41 = vadd.f32 %v1126_v62, %v612_v40 }
 0x1e3   :  { %624 = vst [vmem:[#allocation3 + $0x18] sm:$0xff] %v620_v41 }
 0x1e4   :  { %637 = dma.vmem_to_hbm [thread:$0]  %s630_s29, 512, %s632_s8, [#allocation4], %s900_s9, %s900_s9, %s901_s10  }
 0x1e5   :  { %895 = dma.done.wait [#allocation4], 512  }
 0x1e6   :  { %896 = vsyncadd [#allocation4], 4294966784 }
 0x1e7   :  { %642 = vsyncpa [#allocation4], 1 }

</bundles_post_ra>
